<compile_context>
chip_gen: v5e
topology: v5e:2x2
jax: 0.10.0
libtpu: 0.0.40
codegen_flags: <defaults>
</compile_context>

<pallas_src>
import functools

import jax
import jax.numpy as jnp
from jax.experimental import pallas as pl
from jax.experimental.pallas import tpu as pltpu


LANE = 128


def _round_up(v, m):
    return ((v + m - 1) // m) * m


# ---------------------------------------------------------------------------
# Pallas kernel: M/N/K-tiled GEMM, f32 accumulator, fused bias + optional ReLU
# ---------------------------------------------------------------------------
def _gemm_kernel(x_ref, wt_ref, b_ref, o_ref, acc_ref, *, apply_relu):
    @pl.when(pl.program_id(2) == 0)
    def _():
        acc_ref[...] = jnp.zeros_like(acc_ref)

    acc_ref[...] += jnp.dot(x_ref[...], wt_ref[...],
                            preferred_element_type=jnp.float32)

    @pl.when(pl.program_id(2) == pl.num_programs(2) - 1)
    def _():
        out = acc_ref[...] + b_ref[...]
        if apply_relu:
            out = jnp.maximum(out, 0.0)
        o_ref[...] = out.astype(o_ref.dtype)


def gemm_bias_act(x, wt, b2, *, apply_relu, out_dtype,
                  tm_max=256, tn_max=512, tk_max=2048):
    """y = act(x @ wt + b2).

    x:  (M, K)    bf16
    wt: (K, Npad) bf16  (pre-transposed, N padded to a multiple of 128 at init)
    b2: (1, Npad) f32
    Returns (M, Npad) in out_dtype.
    """
    M, K = x.shape
    Kw, N = wt.shape
    assert K == Kw and N % LANE == 0

    # Row tile: 16-sublane aligned (bf16 packing), capped at tm_max.
    tm = min(tm_max, _round_up(max(M, 16), 16))
    Mp = _round_up(M, tm)
    if Mp != M:
        x = jnp.pad(x, ((0, Mp - M), (0, 0)))   # zero rows, sliced off by caller

    # Lane tile over output features (already a multiple of 128).
    tn = min(tn_max, N)

    # Contraction tile: keep whole K resident when small, otherwise tile K.
    if K <= tk_max:
        tk = K
    else:
        tk = tk_max
        Kp = _round_up(K, tk)
        if Kp != K:                              # zero K-padding is exact
            x = jnp.pad(x, ((0, 0), (0, Kp - K)))
            wt = jnp.pad(wt, ((0, Kp - K), (0, 0)))
        K = Kp

    kernel = functools.partial(_gemm_kernel, apply_relu=apply_relu)
    out = pl.pallas_call(
        kernel,
        out_shape=jax.ShapeDtypeStruct((Mp, N), out_dtype),
        grid_spec=pltpu.PrefetchScalarGridSpec(
            num_scalar_prefetch=0,
            grid=(Mp // tm, N // tn, K // tk),
            in_specs=[
                pl.BlockSpec((tm, tk), lambda i, j, k: (i, k)),   # x row tile
                pl.BlockSpec((tk, tn), lambda i, j, k: (k, j)),   # weight tile
                pl.BlockSpec((1, tn), lambda i, j, k: (0, j)),    # bias tile
            ],
            out_specs=pl.BlockSpec((tm, tn), lambda i, j, k: (i, j)),
            scratch_shapes=[pltpu.VMEM((tm, tn), jnp.float32)],
        ),
        compiler_params=pltpu.CompilerParams(
            dimension_semantics=("parallel", "parallel", "arbitrary")),
    )(x, wt, b2)
    return out[:M]


# ---------------------------------------------------------------------------
# Pallas kernel: fused fc1 -> ReLU -> fc2 -> ReLU -> fc3 (weights VMEM-resident)
# ---------------------------------------------------------------------------
def _fused_fc_kernel(x_ref, w1_ref, b1_ref, w2_ref, b2_ref, w3_ref, b3_ref,
                     o_ref):
    h = jnp.dot(x_ref[...], w1_ref[...], preferred_element_type=jnp.float32)
    h = jnp.maximum(h + b1_ref[...], 0.0).astype(jnp.bfloat16)
    h = jnp.dot(h, w2_ref[...], preferred_element_type=jnp.float32)
    h = jnp.maximum(h + b2_ref[...], 0.0).astype(jnp.bfloat16)
    h = jnp.dot(h, w3_ref[...], preferred_element_type=jnp.float32)
    o_ref[...] = (h + b3_ref[...]).astype(o_ref.dtype)


def fused_fc(x, w1t, b1, w2t, b2, w3t, b3, *, tm_max=256):
    """x: (M, K1) bf16; w*t: (K, Npad) bf16; b*: (1, Npad) f32. Returns (M, N3) f32."""
    M, K1 = x.shape
    N1 = w1t.shape[1]
    N2 = w2t.shape[1]
    N3 = w3t.shape[1]

    tm = min(tm_max, _round_up(max(M, 16), 16))
    Mp = _round_up(M, tm)
    if Mp != M:
        x = jnp.pad(x, ((0, Mp - M), (0, 0)))

    out = pl.pallas_call(
        _fused_fc_kernel,
        out_shape=jax.ShapeDtypeStruct((Mp, N3), jnp.float32),
        grid_spec=pltpu.PrefetchScalarGridSpec(
            num_scalar_prefetch=0,
            grid=(Mp // tm,),
            in_specs=[
                pl.BlockSpec((tm, K1), lambda i: (i, 0)),
                pl.BlockSpec((K1, N1), lambda i: (0, 0)),
                pl.BlockSpec((1, N1), lambda i: (0, 0)),
                pl.BlockSpec((N1, N2), lambda i: (0, 0)),
                pl.BlockSpec((1, N2), lambda i: (0, 0)),
                pl.BlockSpec((N2, N3), lambda i: (0, 0)),
                pl.BlockSpec((1, N3), lambda i: (0, 0)),
            ],
            out_specs=pl.BlockSpec((tm, N3), lambda i: (i, 0)),
        ),
        compiler_params=pltpu.CompilerParams(
            dimension_semantics=("parallel",)),
    )(x, w1t, b1, w2t, b2, w3t, b3)
    return out[:M]


# ---------------------------------------------------------------------------
# Conv2d (valid padding, PyTorch semantics) via NHWC im2col + Pallas GEMM
# ---------------------------------------------------------------------------
def _im2col_nhwc(x, kh, kw, stride):
    """x: (N, H, W, C) -> (N*Ho*Wo, KH*KW*C), feature order (KH, KW, C)."""
    n, h, w, c = x.shape
    ho = (h - kh) // stride + 1
    wo = (w - kw) // stride + 1
    cols = []
    for i in range(kh):
        for j in range(kw):
            cols.append(x[:, i:i + stride * ho:stride,
                          j:j + stride * wo:stride, :])
    p = jnp.stack(cols, axis=3)              # (N, Ho, Wo, KH*KW, C)
    return p.reshape(n * ho * wo, kh * kw * c), ho, wo


def conv2d_relu_nhwc(x, wmat, b2, *, cout, ksize, stride):
    """PyTorch nn.Conv2d(stride, padding=0) + ReLU on NHWC bf16 activations."""
    n = x.shape[0]
    patches, ho, wo = _im2col_nhwc(x, ksize, ksize, stride)
    y = gemm_bias_act(patches, wmat, b2, apply_relu=True,
                      out_dtype=jnp.bfloat16)           # (M, Cout_pad)
    return y[:, :cout].reshape(n, ho, wo, cout)          # stay NHWC


# ---------------------------------------------------------------------------
# Parameter init (PyTorch-default-style) and one-time packing to kernel layout
# ---------------------------------------------------------------------------
def init_params_torch_style(key, h3, w3):
    def uniform(k, shape, fan_in):
        bound = 1.0 / (float(fan_in) ** 0.5)
        return jax.random.uniform(k, shape, jnp.float32, -bound, bound)

    def conv_init(k, cout, cin, ksz):
        k1, k2 = jax.random.split(k)
        fan_in = cin * ksz * ksz
        return (uniform(k1, (cout, cin, ksz, ksz), fan_in),
                uniform(k2, (cout,), fan_in))

    def linear_init(k, out_f, in_f):
        k1, k2 = jax.random.split(k)
        return uniform(k1, (out_f, in_f), in_f), uniform(k2, (out_f,), in_f)

    keys = jax.random.split(key, 6)
    fc1_in = 64 * h3 * w3
    return {
        "conv1": conv_init(keys[0], 24, 3, 5),
        "conv2": conv_init(keys[1], 32, 24, 5),
        "conv3": conv_init(keys[2], 64, 32, 3),
        "fc1": linear_init(keys[3], 512, fc1_in),
        "fc2": linear_init(keys[4], 256, 512),
        "fc3": linear_init(keys[5], 3, 256),
    }


def _pack_conv(w, b):
    """(Cout,Cin,KH,KW) -> (KH*KW*Cin, Cout_pad128) bf16, bias (1, Cout_pad) f32."""
    cout, cin, kh, kw = w.shape
    wmat = jnp.transpose(w, (2, 3, 1, 0)).reshape(kh * kw * cin, cout)
    npad = _round_up(cout, LANE)
    wmat = jnp.pad(wmat, ((0, 0), (0, npad - cout))).astype(jnp.bfloat16)
    b2 = jnp.pad(b, (0, npad - cout)).reshape(1, npad).astype(jnp.float32)
    return wmat, b2


def _pack_linear(w, b):
    """(Nout, K) -> (K, Nout_pad128) bf16, bias (1, Nout_pad) f32."""
    out_f, _ = w.shape
    npad = _round_up(out_f, LANE)
    wt = jnp.pad(jnp.transpose(w), ((0, 0), (0, npad - out_f))).astype(jnp.bfloat16)
    b2 = jnp.pad(b, (0, npad - out_f)).reshape(1, npad).astype(jnp.float32)
    return wt, b2


def pack_params(raw, h3, w3):
    p = {
        "conv1": _pack_conv(*raw["conv1"]),
        "conv2": _pack_conv(*raw["conv2"]),
        "conv3": _pack_conv(*raw["conv3"]),
    }
    # fc1: permute once from PyTorch (C,H,W) flatten order to channels-last
    # (H,W,C) flatten order so the NHWC flatten matches exactly.
    w1, b1 = raw["fc1"]
    w1 = (w1.reshape(512, 64, h3, w3)
            .transpose(0, 2, 3, 1)
            .reshape(512, h3 * w3 * 64))
    p["fc1"] = _pack_linear(w1, b1)
    p["fc2"] = _pack_linear(*raw["fc2"])
    p["fc3"] = _pack_linear(*raw["fc3"])
    return p


# ---------------------------------------------------------------------------
# Full forward pass (mirrors AutonomousDriver.forward)
# ---------------------------------------------------------------------------
def autonomous_driver_forward(params, x):
    """x: (N, 3, H, W) f32 NCHW (PyTorch convention at the module boundary)."""
    x = jnp.transpose(x, (0, 2, 3, 1)).astype(jnp.bfloat16)   # one-time NHWC+bf16
    x = conv2d_relu_nhwc(x, *params["conv1"], cout=24, ksize=5, stride=2)
    x = conv2d_relu_nhwc(x, *params["conv2"], cout=32, ksize=5, stride=2)
    x = conv2d_relu_nhwc(x, *params["conv3"], cout=64, ksize=3, stride=1)
    x = x.reshape(x.shape[0], -1)              # channels-last flatten (matches fc1 pack)

    w1t, b1 = params["fc1"]
    w2t, b2 = params["fc2"]
    w3t, b3 = params["fc3"]
    if w1t.shape[0] * w1t.shape[1] * 2 <= 8 * 1024 * 1024:
        out = fused_fc(x, w1t, b1, w2t, b2, w3t, b3)          # single pallas_call
    else:
        # Real-PilotNet-scale fc1 weight does not fit VMEM: use K-tiled GEMMs.
        h = gemm_bias_act(x, w1t, b1, apply_relu=True, out_dtype=jnp.bfloat16)
        h = gemm_bias_act(h, w2t, b2, apply_relu=True, out_dtype=jnp.bfloat16)
        out = gemm_bias_act(h, w3t, b3, apply_relu=False, out_dtype=jnp.float32)
    return out[:, :3]


if __name__ == "__main__":
    key = jax.random.PRNGKey(0)
    k_in, k_params = jax.random.split(key)

    # Small NCHW input: 36 -> 16 -> 6 -> 4 spatial; flatten = 64*4*4 = 1024.
    N, C, H, W = 2, 3, 36, 36
    x = jax.random.normal(k_in, (N, C, H, W), jnp.float32)

    h1 = (H - 5) // 2 + 1
    h2 = (h1 - 5) // 2 + 1
    h3 = h2 - 3 + 1
    w1 = (W - 5) // 2 + 1
    w2 = (w1 - 5) // 2 + 1
    w3 = w2 - 3 + 1

    raw = init_params_torch_style(k_params, h3, w3)
    params = pack_params(raw, h3, w3)

    fwd = jax.jit(autonomous_driver_forward)
    out = jax.block_until_ready(fwd(params, x))

    assert out.shape == (N, 3), out.shape
    assert out.dtype == jnp.float32
    print("KERNEL_OK")
</pallas_src>

<mosaic_0001>
module attributes {stable_mosaic.version = 11 : i64} {
  func.func @_gemm_kernel(%arg0: i32, %arg1: i32, %arg2: i32, %arg3: memref<256x75xbf16, #tpu.memory_space<vmem>>, %arg4: memref<75x128xbf16, #tpu.memory_space<vmem>>, %arg5: memref<1x128xf32, #tpu.memory_space<vmem>>, %arg6: memref<256x128xbf16, #tpu.memory_space<vmem>>, %arg7: memref<256x128xf32, #tpu.memory_space<vmem>>) attributes {dimension_semantics = [#tpu.dimension_semantics<parallel>, #tpu.dimension_semantics<parallel>, #tpu.dimension_semantics<arbitrary>], iteration_bounds = array<i64: 2, 1, 1>, scalar_prefetch = 0 : i64, scratch_operands = 1 : i64, tpu.core_type = #tpu.core_type<tc>, window_params = [{transform_indices = @transform_0, window_bounds = array<i64: 256, 75>}, {transform_indices = @transform_1, window_bounds = array<i64: 75, 128>}, {transform_indices = @transform_2, window_bounds = array<i64: 1, 128>}, {transform_indices = @transform_3, window_bounds = array<i64: 256, 128>}]} {
    %c0_i32 = arith.constant 0 : i32
    %0 = arith.cmpi eq, %arg2, %c0_i32 : i32
    %1 = arith.extui %0 : i1 to i32
    %c0_i32_0 = arith.constant 0 : i32
    %2 = arith.cmpi ne, %1, %c0_i32_0 : i32
    scf.if %2 {
      %cst_10 = arith.constant 0.000000e+00 : f32
      %12 = vector.broadcast %cst_10 : f32 to vector<256x128xf32>
      %c0_11 = arith.constant 0 : index
      %c0_12 = arith.constant 0 : index
      %13 = vector.load %arg7[%c0_11, %c0_12] : memref<256x128xf32, #tpu.memory_space<vmem>>, vector<256x128xf32>
      tpu.vector_store %arg7[%c0_11, %c0_12], %12 {strides = array<i32>} : memref<256x128xf32, #tpu.memory_space<vmem>>, vector<256x128xf32>,
    } else {
    }
    %c0 = arith.constant 0 : index
    %c0_1 = arith.constant 0 : index
    %3 = vector.load %arg7[%c0, %c0_1] : memref<256x128xf32, #tpu.memory_space<vmem>>, vector<256x128xf32>
    %c0_2 = arith.constant 0 : index
    %c0_3 = arith.constant 0 : index
    %4 = vector.load %arg3[%c0_2, %c0_3] : memref<256x75xbf16, #tpu.memory_space<vmem>>, vector<256x75xbf16>
    %c0_4 = arith.constant 0 : index
    %c0_5 = arith.constant 0 : index
    %5 = vector.load %arg4[%c0_4, %c0_5] : memref<75x128xbf16, #tpu.memory_space<vmem>>, vector<75x128xbf16>
    %cst = arith.constant dense<0.000000e+00> : vector<256x128xf32>
    %6 = tpu.matmul %4, %5, %cst {dimension_numbers = #tpu.dot_dimension_numbers<[1], [0], [0], [1], [0, 0, 1, 1], [], []>} : vector<256x75xbf16>, vector<75x128xbf16>, vector<256x128xf32> -> vector<256x128xf32>
    %7 = arith.addf %3, %6 : vector<256x128xf32>
    %c0_6 = arith.constant 0 : index
    %c0_7 = arith.constant 0 : index
    %8 = vector.load %arg7[%c0_6, %c0_7] : memref<256x128xf32, #tpu.memory_space<vmem>>, vector<256x128xf32>
    tpu.vector_store %arg7[%c0_6, %c0_7], %7 {strides = array<i32>} : memref<256x128xf32, #tpu.memory_space<vmem>>, vector<256x128xf32>,
    %c0_i32_8 = arith.constant 0 : i32
    %9 = arith.cmpi eq, %arg2, %c0_i32_8 : i32
    %10 = arith.extui %9 : i1 to i32
    %c0_i32_9 = arith.constant 0 : i32
    %11 = arith.cmpi ne, %10, %c0_i32_9 : i32
    scf.if %11 {
      %c0_10 = arith.constant 0 : index
      %c0_11 = arith.constant 0 : index
      %12 = vector.load %arg7[%c0_10, %c0_11] : memref<256x128xf32, #tpu.memory_space<vmem>>, vector<256x128xf32>
      %c0_12 = arith.constant 0 : index
      %c0_13 = arith.constant 0 : index
      %13 = vector.load %arg5[%c0_12, %c0_13] : memref<1x128xf32, #tpu.memory_space<vmem>>, vector<1x128xf32>
      %14 = vector.broadcast %13 : vector<1x128xf32> to vector<256x128xf32>
      %15 = arith.addf %12, %14 : vector<256x128xf32>
      %cst_14 = arith.constant 0.000000e+00 : f32
      %16 = vector.broadcast %cst_14 : f32 to vector<256x128xf32>
      %17 = arith.maximumf %15, %16 : vector<256x128xf32>
      %18 = arith.truncf %17 : vector<256x128xf32> to vector<256x128xbf16>
      %c0_15 = arith.constant 0 : index
      %c0_16 = arith.constant 0 : index
      %19 = vector.load %arg6[%c0_15, %c0_16] : memref<256x128xbf16, #tpu.memory_space<vmem>>, vector<256x128xbf16>
      tpu.vector_store %arg6[%c0_15, %c0_16], %18 {strides = array<i32>} : memref<256x128xbf16, #tpu.memory_space<vmem>>, vector<256x128xbf16>,
    } else {
    }
    return
  }
  func.func @transform_0(%arg0: i32, %arg1: i32, %arg2: i32) -> (i32, i32) {
    %c0_i32 = arith.constant 0 : i32
    return %arg0, %arg2 : i32, i32
  }
  func.func @transform_1(%arg0: i32, %arg1: i32, %arg2: i32) -> (i32, i32) {
    %c0_i32 = arith.constant 0 : i32
    return %arg2, %arg1 : i32, i32
  }
  func.func @transform_2(%arg0: i32, %arg1: i32, %arg2: i32) -> (i32, i32) {
    %c0_i32 = arith.constant 0 : i32
    %c0_i32_0 = arith.constant 0 : i32
    return %c0_i32, %arg1 : i32, i32
  }
  func.func @transform_3(%arg0: i32, %arg1: i32, %arg2: i32) -> (i32, i32) {
    %c0_i32 = arith.constant 0 : i32
    return %arg0, %arg1 : i32, i32
  }
}

module attributes {stable_mosaic.version = 11 : i64} {
  func.func @_gemm_kernel(%arg0: i32, %arg1: i32, %arg2: i32, %arg3: memref<80x600xbf16, #tpu.memory_space<vmem>>, %arg4: memref<600x128xbf16, #tpu.memory_space<vmem>>, %arg5: memref<1x128xf32, #tpu.memory_space<vmem>>, %arg6: memref<80x128xbf16, #tpu.memory_space<vmem>>, %arg7: memref<80x128xf32, #tpu.memory_space<vmem>>) attributes {dimension_semantics = [#tpu.dimension_semantics<parallel>, #tpu.dimension_semantics<parallel>, #tpu.dimension_semantics<arbitrary>], iteration_bounds = array<i64: 1, 1, 1>, scalar_prefetch = 0 : i64, scratch_operands = 1 : i64, tpu.core_type = #tpu.core_type<tc>, window_params = [{transform_indices = @transform_0, window_bounds = array<i64: 80, 600>}, {transform_indices = @transform_1, window_bounds = array<i64: 600, 128>}, {transform_indices = @transform_2, window_bounds = array<i64: 1, 128>}, {transform_indices = @transform_3, window_bounds = array<i64: 80, 128>}]} {
    %c0_i32 = arith.constant 0 : i32
    %0 = arith.cmpi eq, %arg2, %c0_i32 : i32
    %1 = arith.extui %0 : i1 to i32
    %c0_i32_0 = arith.constant 0 : i32
    %2 = arith.cmpi ne, %1, %c0_i32_0 : i32
    scf.if %2 {
      %cst_10 = arith.constant 0.000000e+00 : f32
      %12 = vector.broadcast %cst_10 : f32 to vector<80x128xf32>
      %c0_11 = arith.constant 0 : index
      %c0_12 = arith.constant 0 : index
      %13 = vector.load %arg7[%c0_11, %c0_12] : memref<80x128xf32, #tpu.memory_space<vmem>>, vector<80x128xf32>
      tpu.vector_store %arg7[%c0_11, %c0_12], %12 {strides = array<i32>} : memref<80x128xf32, #tpu.memory_space<vmem>>, vector<80x128xf32>,
    } else {
    }
    %c0 = arith.constant 0 : index
    %c0_1 = arith.constant 0 : index
    %3 = vector.load %arg7[%c0, %c0_1] : memref<80x128xf32, #tpu.memory_space<vmem>>, vector<80x128xf32>
    %c0_2 = arith.constant 0 : index
    %c0_3 = arith.constant 0 : index
    %4 = vector.load %arg3[%c0_2, %c0_3] : memref<80x600xbf16, #tpu.memory_space<vmem>>, vector<80x600xbf16>
    %c0_4 = arith.constant 0 : index
    %c0_5 = arith.constant 0 : index
    %5 = vector.load %arg4[%c0_4, %c0_5] : memref<600x128xbf16, #tpu.memory_space<vmem>>, vector<600x128xbf16>
    %cst = arith.constant dense<0.000000e+00> : vector<80x128xf32>
    %6 = tpu.matmul %4, %5, %cst {dimension_numbers = #tpu.dot_dimension_numbers<[1], [0], [0], [1], [0, 0, 1, 1], [], []>} : vector<80x600xbf16>, vector<600x128xbf16>, vector<80x128xf32> -> vector<80x128xf32>
    %7 = arith.addf %3, %6 : vector<80x128xf32>
    %c0_6 = arith.constant 0 : index
    %c0_7 = arith.constant 0 : index
    %8 = vector.load %arg7[%c0_6, %c0_7] : memref<80x128xf32, #tpu.memory_space<vmem>>, vector<80x128xf32>
    tpu.vector_store %arg7[%c0_6, %c0_7], %7 {strides = array<i32>} : memref<80x128xf32, #tpu.memory_space<vmem>>, vector<80x128xf32>,
    %c0_i32_8 = arith.constant 0 : i32
    %9 = arith.cmpi eq, %arg2, %c0_i32_8 : i32
    %10 = arith.extui %9 : i1 to i32
    %c0_i32_9 = arith.constant 0 : i32
    %11 = arith.cmpi ne, %10, %c0_i32_9 : i32
    scf.if %11 {
      %c0_10 = arith.constant 0 : index
      %c0_11 = arith.constant 0 : index
      %12 = vector.load %arg7[%c0_10, %c0_11] : memref<80x128xf32, #tpu.memory_space<vmem>>, vector<80x128xf32>
      %c0_12 = arith.constant 0 : index
      %c0_13 = arith.constant 0 : index
      %13 = vector.load %arg5[%c0_12, %c0_13] : memref<1x128xf32, #tpu.memory_space<vmem>>, vector<1x128xf32>
      %14 = vector.broadcast %13 : vector<1x128xf32> to vector<80x128xf32>
      %15 = arith.addf %12, %14 : vector<80x128xf32>
      %cst_14 = arith.constant 0.000000e+00 : f32
      %16 = vector.broadcast %cst_14 : f32 to vector<80x128xf32>
      %17 = arith.maximumf %15, %16 : vector<80x128xf32>
      %18 = arith.truncf %17 : vector<80x128xf32> to vector<80x128xbf16>
      %c0_15 = arith.constant 0 : index
      %c0_16 = arith.constant 0 : index
      %19 = vector.load %arg6[%c0_15, %c0_16] : memref<80x128xbf16, #tpu.memory_space<vmem>>, vector<80x128xbf16>
      tpu.vector_store %arg6[%c0_15, %c0_16], %18 {strides = array<i32>} : memref<80x128xbf16, #tpu.memory_space<vmem>>, vector<80x128xbf16>,
    } else {
    }
    return
  }
  func.func @transform_0(%arg0: i32, %arg1: i32, %arg2: i32) -> (i32, i32) {
    %c0_i32 = arith.constant 0 : i32
    return %arg0, %arg2 : i32, i32
  }
  func.func @transform_1(%arg0: i32, %arg1: i32, %arg2: i32) -> (i32, i32) {
    %c0_i32 = arith.constant 0 : i32
    return %arg2, %arg1 : i32, i32
  }
  func.func @transform_2(%arg0: i32, %arg1: i32, %arg2: i32) -> (i32, i32) {
    %c0_i32 = arith.constant 0 : i32
    %c0_i32_0 = arith.constant 0 : i32
    return %c0_i32, %arg1 : i32, i32
  }
  func.func @transform_3(%arg0: i32, %arg1: i32, %arg2: i32) -> (i32, i32) {
    %c0_i32 = arith.constant 0 : i32
    return %arg0, %arg1 : i32, i32
  }
}

module attributes {stable_mosaic.version = 11 : i64} {
  func.func @_gemm_kernel(%arg0: i32, %arg1: i32, %arg2: i32, %arg3: memref<32x288xbf16, #tpu.memory_space<vmem>>, %arg4: memref<288x128xbf16, #tpu.memory_space<vmem>>, %arg5: memref<1x128xf32, #tpu.memory_space<vmem>>, %arg6: memref<32x128xbf16, #tpu.memory_space<vmem>>, %arg7: memref<32x128xf32, #tpu.memory_space<vmem>>) attributes {dimension_semantics = [#tpu.dimension_semantics<parallel>, #tpu.dimension_semantics<parallel>, #tpu.dimension_semantics<arbitrary>], iteration_bounds = array<i64: 1, 1, 1>, scalar_prefetch = 0 : i64, scratch_operands = 1 : i64, tpu.core_type = #tpu.core_type<tc>, window_params = [{transform_indices = @transform_0, window_bounds = array<i64: 32, 288>}, {transform_indices = @transform_1, window_bounds = array<i64: 288, 128>}, {transform_indices = @transform_2, window_bounds = array<i64: 1, 128>}, {transform_indices = @transform_3, window_bounds = array<i64: 32, 128>}]} {
    %c0_i32 = arith.constant 0 : i32
    %0 = arith.cmpi eq, %arg2, %c0_i32 : i32
    %1 = arith.extui %0 : i1 to i32
    %c0_i32_0 = arith.constant 0 : i32
    %2 = arith.cmpi ne, %1, %c0_i32_0 : i32
    scf.if %2 {
      %cst_10 = arith.constant 0.000000e+00 : f32
      %12 = vector.broadcast %cst_10 : f32 to vector<32x128xf32>
      %c0_11 = arith.constant 0 : index
      %c0_12 = arith.constant 0 : index
      %13 = vector.load %arg7[%c0_11, %c0_12] : memref<32x128xf32, #tpu.memory_space<vmem>>, vector<32x128xf32>
      tpu.vector_store %arg7[%c0_11, %c0_12], %12 {strides = array<i32>} : memref<32x128xf32, #tpu.memory_space<vmem>>, vector<32x128xf32>,
    } else {
    }
    %c0 = arith.constant 0 : index
    %c0_1 = arith.constant 0 : index
    %3 = vector.load %arg7[%c0, %c0_1] : memref<32x128xf32, #tpu.memory_space<vmem>>, vector<32x128xf32>
    %c0_2 = arith.constant 0 : index
    %c0_3 = arith.constant 0 : index
    %4 = vector.load %arg3[%c0_2, %c0_3] : memref<32x288xbf16, #tpu.memory_space<vmem>>, vector<32x288xbf16>
    %c0_4 = arith.constant 0 : index
    %c0_5 = arith.constant 0 : index
    %5 = vector.load %arg4[%c0_4, %c0_5] : memref<288x128xbf16, #tpu.memory_space<vmem>>, vector<288x128xbf16>
    %cst = arith.constant dense<0.000000e+00> : vector<32x128xf32>
    %6 = tpu.matmul %4, %5, %cst {dimension_numbers = #tpu.dot_dimension_numbers<[1], [0], [0], [1], [0, 0, 1, 1], [], []>} : vector<32x288xbf16>, vector<288x128xbf16>, vector<32x128xf32> -> vector<32x128xf32>
    %7 = arith.addf %3, %6 : vector<32x128xf32>
    %c0_6 = arith.constant 0 : index
    %c0_7 = arith.constant 0 : index
    %8 = vector.load %arg7[%c0_6, %c0_7] : memref<32x128xf32, #tpu.memory_space<vmem>>, vector<32x128xf32>
    tpu.vector_store %arg7[%c0_6, %c0_7], %7 {strides = array<i32>} : memref<32x128xf32, #tpu.memory_space<vmem>>, vector<32x128xf32>,
    %c0_i32_8 = arith.constant 0 : i32
    %9 = arith.cmpi eq, %arg2, %c0_i32_8 : i32
    %10 = arith.extui %9 : i1 to i32
    %c0_i32_9 = arith.constant 0 : i32
    %11 = arith.cmpi ne, %10, %c0_i32_9 : i32
    scf.if %11 {
      %c0_10 = arith.constant 0 : index
      %c0_11 = arith.constant 0 : index
      %12 = vector.load %arg7[%c0_10, %c0_11] : memref<32x128xf32, #tpu.memory_space<vmem>>, vector<32x128xf32>
      %c0_12 = arith.constant 0 : index
      %c0_13 = arith.constant 0 : index
      %13 = vector.load %arg5[%c0_12, %c0_13] : memref<1x128xf32, #tpu.memory_space<vmem>>, vector<1x128xf32>
      %14 = vector.broadcast %13 : vector<1x128xf32> to vector<32x128xf32>
      %15 = arith.addf %12, %14 : vector<32x128xf32>
      %cst_14 = arith.constant 0.000000e+00 : f32
      %16 = vector.broadcast %cst_14 : f32 to vector<32x128xf32>
      %17 = arith.maximumf %15, %16 : vector<32x128xf32>
      %18 = arith.truncf %17 : vector<32x128xf32> to vector<32x128xbf16>
      %c0_15 = arith.constant 0 : index
      %c0_16 = arith.constant 0 : index
      %19 = vector.load %arg6[%c0_15, %c0_16] : memref<32x128xbf16, #tpu.memory_space<vmem>>, vector<32x128xbf16>
      tpu.vector_store %arg6[%c0_15, %c0_16], %18 {strides = array<i32>} : memref<32x128xbf16, #tpu.memory_space<vmem>>, vector<32x128xbf16>,
    } else {
    }
    return
  }
  func.func @transform_0(%arg0: i32, %arg1: i32, %arg2: i32) -> (i32, i32) {
    %c0_i32 = arith.constant 0 : i32
    return %arg0, %arg2 : i32, i32
  }
  func.func @transform_1(%arg0: i32, %arg1: i32, %arg2: i32) -> (i32, i32) {
    %c0_i32 = arith.constant 0 : i32
    return %arg2, %arg1 : i32, i32
  }
  func.func @transform_2(%arg0: i32, %arg1: i32, %arg2: i32) -> (i32, i32) {
    %c0_i32 = arith.constant 0 : i32
    %c0_i32_0 = arith.constant 0 : i32
    return %c0_i32, %arg1 : i32, i32
  }
  func.func @transform_3(%arg0: i32, %arg1: i32, %arg2: i32) -> (i32, i32) {
    %c0_i32 = arith.constant 0 : i32
    return %arg0, %arg1 : i32, i32
  }
}

module attributes {stable_mosaic.version = 11 : i64} {
  func.func @_fused_fc_kernel(%arg0: i32, %arg1: memref<16x1024xbf16, #tpu.memory_space<vmem>>, %arg2: memref<1024x512xbf16, #tpu.memory_space<vmem>>, %arg3: memref<1x512xf32, #tpu.memory_space<vmem>>, %arg4: memref<512x256xbf16, #tpu.memory_space<vmem>>, %arg5: memref<1x256xf32, #tpu.memory_space<vmem>>, %arg6: memref<256x128xbf16, #tpu.memory_space<vmem>>, %arg7: memref<1x128xf32, #tpu.memory_space<vmem>>, %arg8: memref<16x128xf32, #tpu.memory_space<vmem>>) attributes {dimension_semantics = [#tpu.dimension_semantics<parallel>], iteration_bounds = array<i64: 1>, scalar_prefetch = 0 : i64, scratch_operands = 0 : i64, tpu.core_type = #tpu.core_type<tc>, window_params = [{transform_indices = @transform_0, window_bounds = array<i64: 16, 1024>}, {pipeline_mode = #tpu.pipeline_mode<synchronous>, transform_indices = @transform_1, window_bounds = array<i64: 1024, 512>}, {pipeline_mode = #tpu.pipeline_mode<synchronous>, transform_indices = @transform_2, window_bounds = array<i64: 1, 512>}, {pipeline_mode = #tpu.pipeline_mode<synchronous>, transform_indices = @transform_3, window_bounds = array<i64: 512, 256>}, {pipeline_mode = #tpu.pipeline_mode<synchronous>, transform_indices = @transform_4, window_bounds = array<i64: 1, 256>}, {pipeline_mode = #tpu.pipeline_mode<synchronous>, transform_indices = @transform_5, window_bounds = array<i64: 256, 128>}, {pipeline_mode = #tpu.pipeline_mode<synchronous>, transform_indices = @transform_6, window_bounds = array<i64: 1, 128>}, {transform_indices = @transform_7, window_bounds = array<i64: 16, 128>}]} {
    %c0 = arith.constant 0 : index
    %c0_0 = arith.constant 0 : index
    %0 = vector.load %arg1[%c0, %c0_0] : memref<16x1024xbf16, #tpu.memory_space<vmem>>, vector<16x1024xbf16>
    %c0_1 = arith.constant 0 : index
    %c0_2 = arith.constant 0 : index
    %1 = vector.load %arg2[%c0_1, %c0_2] : memref<1024x512xbf16, #tpu.memory_space<vmem>>, vector<1024x512xbf16>
    %cst = arith.constant dense<0.000000e+00> : vector<16x512xf32>
    %2 = tpu.matmul %0, %1, %cst {dimension_numbers = #tpu.dot_dimension_numbers<[1], [0], [0], [1], [0, 0, 1, 1], [], []>} : vector<16x1024xbf16>, vector<1024x512xbf16>, vector<16x512xf32> -> vector<16x512xf32>
    %c0_3 = arith.constant 0 : index
    %c0_4 = arith.constant 0 : index
    %3 = vector.load %arg3[%c0_3, %c0_4] : memref<1x512xf32, #tpu.memory_space<vmem>>, vector<1x512xf32>
    %4 = vector.broadcast %3 : vector<1x512xf32> to vector<16x512xf32>
    %5 = arith.addf %2, %4 : vector<16x512xf32>
    %cst_5 = arith.constant 0.000000e+00 : f32
    %6 = vector.broadcast %cst_5 : f32 to vector<16x512xf32>
    %7 = arith.maximumf %5, %6 : vector<16x512xf32>
    %8 = arith.truncf %7 : vector<16x512xf32> to vector<16x512xbf16>
    %c0_6 = arith.constant 0 : index
    %c0_7 = arith.constant 0 : index
    %9 = vector.load %arg4[%c0_6, %c0_7] : memref<512x256xbf16, #tpu.memory_space<vmem>>, vector<512x256xbf16>
    %cst_8 = arith.constant dense<0.000000e+00> : vector<16x256xf32>
    %10 = tpu.matmul %8, %9, %cst_8 {dimension_numbers = #tpu.dot_dimension_numbers<[1], [0], [0], [1], [0, 0, 1, 1], [], []>} : vector<16x512xbf16>, vector<512x256xbf16>, vector<16x256xf32> -> vector<16x256xf32>
    %c0_9 = arith.constant 0 : index
    %c0_10 = arith.constant 0 : index
    %11 = vector.load %arg5[%c0_9, %c0_10] : memref<1x256xf32, #tpu.memory_space<vmem>>, vector<1x256xf32>
    %12 = vector.broadcast %11 : vector<1x256xf32> to vector<16x256xf32>
    %13 = arith.addf %10, %12 : vector<16x256xf32>
    %cst_11 = arith.constant 0.000000e+00 : f32
    %14 = vector.broadcast %cst_11 : f32 to vector<16x256xf32>
    %15 = arith.maximumf %13, %14 : vector<16x256xf32>
    %16 = arith.truncf %15 : vector<16x256xf32> to vector<16x256xbf16>
    %c0_12 = arith.constant 0 : index
    %c0_13 = arith.constant 0 : index
    %17 = vector.load %arg6[%c0_12, %c0_13] : memref<256x128xbf16, #tpu.memory_space<vmem>>, vector<256x128xbf16>
    %cst_14 = arith.constant dense<0.000000e+00> : vector<16x128xf32>
    %18 = tpu.matmul %16, %17, %cst_14 {dimension_numbers = #tpu.dot_dimension_numbers<[1], [0], [0], [1], [0, 0, 1, 1], [], []>} : vector<16x256xbf16>, vector<256x128xbf16>, vector<16x128xf32> -> vector<16x128xf32>
    %c0_15 = arith.constant 0 : index
    %c0_16 = arith.constant 0 : index
    %19 = vector.load %arg7[%c0_15, %c0_16] : memref<1x128xf32, #tpu.memory_space<vmem>>, vector<1x128xf32>
    %20 = vector.broadcast %19 : vector<1x128xf32> to vector<16x128xf32>
    %21 = arith.addf %18, %20 : vector<16x128xf32>
    %c0_17 = arith.constant 0 : index
    %c0_18 = arith.constant 0 : index
    %22 = vector.load %arg8[%c0_17, %c0_18] : memref<16x128xf32, #tpu.memory_space<vmem>>, vector<16x128xf32>
    tpu.vector_store %arg8[%c0_17, %c0_18], %21 {strides = array<i32>} : memref<16x128xf32, #tpu.memory_space<vmem>>, vector<16x128xf32>,
    return
  }
  func.func @transform_0(%arg0: i32) -> (i32, i32) {
    %c0_i32 = arith.constant 0 : i32
    %c0_i32_0 = arith.constant 0 : i32
    return %arg0, %c0_i32 : i32, i32
  }
  func.func @transform_1(%arg0: i32) -> (i32, i32) {
    %c0_i32 = arith.constant 0 : i32
    %c0_i32_0 = arith.constant 0 : i32
    %c0_i32_1 = arith.constant 0 : i32
    return %c0_i32, %c0_i32_0 : i32, i32
  }
  func.func @transform_2(%arg0: i32) -> (i32, i32) {
    %c0_i32 = arith.constant 0 : i32
    %c0_i32_0 = arith.constant 0 : i32
    %c0_i32_1 = arith.constant 0 : i32
    return %c0_i32, %c0_i32_0 : i32, i32
  }
  func.func @transform_3(%arg0: i32) -> (i32, i32) {
    %c0_i32 = arith.constant 0 : i32
    %c0_i32_0 = arith.constant 0 : i32
    %c0_i32_1 = arith.constant 0 : i32
    return %c0_i32, %c0_i32_0 : i32, i32
  }
  func.func @transform_4(%arg0: i32) -> (i32, i32) {
    %c0_i32 = arith.constant 0 : i32
    %c0_i32_0 = arith.constant 0 : i32
    %c0_i32_1 = arith.constant 0 : i32
    return %c0_i32, %c0_i32_0 : i32, i32
  }
  func.func @transform_5(%arg0: i32) -> (i32, i32) {
    %c0_i32 = arith.constant 0 : i32
    %c0_i32_0 = arith.constant 0 : i32
    %c0_i32_1 = arith.constant 0 : i32
    return %c0_i32, %c0_i32_0 : i32, i32
  }
  func.func @transform_6(%arg0: i32) -> (i32, i32) {
    %c0_i32 = arith.constant 0 : i32
    %c0_i32_0 = arith.constant 0 : i32
    %c0_i32_1 = arith.constant 0 : i32
    return %c0_i32, %c0_i32_0 : i32, i32
  }
  func.func @transform_7(%arg0: i32) -> (i32, i32) {
    %c0_i32 = arith.constant 0 : i32
    %c0_i32_0 = arith.constant 0 : i32
    return %arg0, %c0_i32 : i32, i32
  }
}

</mosaic_0001>

<bundles_post_ra>
// kernel: autonomous_driver_forward.4
= control target key start
LH: loop header
LB: loop body
LE: loop exit
PB: predicated region body
PF: predicated region fallthrough
CT: control target
= control target key end

     0   :  { %s1281_s12 = smov 0   ;;  %s1283_s13 = smov 0   ;;  %s1431_s0 = inlined_call_operand.vmem [shape: bf16[512,75], index: 0, kind: input, shape index: {}]   ;;  %s1432_s1 = inlined_call_operand.vmem [shape: bf16[75,128], index: 1, kind: input, shape index: {}]   ;;  %s1433_s2 = inlined_call_operand.vmem [shape: f32[1,128], index: 2, kind: input, shape index: {}]   ;;  %s1434_s3 = inlined_call_operand.vmem [shape: bf16[512,128], index: 3, kind: output, shape index: {}]  }
   0x1   :  { %s1285_s14 = smov 0  }
   0x2 LB: > { %s32_s15 = sadd.s32 1, %s1254_s13  ;;  %p972_p0 = scmp.ge.s32.totalorder %s1258_s14, 1  ;;  %s1258_s14 = sphi %s1285_s14, %s13_s14   ;;  %s1254_s13 = sphi %s1283_s13, %s1436_s13   ;;  %s1250_s12 = sphi %s1281_s12, %s1435_s12  }
   0x3   : > { %p34_p1 = scmp.ge.s32.totalorder %s32_s15, 2  ;;  %p188_p2 = scmp.lt.s32.totalorder %s1258_s14, 3 }
   0x5   : > { %s1438_s15 = smov (%p34_p1, %s32_s15), 0  ;;  %p189_p3 = pnand %p972_p0, %p188_p2 }
   0x6   : > { %s973_s20 = sshll.u32 (!%p189_p3), %s1250_s12, 5 }
   0x7   : > { %192 = sbr.rel (%p189_p3) target bundleno = 234 (0xea), region = 32  ;;  %p230_p4 = scmp.lt.s32.totalorder (!%p189_p3), %s973_s20, 63 }
   0xc   : > { %v1059_v0 = vld [vmem:[%s1432_s1 + $0x20] sm:$0xf]  ;;  %v1099_v1 = vld [vmem:[%s1432_s1 + $0x20] sm:$0x30]  ;;  %vm528_vm0 = vcmask 1044480   ;;  %vm529_vm1 = vcmask 1045504  }
   0xd   : > { %v1060_v2 = vor.u32 %v1099_v1, %v1059_v0  ;;  %v1260_v3 = vmov 65535   ;;  %v1098_v7 = vld [vmem:[%s1432_s1 + $0x18] sm:$0xff]  ;;  %v1097_v8 = vld [vmem:[%s1432_s1 + $0x10] sm:$0xff]  ;;  %s1440_s20 = smov (!%p230_p4, %s973_s20), 63  ;;  %v1096_v9 = vld [vmem:[%s1432_s1 + $0x8] sm:$0xff]  ;;  %vm479_vm2 = vcmask 613376  }
   0xe   : > { %v530_v4 = vsel %vm528_vm0, 4294967295, %v1260_v3  ;;  %s974_s27 = sshll.u32 %s1440_s20, 2  ;;  %v1095_v10 = vld [vmem:[%s1432_s1] sm:$0xff] }
   0xf   : > { %v531_v5 = vsel %vm529_vm1, %v530_v4, 0  ;;  %s1328_s5 = scalar_lea.vmem %s1431_s0, %s974_s27  ;;  %v1365_v29 = vld [vmem:[%s1433_s2] ss:$0 sm:$0xff]  ;;  %s1376_s10 = scalar_lea.vmem %s1434_s3, %s974_s27 }
  0x10   : > { %v533_v6 = vand.u32 %v1060_v2, %v531_v5  ;;  %v1079_v11 = vld [vmem:[%s1328_s5] sm:$0xff]  ;;  %v1080_v15 = vld [vmem:[%s1328_s5 + $0x8] sm:$0xff]  ;;  %v1081_v19 = vld [vmem:[%s1328_s5 + $0x10] sm:$0xff] }
  0x11   : > { %v1083_v12 = vld [vmem:[%s1328_s5 + $0x20] sm:$0xff]  ;;  %v1084_v16 = vld [vmem:[%s1328_s5 + $0x28] sm:$0xff]  ;;  %v1085_v20 = vld [vmem:[%s1328_s5 + $0x30] sm:$0xff] }
  0x12   : > { %538 = vmatpush.bf16.msra.mxu0 %v533_v6  ;;  %1195 = vmatpush.bf16.msra.mxu1 %v533_v6  ;;  %v1087_v13 = vld [vmem:[%s1328_s5 + $0x40] sm:$0xff]  ;;  %v1088_v17 = vld [vmem:[%s1328_s5 + $0x48] sm:$0xff]  ;;  %v1089_v21 = vld [vmem:[%s1328_s5 + $0x50] sm:$0xff] }
  0x13   : > { %1196 = vmatpush.bf16.msra.mxu2 %v533_v6  ;;  %1197 = vmatpush.bf16.msra.mxu3 %v533_v6  ;;  %v1091_v14 = vld [vmem:[%s1328_s5 + $0x60] sm:$0xff]  ;;  %v1092_v18 = vld [vmem:[%s1328_s5 + $0x68] sm:$0xff]  ;;  %v1093_v22 = vld [vmem:[%s1328_s5 + $0x70] sm:$0xff] }
  0x14   : > { %v1082_v23 = vld [vmem:[%s1328_s5 + $0x18] sm:$0xff] }
  0x15   : > { %v1086_v24 = vld [vmem:[%s1328_s5 + $0x38] sm:$0xff] }
  0x16   : > { %539 = vmatpush.bf16.msra.mxu0 %v1098_v7  ;;  %1198 = vmatpush.bf16.msra.mxu1 %v1098_v7  ;;  %v1090_v25 = vld [vmem:[%s1328_s5 + $0x58] sm:$0xff] }
  0x17   : > { %1199 = vmatpush.bf16.msra.mxu2 %v1098_v7  ;;  %1200 = vmatpush.bf16.msra.mxu3 %v1098_v7  ;;  %v1094_v26 = vld [vmem:[%s1328_s5 + $0x78] sm:$0xff] }
  0x1a   : > { %540 = vmatpush.bf16.msra.mxu0 %v1097_v8  ;;  %1201 = vmatpush.bf16.msra.mxu1 %v1097_v8 }
  0x1b   : > { %1202 = vmatpush.bf16.msra.mxu2 %v1097_v8  ;;  %1203 = vmatpush.bf16.msra.mxu3 %v1097_v8 }
  0x1e   : > { %541 = vmatpush.bf16.msra.mxu0 %v1096_v9  ;;  %1204 = vmatpush.bf16.msra.mxu1 %v1096_v9 }
  0x1f   : > { %1205 = vmatpush.bf16.msra.mxu2 %v1096_v9  ;;  %1206 = vmatpush.bf16.msra.mxu3 %v1096_v9 }
  0x22   : > { %542 = vmatpush.bf16.msra.mxu0 %v1095_v10  ;;  %1207 = vmatpush.bf16.msra.mxu1 %v1095_v10 }
  0x23   : > { %1208 = vmatpush.bf16.msra.mxu2 %v1095_v10  ;;  %1209 = vmatpush.bf16.msra.mxu3 %v1095_v10 }
  0x25   : > { %1061 = vmatmul.msk.bf16.vlgmr.msra.gmra.mxu0 %vm479_vm2, %v1079_v11  ;;  %1065 = vmatmul.msk.bf16.vlgmr.msra.gmra.mxu1 %vm479_vm2, %v1083_v12 }
  0x26   : > { %1069 = vmatmul.msk.bf16.vlgmr.msra.gmra.mxu2 %vm479_vm2, %v1087_v13  ;;  %1073 = vmatmul.msk.bf16.vlgmr.msra.gmra.mxu3 %vm479_vm2, %v1091_v14 }
  0x35   : > { %1062 = vmatmul.msk.bf16.gmra.mxu0 %vm479_vm2, %v1080_v15  ;;  %1066 = vmatmul.msk.bf16.gmra.mxu1 %vm479_vm2, %v1084_v16 }
  0x36   : > { %1070 = vmatmul.msk.bf16.gmra.mxu2 %vm479_vm2, %v1088_v17  ;;  %1074 = vmatmul.msk.bf16.gmra.mxu3 %vm479_vm2, %v1092_v18 }
  0x45   : > { %1063 = vmatmul.msk.bf16.gmra.mxu0 %vm479_vm2, %v1081_v19  ;;  %1067 = vmatmul.msk.bf16.gmra.mxu1 %vm479_vm2, %v1085_v20 }
  0x46   : > { %1071 = vmatmul.msk.bf16.gmra.mxu2 %vm479_vm2, %v1089_v21  ;;  %1075 = vmatmul.msk.bf16.gmra.mxu3 %vm479_vm2, %v1093_v22 }
  0x55   : > { %1064 = vmatmul.msk.bf16.gmra.mxu0 %vm479_vm2, %v1082_v23  ;;  %1068 = vmatmul.msk.bf16.gmra.mxu1 %vm479_vm2, %v1086_v24 }
  0x56   : > { %1072 = vmatmul.msk.bf16.gmra.mxu2 %vm479_vm2, %v1090_v25  ;;  %1076 = vmatmul.msk.bf16.gmra.mxu3 %vm479_vm2, %v1094_v26 }
  0xa2   : > { %v544_v27 = vpop.f32.mrf.mxu0  ;;  %v564_v28 = vpop.f32.mrf.mxu1 }
  0xa3   : > { %v727_v30 = vadd.f32 %v1365_v29, %v544_v27  ;;  %v735_v31 = vadd.f32 %v1365_v29, %v564_v28 }
  0xa5   : > { %v759_v38 = vmax.f32 %v727_v30, 0.0  ;;  %v767_v39 = vmax.f32 %v735_v31, 0.0 }
  0xa9   : > { %v584_v32 = vpop.f32.mrf.mxu2  ;;  %v604_v33 = vpop.f32.mrf.mxu3 }
  0xaa   : > { %v546_v34 = vpop.f32.mrf.mxu0  ;;  %v566_v35 = vpop.f32.mrf.mxu1  ;;  %v743_v44 = vadd.f32 %v1365_v29, %v584_v32  ;;  %v751_v45 = vadd.f32 %v1365_v29, %v604_v33 }
  0xab   : > { %v728_v36 = vadd.f32 %v1365_v29, %v546_v34  ;;  %v736_v37 = vadd.f32 %v1365_v29, %v566_v35 }
  0xac   : > { %v775_v52 = vmax.f32 %v743_v44, 0.0  ;;  %v783_v53 = vmax.f32 %v751_v45, 0.0 }
  0xad   : > { %v760_v40 = vmax.f32 %v728_v36, 0.0  ;;  %v768_v41 = vmax.f32 %v736_v37, 0.0 }
  0xaf   : > { %v1103_v42 = vpack.c.bf16 %v760_v40, %v759_v38  ;;  %v1123_v43 = vpack.c.bf16 %v768_v41, %v767_v39 }
  0xb1   : > { %1104 = vst [vmem:[%s1376_s10] sm:$0xff] %v1103_v42   ;;  %v586_v46 = vpop.f32.mrf.mxu2  ;;  %v606_v47 = vpop.f32.mrf.mxu3 }
  0xb2   : > { %1183 = vst [vmem:[%s1376_s10 + $0x20] sm:$0xff] %v1123_v43   ;;  %v744_v48 = vadd.f32 %v1365_v29, %v586_v46  ;;  %v752_v49 = vadd.f32 %v1365_v29, %v606_v47  ;;  %v549_v50 = vpop.f32.mrf.mxu0  ;;  %v569_v51 = vpop.f32.mrf.mxu1 }
  0xb3   : > { %v729_v58 = vadd.f32 %v1365_v29, %v549_v50  ;;  %v737_v59 = vadd.f32 %v1365_v29, %v569_v51 }
  0xb4   : > { %v776_v54 = vmax.f32 %v744_v48, 0.0  ;;  %v784_v55 = vmax.f32 %v752_v49, 0.0 }
  0xb5   : > { %v761_v2 = vmax.f32 %v729_v58, 0.0  ;;  %v769_v3 = vmax.f32 %v737_v59, 0.0 }
  0xb6   : > { %v1143_v56 = vpack.c.bf16 %v776_v54, %v775_v52  ;;  %v1163_v57 = vpack.c.bf16 %v784_v55, %v783_v53 }
  0xb8   : > { %1187 = vst [vmem:[%s1376_s10 + $0x40] sm:$0xff] %v1143_v56  }
  0xb9   : > { %1191 = vst [vmem:[%s1376_s10 + $0x60] sm:$0xff] %v1163_v57   ;;  %v589_v60 = vpop.f32.mrf.mxu2  ;;  %v609_v61 = vpop.f32.mrf.mxu3 }
  0xba   : > { %v551_v62 = vpop.f32.mrf.mxu0  ;;  %v571_v63 = vpop.f32.mrf.mxu1  ;;  %v745_v8 = vadd.f32 %v1365_v29, %v589_v60  ;;  %v753_v9 = vadd.f32 %v1365_v29, %v609_v61 }
  0xbb   : > { %v730_v0 = vadd.f32 %v1365_v29, %v551_v62  ;;  %v738_v1 = vadd.f32 %v1365_v29, %v571_v63 }
  0xbc   : > { %v777_v16 = vmax.f32 %v745_v8, 0.0  ;;  %v785_v17 = vmax.f32 %v753_v9, 0.0 }
  0xbd   : > { %v762_v4 = vmax.f32 %v730_v0, 0.0  ;;  %v770_v5 = vmax.f32 %v738_v1, 0.0 }
  0xbf   : > { %v1108_v6 = vpack.c.bf16 %v762_v4, %v761_v2  ;;  %v1128_v7 = vpack.c.bf16 %v770_v5, %v769_v3 }
  0xc1   : > { %1180 = vst [vmem:[%s1376_s10 + $0x8] sm:$0xff] %v1108_v6   ;;  %v591_v10 = vpop.f32.mrf.mxu2  ;;  %v611_v11 = vpop.f32.mrf.mxu3 }
  0xc2   : > { %1184 = vst [vmem:[%s1376_s10 + $0x28] sm:$0xff] %v1128_v7   ;;  %v746_v12 = vadd.f32 %v1365_v29, %v591_v10  ;;  %v754_v13 = vadd.f32 %v1365_v29, %v611_v11  ;;  %v554_v14 = vpop.f32.mrf.mxu0  ;;  %v574_v15 = vpop.f32.mrf.mxu1 }
  0xc3   : > { %v731_v22 = vadd.f32 %v1365_v29, %v554_v14  ;;  %v739_v23 = vadd.f32 %v1365_v29, %v574_v15 }
  0xc4   : > { %v778_v18 = vmax.f32 %v746_v12, 0.0  ;;  %v786_v19 = vmax.f32 %v754_v13, 0.0 }
  0xc5   : > { %v763_v31 = vmax.f32 %v731_v22, 0.0  ;;  %v771_v32 = vmax.f32 %v739_v23, 0.0 }
  0xc6   : > { %v1148_v20 = vpack.c.bf16 %v778_v18, %v777_v16  ;;  %v1168_v21 = vpack.c.bf16 %v786_v19, %v785_v17 }
  0xc8   : > { %1188 = vst [vmem:[%s1376_s10 + $0x48] sm:$0xff] %v1148_v20  }
  0xc9   : > { %1192 = vst [vmem:[%s1376_s10 + $0x68] sm:$0xff] %v1168_v21   ;;  %v594_v24 = vpop.f32.mrf.mxu2  ;;  %v614_v25 = vpop.f32.mrf.mxu3 }
  0xca   : > { %v556_v26 = vpop.f32.mrf.mxu0  ;;  %v576_v27 = vpop.f32.mrf.mxu1  ;;  %v747_v37 = vadd.f32 %v1365_v29, %v594_v24  ;;  %v755_v38 = vadd.f32 %v1365_v29, %v614_v25 }
  0xcb   : > { %v732_v28 = vadd.f32 %v1365_v29, %v556_v26  ;;  %v740_v30 = vadd.f32 %v1365_v29, %v576_v27 }
  0xcc   : > { %v779_v45 = vmax.f32 %v747_v37, 0.0  ;;  %v787_v46 = vmax.f32 %v755_v38, 0.0 }
  0xcd   : > { %v764_v33 = vmax.f32 %v732_v28, 0.0  ;;  %v772_v34 = vmax.f32 %v740_v30, 0.0 }
  0xcf   : > { %v1113_v35 = vpack.c.bf16 %v764_v33, %v763_v31  ;;  %v1133_v36 = vpack.c.bf16 %v772_v34, %v771_v32 }
  0xd1   : > { %1181 = vst [vmem:[%s1376_s10 + $0x10] sm:$0xff] %v1113_v35   ;;  %v596_v39 = vpop.f32.mrf.mxu2  ;;  %v616_v40 = vpop.f32.mrf.mxu3 }
  0xd2   : > { %1185 = vst [vmem:[%s1376_s10 + $0x30] sm:$0xff] %v1133_v36   ;;  %v748_v41 = vadd.f32 %v1365_v29, %v596_v39  ;;  %v756_v42 = vadd.f32 %v1365_v29, %v616_v40  ;;  %v559_v43 = vpop.f32.mrf.mxu0  ;;  %v579_v44 = vpop.f32.mrf.mxu1 }
  0xd3   : > { %v733_v51 = vadd.f32 %v1365_v29, %v559_v43  ;;  %v741_v52 = vadd.f32 %v1365_v29, %v579_v44 }
  0xd4   : > { %v780_v47 = vmax.f32 %v748_v41, 0.0  ;;  %v788_v48 = vmax.f32 %v756_v42, 0.0 }
  0xd5   : > { %v765_v59 = vmax.f32 %v733_v51, 0.0  ;;  %v773_v60 = vmax.f32 %v741_v52, 0.0 }
  0xd6   : > { %v1153_v49 = vpack.c.bf16 %v780_v47, %v779_v45  ;;  %v1173_v50 = vpack.c.bf16 %v788_v48, %v787_v46 }
  0xd8   : > { %1189 = vst [vmem:[%s1376_s10 + $0x50] sm:$0xff] %v1153_v49  }
  0xd9   : > { %1193 = vst [vmem:[%s1376_s10 + $0x70] sm:$0xff] %v1173_v50   ;;  %v599_v53 = vpop.f32.mrf.mxu2  ;;  %v619_v54 = vpop.f32.mrf.mxu3 }
  0xda   : > { %v561_v55 = vpop.f32.mrf.mxu0  ;;  %v581_v56 = vpop.f32.mrf.mxu1  ;;  %v749_v1 = vadd.f32 %v1365_v29, %v599_v53  ;;  %v757_v2 = vadd.f32 %v1365_v29, %v619_v54 }
  0xdb   : > { %v734_v57 = vadd.f32 %v1365_v29, %v561_v55  ;;  %v742_v58 = vadd.f32 %v1365_v29, %v581_v56 }
  0xdc   : > { %v781_v7 = vmax.f32 %v749_v1, 0.0  ;;  %v789_v8 = vmax.f32 %v757_v2, 0.0 }
  0xdd   : > { %v766_v61 = vmax.f32 %v734_v57, 0.0  ;;  %v774_v62 = vmax.f32 %v742_v58, 0.0 }
  0xdf   : > { %v1118_v63 = vpack.c.bf16 %v766_v61, %v765_v59  ;;  %v1138_v0 = vpack.c.bf16 %v774_v62, %v773_v60 }
  0xe1   : > { %1182 = vst [vmem:[%s1376_s10 + $0x18] sm:$0xff] %v1118_v63   ;;  %v601_v3 = vpop.f32.mrf.mxu2  ;;  %v621_v4 = vpop.f32.mrf.mxu3 }
  0xe2   : > { %1186 = vst [vmem:[%s1376_s10 + $0x38] sm:$0xff] %v1138_v0   ;;  %v750_v5 = vadd.f32 %v1365_v29, %v601_v3  ;;  %v758_v6 = vadd.f32 %v1365_v29, %v621_v4 }
  0xe4   : > { %v782_v9 = vmax.f32 %v750_v5, 0.0  ;;  %v790_v10 = vmax.f32 %v758_v6, 0.0 }
  0xe6   : > { %v1158_v11 = vpack.c.bf16 %v782_v9, %v781_v7  ;;  %v1178_v12 = vpack.c.bf16 %v790_v10, %v789_v8 }
  0xe8   : > { %1190 = vst [vmem:[%s1376_s10 + $0x58] sm:$0xff] %v1158_v11  }
  0xe9   : > { %1194 = vst [vmem:[%s1376_s10 + $0x78] sm:$0xff] %v1178_v12  }
  0xea PF: > { %s13_s14 = sadd.s32 1, %s1258_s14   ;;  %s1435_s12 = smov %s1254_s13 }
  0xeb   : > { %p10_p5 = scmp.ge.s32.totalorder %s13_s14, 4   ;;  %s1436_s13 = smov %s1438_s15 }
  0xed   :  { %12 = sbr.rel (!%p10_p5) target bundleno = 2 (0x2), region = 76 }

// kernel: autonomous_driver_forward.5
= control target key start
LH: loop header
LB: loop body
LE: loop exit
PB: predicated region body
PF: predicated region fallthrough
CT: control target
= control target key end

     0   :  { %vm510_vm0 = vcmask 1043456   ;;  %vm494_vm1 = vcmask 719872   ;;  %s1460_s1 = inlined_call_operand.vmem [shape: bf16[600,128], index: 1, kind: input, shape index: {}]   ;;  %s1461_s0 = inlined_call_operand.vmem [shape: bf16[80,600], index: 0, kind: input, shape index: {}]   ;;  %s1462_s2 = inlined_call_operand.vmem [shape: f32[1,128], index: 2, kind: input, shape index: {}]   ;;  %s1463_s3 = inlined_call_operand.vmem [shape: bf16[80,128], index: 3, kind: output, shape index: {}]  }
   0x1   :  { %v1050_v0 = vld [vmem:[%s1460_s1 + $0x38] sm:$0xff]  ;;  %v1049_v1 = vld [vmem:[%s1460_s1 + $0x30] sm:$0xff]  ;;  %v1048_v4 = vld [vmem:[%s1460_s1 + $0x28] sm:$0xff] }
   0x2   :  { %514 = vmatpush.bf16.msra.mxu0 %v1050_v0  ;;  %1109 = vmatpush.bf16.msra.mxu1 %v1050_v0  ;;  %v1074_v2 = vld [vmem:[%s1460_s1 + $0xf8] sm:$0xff]  ;;  %v1073_v3 = vld [vmem:[%s1460_s1 + $0xf0] sm:$0xff]  ;;  %v1072_v5 = vld [vmem:[%s1460_s1 + $0xe8] sm:$0xff] }
   0x3   :  { %1110 = vmatpush.bf16.msra.mxu2 %v1050_v0  ;;  %616 = vmatpush.bf16.msra.mxu3 %v1074_v2  ;;  %v1047_v6 = vld [vmem:[%s1460_s1 + $0x20] sm:$0xff]  ;;  %v1046_v8 = vld [vmem:[%s1460_s1 + $0x18] sm:$0xff]  ;;  %v1045_v10 = vld [vmem:[%s1460_s1 + $0x10] sm:$0xff] }
   0x4   :  { %v1071_v7 = vld [vmem:[%s1460_s1 + $0xe0] sm:$0xff]  ;;  %v1070_v9 = vld [vmem:[%s1460_s1 + $0xd8] sm:$0xff]  ;;  %v143_v11 = vld [vmem:[%s1460_s1 + $0x128] sm:$0xf] }
   0x5   :  { %v1069_v12 = vld [vmem:[%s1460_s1 + $0xd0] sm:$0xff]  ;;  %v418_v13 = vunpack.c.l.b16 %v143_v11  ;;  %v1044_v14 = vld [vmem:[%s1460_s1 + $0x8] sm:$0xff]  ;;  %v767_v16 = vld [vmem:[%s1461_s0] sm:$0xf] }
   0x6   :  { %515 = vmatpush.bf16.msra.mxu0 %v1049_v1  ;;  %1111 = vmatpush.bf16.msra.mxu1 %v1049_v1  ;;  %v1068_v15 = vld [vmem:[%s1460_s1 + $0xc8] sm:$0xff]  ;;  %v1020_v17 = vld [vmem:[%s1461_s0 + $0x10] sm:$0xf0]  ;;  %v1043_v19 = vld [vmem:[%s1460_s1] sm:$0xff] }
   0x7   :  { %1112 = vmatpush.bf16.msra.mxu2 %v1049_v1  ;;  %617 = vmatpush.bf16.msra.mxu3 %v1073_v3  ;;  %v456_v18 = vpack.c.b16 %v418_v13, %v418_v13  ;;  %v807_v20 = vld [vmem:[%s1461_s0 + $0x50] sm:$0xf]  ;;  %v1030_v21 = vld [vmem:[%s1461_s0 + $0x60] sm:$0xf0]  ;;  %v1058_v22 = vld [vmem:[%s1460_s1 + $0x78] sm:$0xff]  ;;  %v768_v26 = vor.u32 %v1020_v17, %v767_v16 }
   0x8   :  { %v847_v23 = vld [vmem:[%s1461_s0 + $0xa0] sm:$0xf]  ;;  %v1040_v24 = vld [vmem:[%s1461_s0 + $0xb0] sm:$0xf0]  ;;  %v1066_v25 = vld [vmem:[%s1460_s1 + $0xb8] sm:$0xff]  ;;  %v808_v27 = vor.u32 %v1030_v21, %v807_v20 }
   0x9   :  { %v512_v28 = vsel %vm510_vm0, %v456_v18, 0  ;;  %v848_v29 = vor.u32 %v1040_v24, %v847_v23  ;;  %v1067_v30 = vld [vmem:[%s1460_s1 + $0xc0] sm:$0xff]  ;;  %v1019_v31 = vld [vmem:[%s1461_s0 + $0xc] sm:$0xf]  ;;  %v1057_v33 = vld [vmem:[%s1460_s1 + $0x70] sm:$0xff] }
   0xa   :  { %516 = vmatpush.bf16.msra.mxu0 %v1048_v4  ;;  %1113 = vmatpush.bf16.msra.mxu1 %v1048_v4  ;;  %v777_v32 = vld [vmem:[%s1461_s0 + $0x1c] sm:$0xf0]  ;;  %v1065_v34 = vld [vmem:[%s1460_s1 + $0xb0] sm:$0xff]  ;;  %v1056_v37 = vld [vmem:[%s1460_s1 + $0x68] sm:$0xff] }
   0xb   :  { %1114 = vmatpush.bf16.msra.mxu2 %v1048_v4  ;;  %618 = vmatpush.bf16.msra.mxu3 %v1072_v5  ;;  %v1079_v35 = vld [vmem:[%s1460_s1 + $0x120] sm:$0xff]  ;;  %v780_v36 = vor.u32 %v1019_v31, %v777_v32  ;;  %v1064_v38 = vld [vmem:[%s1460_s1 + $0xa8] sm:$0xff]  ;;  %v1078_v39 = vld [vmem:[%s1460_s1 + $0x118] sm:$0xff] }
   0xc   :  { %v1055_v40 = vld [vmem:[%s1460_s1 + $0x60] sm:$0xff]  ;;  %v1077_v42 = vld [vmem:[%s1460_s1 + $0x110] sm:$0xff]  ;;  %v787_v43 = vld [vmem:[%s1461_s0 + $0x28] sm:$0xf] }
   0xd   :  { %v1063_v41 = vld [vmem:[%s1460_s1 + $0xa0] sm:$0xff]  ;;  %v1025_v44 = vld [vmem:[%s1461_s0 + $0x38] sm:$0xf0]  ;;  %v827_v45 = vld [vmem:[%s1461_s0 + $0x78] sm:$0xf] }
   0xe   :  { %517 = vmatpush.bf16.msra.mxu0 %v1047_v6  ;;  %1115 = vmatpush.bf16.msra.mxu1 %v1047_v6  ;;  %v1035_v46 = vld [vmem:[%s1461_s0 + $0x88] sm:$0xf0]  ;;  %v1054_v47 = vld [vmem:[%s1460_s1 + $0x58] sm:$0xff]  ;;  %v788_v50 = vor.u32 %v1025_v44, %v787_v43  ;;  %v1024_v52 = vld [vmem:[%s1461_s0 + $0x34] sm:$0xf] }
   0xf   :  { %1116 = vmatpush.bf16.msra.mxu2 %v1047_v6  ;;  %619 = vmatpush.bf16.msra.mxu3 %v1071_v7  ;;  %v1062_v48 = vld [vmem:[%s1460_s1 + $0x98] sm:$0xff]  ;;  %v1076_v49 = vld [vmem:[%s1460_s1 + $0x108] sm:$0xff]  ;;  %v828_v51 = vor.u32 %v1035_v46, %v827_v45  ;;  %v1053_v54 = vld [vmem:[%s1460_s1 + $0x50] sm:$0xff] }
  0x10   :  { %v797_v53 = vld [vmem:[%s1461_s0 + $0x44] sm:$0xf0]  ;;  %v1061_v55 = vld [vmem:[%s1460_s1 + $0x90] sm:$0xff]  ;;  %v1075_v56 = vld [vmem:[%s1460_s1 + $0x100] sm:$0xff] }
  0x11   :  { %v800_v57 = vor.u32 %v1024_v52, %v797_v53  ;;  %v1052_v58 = vld [vmem:[%s1460_s1 + $0x48] sm:$0xff]  ;;  %v1051_v60 = vld [vmem:[%s1460_s1 + $0x40] sm:$0xff]  ;;  %v1021_v63 = vld [vmem:[%s1461_s0 + $0x18] sm:$0xf0] }
  0x12   :  { %518 = vmatpush.bf16.msra.mxu0 %v1046_v8  ;;  %1117 = vmatpush.bf16.msra.mxu1 %v1046_v8  ;;  %v1060_v59 = vld [vmem:[%s1460_s1 + $0x88] sm:$0xff]  ;;  %v1059_v61 = vld [vmem:[%s1460_s1 + $0x80] sm:$0xff]  ;;  %v769_v1 = vld [vmem:[%s1461_s0 + $0x14] sm:$0xf0] }
  0x13   :  { %1118 = vmatpush.bf16.msra.mxu2 %v1046_v8  ;;  %620 = vmatpush.bf16.msra.mxu3 %v1070_v9  ;;  %v775_v62 = vld [vmem:[%s1461_s0 + $0x8] sm:$0xf]  ;;  %v1018_v0 = vld [vmem:[%s1461_s0 + $0x4] sm:$0xf]  ;;  %v783_v2 = vld [vmem:[%s1461_s0 + $0x10] sm:$0xf] }
  0x14   :  { %v1022_v3 = vld [vmem:[%s1461_s0 + $0x20] sm:$0xf0]  ;;  %v776_v4 = vor.u32 %v1021_v63, %v775_v62  ;;  %v772_v5 = vor.u32 %v1018_v0, %v769_v1  ;;  %v1029_v7 = vld [vmem:[%s1461_s0 + $0x5c] sm:$0xf]  ;;  %v817_v8 = vld [vmem:[%s1461_s0 + $0x6c] sm:$0xf0] }
  0x15   :  { %v784_v6 = vor.u32 %v1022_v3, %v783_v2  ;;  %v820_v9 = vor.u32 %v1029_v7, %v817_v8  ;;  %v1026_v11 = vld [vmem:[%s1461_s0 + $0x40] sm:$0xf0]  ;;  %v789_v13 = vld [vmem:[%s1461_s0 + $0x3c] sm:$0xf0]  ;;  %v837_v20 = vld [vmem:[%s1461_s0 + $0x94] sm:$0xf0] }
  0x16   :  { %519 = vmatpush.bf16.msra.mxu0 %v1045_v10  ;;  %1119 = vmatpush.bf16.msra.mxu1 %v1045_v10  ;;  %v1031_v23 = vld [vmem:[%s1461_s0 + $0x68] sm:$0xf0]  ;;  %v1028_v24 = vld [vmem:[%s1461_s0 + $0x54] sm:$0xf]  ;;  %v857_v32 = vld [vmem:[%s1461_s0 + $0xbc] sm:$0xf0] }
  0x17   :  { %1120 = vmatpush.bf16.msra.mxu2 %v1045_v10  ;;  %621 = vmatpush.bf16.msra.mxu3 %v1069_v12  ;;  %v795_v10 = vld [vmem:[%s1461_s0 + $0x30] sm:$0xf]  ;;  %v1023_v12 = vld [vmem:[%s1461_s0 + $0x2c] sm:$0xf]  ;;  %v855_v43 = vld [vmem:[%s1461_s0 + $0xa8] sm:$0xf] }
  0x18   :  { %v796_v16 = vor.u32 %v1026_v11, %v795_v10  ;;  %v792_v17 = vor.u32 %v1023_v12, %v789_v13  ;;  %v1039_v31 = vld [vmem:[%s1461_s0 + $0xac] sm:$0xf]  ;;  %v1041_v44 = vld [vmem:[%s1461_s0 + $0xb8] sm:$0xf0]  ;;  %v1038_v45 = vld [vmem:[%s1461_s0 + $0xa4] sm:$0xf] }
  0x19   :  { %v849_v46 = vld [vmem:[%s1461_s0 + $0xb4] sm:$0xf0]  ;;  %v1428_v12 = vld [vmem:[%s1462_s2] ss:$0 sm:$0xff] }
  0x1a   :  { %520 = vmatpush.bf16.msra.mxu0 %v1044_v14  ;;  %1121 = vmatpush.bf16.msra.mxu1 %v1044_v14 }
  0x1b   :  { %1122 = vmatpush.bf16.msra.mxu2 %v1044_v14  ;;  %622 = vmatpush.bf16.msra.mxu3 %v1068_v15  ;;  %v803_v14 = vld [vmem:[%s1461_s0 + $0x38] sm:$0xf]  ;;  %v1027_v15 = vld [vmem:[%s1461_s0 + $0x48] sm:$0xf0] }
  0x1c   :  { %v804_v18 = vor.u32 %v1027_v15, %v803_v14 }
  0x1e   :  { %521 = vmatpush.bf16.msra.mxu0 %v1043_v19  ;;  %1123 = vmatpush.bf16.msra.mxu1 %v1043_v19 }
  0x1f   :  { %1124 = vmatpush.bf16.msra.mxu2 %v1043_v19  ;;  %623 = vmatpush.bf16.msra.mxu3 %v1067_v30  ;;  %v1034_v19 = vld [vmem:[%s1461_s0 + $0x84] sm:$0xf] }
  0x20   :  { %v840_v21 = vor.u32 %v1034_v19, %v837_v20 }
  0x21   :  { %522 = vmatmul.bf16.vlgmr.msra.gmra.mxu0 %v768_v26  ;;  %532 = vmatmul.bf16.vlgmr.msra.gmra.mxu1 %v808_v27  ;;  %v823_v26 = vld [vmem:[%s1461_s0 + $0x60] sm:$0xf]  ;;  %v1032_v27 = vld [vmem:[%s1461_s0 + $0x70] sm:$0xf0] }
  0x22   :  { %548 = vmatpush.bf16.msrb.mxu1 %v1058_v22  ;;  %652 = vmatpush.bf16.msrb.mxu0 %v512_v28  ;;  %v815_v22 = vld [vmem:[%s1461_s0 + $0x58] sm:$0xf]  ;;  %v824_v30 = vor.u32 %v1032_v27, %v823_v26 }
  0x23   :  { %582 = vmatpush.bf16.msrb.mxu2 %v1066_v25  ;;  %624 = vmatmul.bf16.vlgmr.msra.gmra.mxu3 %v780_v36  ;;  %v809_v25 = vld [vmem:[%s1461_s0 + $0x64] sm:$0xf0]  ;;  %v816_v28 = vor.u32 %v1031_v23, %v815_v22  ;;  %v1033_v36 = vld [vmem:[%s1461_s0 + $0x7c] sm:$0xf] }
  0x24   :  { %542 = vmatmul.bf16.vlgmr.msra.gmra.mxu2 %v848_v29  ;;  %v812_v29 = vor.u32 %v1028_v24, %v809_v25 }
  0x26   :  { %549 = vmatpush.bf16.msrb.mxu1 %v1057_v33  ;;  %653 = vmatpush.bf16.msrb.mxu0 %v1079_v35  ;;  %v860_v33 = vor.u32 %v1039_v31, %v857_v32  ;;  %v1036_v35 = vld [vmem:[%s1461_s0 + $0x90] sm:$0xf0] }
  0x27   :  { %583 = vmatpush.bf16.msrb.mxu2 %v1065_v34  ;;  %v835_v34 = vld [vmem:[%s1461_s0 + $0x80] sm:$0xf] }
  0x2a   :  { %550 = vmatpush.bf16.msrb.mxu1 %v1056_v37  ;;  %654 = vmatpush.bf16.msrb.mxu0 %v1078_v39  ;;  %v829_v37 = vld [vmem:[%s1461_s0 + $0x8c] sm:$0xf0]  ;;  %v1037_v39 = vld [vmem:[%s1461_s0 + $0x98] sm:$0xf0] }
  0x2b   :  { %584 = vmatpush.bf16.msrb.mxu2 %v1064_v38  ;;  %v843_v38 = vld [vmem:[%s1461_s0 + $0x88] sm:$0xf] }
  0x2e   :  { %551 = vmatpush.bf16.msrb.mxu1 %v1055_v40  ;;  %655 = vmatpush.bf16.msrb.mxu0 %v1077_v42  ;;  %v836_v40 = vor.u32 %v1036_v35, %v835_v34  ;;  %v844_v42 = vor.u32 %v1037_v39, %v843_v38 }
  0x2f   :  { %585 = vmatpush.bf16.msrb.mxu2 %v1063_v41  ;;  %v832_v41 = vor.u32 %v1033_v36, %v829_v37 }
  0x31   :  { %527 = vmatmul.bf16.gmra.mxu0 %v788_v50  ;;  %537 = vmatmul.bf16.gmra.mxu1 %v828_v51  ;;  %v852_v50 = vor.u32 %v1038_v45, %v849_v46 }
  0x32   :  { %552 = vmatpush.bf16.msrb.mxu1 %v1054_v47  ;;  %656 = vmatpush.bf16.msrb.mxu0 %v1076_v49  ;;  %v863_v47 = vld [vmem:[%s1461_s0 + $0xb0] sm:$0xf]  ;;  %v856_v49 = vor.u32 %v1041_v44, %v855_v43 }
  0x33   :  { %586 = vmatpush.bf16.msrb.mxu2 %v1062_v48  ;;  %629 = vmatmul.bf16.gmra.mxu3 %v800_v57  ;;  %v1042_v48 = vld [vmem:[%s1461_s0 + $0xc0] sm:$0xf0] }
  0x34   :  { %v864_v51 = vor.u32 %v1042_v48, %v863_v47 }
  0x36   :  { %553 = vmatpush.bf16.msrb.mxu1 %v1053_v54  ;;  %657 = vmatpush.bf16.msrb.mxu0 %v1075_v56 }
  0x37   :  { %587 = vmatpush.bf16.msrb.mxu2 %v1061_v55 }
  0x3a   :  { %554 = vmatpush.bf16.msrb.mxu1 %v1052_v58 }
  0x3b   :  { %588 = vmatpush.bf16.msrb.mxu2 %v1060_v59 }
  0x3e   :  { %555 = vmatpush.bf16.msrb.mxu1 %v1051_v60 }
  0x3f   :  { %589 = vmatpush.bf16.msrb.mxu2 %v1059_v61 }
  0x41   :  { %556 = vmatmul.bf16.vlgmr.msrb.gmra.mxu1 %v772_v5  ;;  %1013 = vmatmul.msk.bf16.vlgmr.msrb.gmra.mxu0 %vm494_vm1, %v784_v6 }
  0x42   :  { %590 = vmatmul.bf16.vlgmr.msrb.gmra.mxu2 %v776_v4 }
  0x43   :  { %634 = vmatmul.bf16.gmra.mxu3 %v820_v9 }
  0x51   :  { %561 = vmatmul.bf16.gmra.mxu1 %v792_v17  ;;  %1014 = vmatmul.msk.bf16.gmra.mxu0 %vm494_vm1, %v804_v18 }
  0x52   :  { %595 = vmatmul.bf16.gmra.mxu2 %v796_v16 }
  0x53   :  { %639 = vmatmul.bf16.gmra.mxu3 %v840_v21 }
  0x61   :  { %566 = vmatmul.bf16.gmra.mxu1 %v812_v29  ;;  %1015 = vmatmul.msk.bf16.gmra.mxu0 %vm494_vm1, %v824_v30 }
  0x62   :  { %600 = vmatmul.bf16.gmra.mxu2 %v816_v28 }
  0x63   :  { %644 = vmatmul.bf16.gmra.mxu3 %v860_v33 }
  0x71   :  { %571 = vmatmul.bf16.gmra.mxu1 %v832_v41  ;;  %1016 = vmatmul.msk.bf16.gmra.mxu0 %vm494_vm1, %v844_v42 }
  0x72   :  { %605 = vmatmul.bf16.gmra.mxu2 %v836_v40 }
  0x81   :  { %576 = vmatmul.bf16.gmra.mxu1 %v852_v50  ;;  %1017 = vmatmul.msk.bf16.gmra.mxu0 %vm494_vm1, %v864_v51 }
  0x82   :  { %610 = vmatmul.bf16.gmra.mxu2 %v856_v49 }
  0x9e   :  { %v523_v52 = vpop.f32.mrf.mxu0  ;;  %v533_v53 = vpop.f32.mrf.mxu1 }
  0xa6   :  { %v525_v54 = vpop.f32.mrf.mxu0  ;;  %v1415_v55 = vpop.f32.mrf.mxu1 }
  0xa7   :  { %v1419_v58 = vpop.f32.mrf.mxu2  ;;  %v625_v59 = vpop.f32.mrf.mxu3 }
  0xae   :  { %v528_v56 = vpop.f32.mrf.mxu0  ;;  %v1417_v57 = vpop.f32.mrf.mxu1 }
  0xaf   :  { %v1423_v62 = vpop.f32.mrf.mxu2  ;;  %v627_v63 = vpop.f32.mrf.mxu3 }
  0xb6   :  { %v530_v60 = vpop.f32.mrf.mxu0  ;;  %v1421_v61 = vpop.f32.mrf.mxu1 }
  0xb7   :  { %v630_v5 = vpop.f32.mrf.mxu3 }
  0xbe   :  { %v557_v0 = vpop.f32.mrf.mxu1  ;;  %v659_v1 = vpop.f32.mrf.mxu0 }
  0xbf   :  { %v558_v2 = vadd.f32 %v557_v0, %v523_v52  ;;  %v632_v20 = vpop.f32.mrf.mxu3 }
  0xc5   :  { %v591_v3 = vpop.f32.mrf.mxu2 }
  0xc6   :  { %v592_v4 = vadd.f32 %v591_v3, %v558_v2  ;;  %v559_v6 = vpop.f32.mrf.mxu1  ;;  %v661_v7 = vpop.f32.mrf.mxu0 }
  0xc7   :  { %v560_v9 = vadd.f32 %v559_v6, %v525_v54  ;;  %v635_v32 = vpop.f32.mrf.mxu3 }
  0xc8   :  { %v626_v8 = vadd.f32 %v625_v59, %v592_v4 }
  0xca   :  { %v660_v11 = vadd.f32 %v659_v1, %v626_v8 }
  0xcc   :  { %v721_v17 = vadd.f32 %v1428_v12, %v660_v11 }
  0xcd   :  { %v593_v10 = vpop.f32.mrf.mxu2 }
  0xce   :  { %v594_v13 = vadd.f32 %v593_v10, %v560_v9  ;;  %v562_v15 = vpop.f32.mrf.mxu1  ;;  %v664_v16 = vpop.f32.mrf.mxu0  ;;  %v731_v23 = vmax.f32 %v721_v17, 0.0 }
  0xcf   :  { %v563_v19 = vadd.f32 %v562_v15, %v528_v56  ;;  %v637_v46 = vpop.f32.mrf.mxu3 }
  0xd0   :  { %v628_v14 = vadd.f32 %v627_v63, %v594_v13 }
  0xd2   :  { %v662_v18 = vadd.f32 %v661_v7, %v628_v14 }
  0xd4   :  { %v722_v21 = vadd.f32 %v1428_v12, %v662_v18 }
  0xd5   :  { %v596_v22 = vpop.f32.mrf.mxu2 }
  0xd6   :  { %v732_v24 = vmax.f32 %v722_v21, 0.0  ;;  %v597_v25 = vadd.f32 %v596_v22, %v563_v19  ;;  %v564_v27 = vpop.f32.mrf.mxu1  ;;  %v666_v28 = vpop.f32.mrf.mxu0 }
  0xd7   :  { %v565_v30 = vadd.f32 %v564_v27, %v530_v60  ;;  %v640_v59 = vpop.f32.mrf.mxu3 }
  0xd8   :  { %v1083_v26 = vpack.c.bf16 %v732_v24, %v731_v23  ;;  %v631_v29 = vadd.f32 %v630_v5, %v597_v25 }
  0xda   :  { %1084 = vst [vmem:[%s1463_s3] sm:$0xff] %v1083_v26   ;;  %v665_v33 = vadd.f32 %v664_v16, %v631_v29 }
  0xdc   :  { %v723_v38 = vadd.f32 %v1428_v12, %v665_v33 }
  0xdd   :  { %v598_v31 = vpop.f32.mrf.mxu2 }
  0xde   :  { %v599_v34 = vadd.f32 %v598_v31, %v565_v30  ;;  %v567_v36 = vpop.f32.mrf.mxu1  ;;  %v669_v37 = vpop.f32.mrf.mxu0  ;;  %v733_v43 = vmax.f32 %v723_v38, 0.0 }
  0xdf   :  { %v568_v40 = vadd.f32 %v567_v36, %v533_v53  ;;  %v642_v11 = vpop.f32.mrf.mxu3 }
  0xe0   :  { %v633_v35 = vadd.f32 %v632_v20, %v599_v34 }
  0xe2   :  { %v667_v39 = vadd.f32 %v666_v28, %v633_v35 }
  0xe4   :  { %v724_v41 = vadd.f32 %v1428_v12, %v667_v39 }
  0xe5   :  { %v601_v42 = vpop.f32.mrf.mxu2 }
  0xe6   :  { %v734_v44 = vmax.f32 %v724_v41, 0.0  ;;  %v602_v45 = vadd.f32 %v601_v42, %v568_v40  ;;  %v569_v48 = vpop.f32.mrf.mxu1  ;;  %v671_v49 = vpop.f32.mrf.mxu0 }
  0xe7   :  { %v570_v51 = vadd.f32 %v569_v48, %v1415_v55  ;;  %v645_v22 = vpop.f32.mrf.mxu3 }
  0xe8   :  { %v1088_v47 = vpack.c.bf16 %v734_v44, %v733_v43  ;;  %v636_v50 = vadd.f32 %v635_v32, %v602_v45 }
  0xea   :  { %1105 = vst [vmem:[%s1463_s3 + $0x8] sm:$0xff] %v1088_v47   ;;  %v670_v54 = vadd.f32 %v669_v37, %v636_v50 }
  0xec   :  { %v725_v63 = vadd.f32 %v1428_v12, %v670_v54 }
  0xed   :  { %v603_v52 = vpop.f32.mrf.mxu2 }
  0xee   :  { %v604_v53 = vadd.f32 %v603_v52, %v570_v51  ;;  %v572_v60 = vpop.f32.mrf.mxu1  ;;  %v674_v2 = vpop.f32.mrf.mxu0  ;;  %v735_v5 = vmax.f32 %v725_v63, 0.0 }
  0xef   :  { %v573_v1 = vadd.f32 %v572_v60, %v1417_v57  ;;  %v647_v33 = vpop.f32.mrf.mxu3 }
  0xf0   :  { %v638_v56 = vadd.f32 %v637_v46, %v604_v53 }
  0xf2   :  { %v672_v0 = vadd.f32 %v671_v49, %v638_v56 }
  0xf4   :  { %v726_v3 = vadd.f32 %v1428_v12, %v672_v0 }
  0xf5   :  { %v606_v4 = vpop.f32.mrf.mxu2 }
  0xf6   :  { %v736_v6 = vmax.f32 %v726_v3, 0.0  ;;  %v607_v7 = vadd.f32 %v606_v4, %v573_v1  ;;  %v574_v55 = vpop.f32.mrf.mxu1  ;;  %v676_v13 = vpop.f32.mrf.mxu0 }
  0xf7   :  { %v575_v10 = vadd.f32 %v574_v55, %v1421_v61 }
  0xf8   :  { %v1093_v8 = vpack.c.bf16 %v736_v6, %v735_v5  ;;  %v641_v9 = vadd.f32 %v640_v59, %v607_v7 }
  0xfa   :  { %1106 = vst [vmem:[%s1463_s3 + $0x10] sm:$0xff] %v1093_v8   ;;  %v675_v57 = vadd.f32 %v674_v2, %v641_v9 }
  0xfc   :  { %v727_v18 = vadd.f32 %v1428_v12, %v675_v57 }
  0xfd   :  { %v608_v14 = vpop.f32.mrf.mxu2 }
  0xfe   :  { %v609_v15 = vadd.f32 %v608_v14, %v575_v10  ;;  %v577_v17 = vpop.f32.mrf.mxu1  ;;  %v737_v24 = vmax.f32 %v727_v18, 0.0  ;;  %v679_v61 = vpop.f32.mrf.mxu0 }
  0xff   :  { %v578_v20 = vadd.f32 %v577_v17, %v1419_v58 }
 0x100   :  { %v643_v16 = vadd.f32 %v642_v11, %v609_v15 }
 0x102   :  { %v677_v19 = vadd.f32 %v676_v13, %v643_v16 }
 0x104   :  { %v728_v21 = vadd.f32 %v1428_v12, %v677_v19 }
 0x105   :  { %v611_v23 = vpop.f32.mrf.mxu2 }
 0x106   :  { %v738_v25 = vmax.f32 %v728_v21, 0.0  ;;  %v612_v26 = vadd.f32 %v611_v23, %v578_v20  ;;  %v579_v28 = vpop.f32.mrf.mxu1  ;;  %v681_v35 = vpop.f32.mrf.mxu0 }
 0x107   :  { %v580_v30 = vadd.f32 %v579_v28, %v1423_v62 }
 0x108   :  { %v1098_v27 = vpack.c.bf16 %v738_v25, %v737_v24  ;;  %v646_v29 = vadd.f32 %v645_v22, %v612_v26 }
 0x10a   :  { %1107 = vst [vmem:[%s1463_s3 + $0x18] sm:$0xff] %v1098_v27   ;;  %v680_v32 = vadd.f32 %v679_v61, %v646_v29 }
 0x10c   :  { %v729_v36 = vadd.f32 %v1428_v12, %v680_v32 }
 0x10d   :  { %v613_v31 = vpop.f32.mrf.mxu2 }
 0x10e   :  { %v614_v58 = vadd.f32 %v613_v31, %v580_v30  ;;  %v739_v39 = vmax.f32 %v729_v36, 0.0 }
 0x110   :  { %v648_v34 = vadd.f32 %v647_v33, %v614_v58 }
 0x112   :  { %v682_v37 = vadd.f32 %v681_v35, %v648_v34 }
 0x114   :  { %v730_v38 = vadd.f32 %v1428_v12, %v682_v37 }
 0x116   :  { %v740_v40 = vmax.f32 %v730_v38, 0.0 }
 0x118   :  { %v1103_v41 = vpack.c.bf16 %v740_v40, %v739_v39 }
 0x11a   :  { %1108 = vst [vmem:[%s1463_s3 + $0x20] sm:$0xff] %v1103_v41  }

// kernel: autonomous_driver_forward.6
= control target key start
LH: loop header
LB: loop body
LE: loop exit
PB: predicated region body
PF: predicated region fallthrough
CT: control target
= control target key end

     0   :  { %vm209_vm0 = vcmask 261120   ;;  %s575_s1 = inlined_call_operand.vmem [shape: bf16[288,128], index: 1, kind: input, shape index: {}]   ;;  %s576_s0 = inlined_call_operand.vmem [shape: bf16[32,288], index: 0, kind: input, shape index: {}]   ;;  %s577_s2 = inlined_call_operand.vmem [shape: f32[1,128], index: 2, kind: input, shape index: {}]   ;;  %s578_s3 = inlined_call_operand.vmem [shape: bf16[32,128], index: 3, kind: output, shape index: {}]  }
   0x1   :  { %v423_v0 = vld [vmem:[%s575_s1 + $0x38] sm:$0xff]  ;;  %v422_v2 = vld [vmem:[%s575_s1 + $0x30] sm:$0xff]  ;;  %v433_v4 = vld [vmem:[%s575_s1 + $0x88] sm:$0xff] }
   0x2   :  { %v431_v1 = vld [vmem:[%s575_s1 + $0x78] sm:$0xff]  ;;  %216 = vmatpush.bf16.msra.mxu0 %v423_v0  ;;  %v430_v3 = vld [vmem:[%s575_s1 + $0x70] sm:$0xff]  ;;  %445 = vmatpush.bf16.msra.mxu3 %v423_v0  ;;  %v432_v5 = vld [vmem:[%s575_s1 + $0x80] sm:$0xff] }
   0x3   :  { %235 = vmatpush.bf16.msra.mxu1 %v431_v1  ;;  %260 = vmatpush.bf16.msra.mxu2 %v433_v4  ;;  %v322_v6 = vld [vmem:[%s576_s0 + $0x8] sm:$0xf]  ;;  %v412_v7 = vld [vmem:[%s576_s0 + $0x10] sm:$0xf0]  ;;  %v420_v11 = vld [vmem:[%s575_s1 + $0x20] sm:$0xff] }
   0x4   :  { %v421_v8 = vld [vmem:[%s575_s1 + $0x28] sm:$0xff]  ;;  %v323_v10 = vor.u32 %v412_v7, %v322_v6  ;;  %v428_v12 = vld [vmem:[%s575_s1 + $0x60] sm:$0xff]  ;;  %v419_v13 = vld [vmem:[%s575_s1 + $0x18] sm:$0xff] }
   0x5   :  { %v429_v9 = vld [vmem:[%s575_s1 + $0x68] sm:$0xff]  ;;  %v427_v14 = vld [vmem:[%s575_s1 + $0x58] sm:$0xff]  ;;  %v418_v15 = vld [vmem:[%s575_s1 + $0x10] sm:$0xff] }
   0x6   :  { %217 = vmatpush.bf16.msra.mxu0 %v422_v2  ;;  %446 = vmatpush.bf16.msra.mxu3 %v422_v2  ;;  %v426_v16 = vld [vmem:[%s575_s1 + $0x50] sm:$0xff]  ;;  %v334_v17 = vld [vmem:[%s576_s0 + $0x20] sm:$0xf]  ;;  %v415_v18 = vld [vmem:[%s576_s0 + $0x28] sm:$0xf0] }
   0x7   :  { %236 = vmatpush.bf16.msra.mxu1 %v430_v3  ;;  %261 = vmatpush.bf16.msra.mxu2 %v432_v5  ;;  %v417_v19 = vld [vmem:[%s575_s1 + $0x8] sm:$0xff]  ;;  %v335_v21 = vor.u32 %v415_v18, %v334_v17  ;;  %v416_v22 = vld [vmem:[%s575_s1] sm:$0xff]  ;;  %v316_v27 = vld [vmem:[%s576_s0 + $0xc] sm:$0xf0] }
   0x8   :  { %v425_v20 = vld [vmem:[%s575_s1 + $0x48] sm:$0xff]  ;;  %v424_v23 = vld [vmem:[%s575_s1 + $0x40] sm:$0xff]  ;;  %v326_v28 = vld [vmem:[%s576_s0 + $0x18] sm:$0xf] }
   0x9   :  { %v314_v24 = vld [vmem:[%s576_s0] sm:$0xf]  ;;  %v411_v25 = vld [vmem:[%s576_s0 + $0x8] sm:$0xf0]  ;;  %v410_v26 = vld [vmem:[%s576_s0 + $0x4] sm:$0xf] }
   0xa   :  { %218 = vmatpush.bf16.msra.mxu0 %v421_v8  ;;  %447 = vmatpush.bf16.msra.mxu3 %v421_v8  ;;  %v414_v29 = vld [vmem:[%s576_s0 + $0x20] sm:$0xf0]  ;;  %v315_v30 = vor.u32 %v411_v25, %v314_v24  ;;  %v319_v31 = vor.u32 %v410_v26, %v316_v27  ;;  %v413_v33 = vld [vmem:[%s576_s0 + $0x1c] sm:$0xf]  ;;  %v328_v34 = vld [vmem:[%s576_s0 + $0x24] sm:$0xf0] }
   0xb   :  { %237 = vmatpush.bf16.msra.mxu1 %v429_v9  ;;  %408 = vmatmul.msk.bf16.vlgmr.msra.gmra.mxu2 %vm209_vm0, %v323_v10  ;;  %v327_v32 = vor.u32 %v414_v29, %v326_v28  ;;  %v331_v35 = vor.u32 %v413_v33, %v328_v34  ;;  %v453_v42 = vld [vmem:[%s577_s2] ss:$0 sm:$0xff] }
   0xe   :  { %219 = vmatpush.bf16.msra.mxu0 %v420_v11  ;;  %448 = vmatpush.bf16.msra.mxu3 %v420_v11 }
   0xf   :  { %238 = vmatpush.bf16.msra.mxu1 %v428_v12 }
  0x12   :  { %220 = vmatpush.bf16.msra.mxu0 %v419_v13  ;;  %449 = vmatpush.bf16.msra.mxu3 %v419_v13 }
  0x13   :  { %239 = vmatpush.bf16.msra.mxu1 %v427_v14 }
  0x16   :  { %221 = vmatpush.bf16.msra.mxu0 %v418_v15  ;;  %450 = vmatpush.bf16.msra.mxu3 %v418_v15 }
  0x17   :  { %240 = vmatpush.bf16.msra.mxu1 %v426_v16 }
  0x1a   :  { %222 = vmatpush.bf16.msra.mxu0 %v417_v19  ;;  %451 = vmatpush.bf16.msra.mxu3 %v417_v19 }
  0x1b   :  { %241 = vmatpush.bf16.msra.mxu1 %v425_v20  ;;  %409 = vmatmul.msk.bf16.gmra.mxu2 %vm209_vm0, %v335_v21 }
  0x1e   :  { %223 = vmatpush.bf16.msra.mxu0 %v416_v22  ;;  %452 = vmatpush.bf16.msra.mxu3 %v416_v22 }
  0x1f   :  { %242 = vmatpush.bf16.msra.mxu1 %v424_v23 }
  0x21   :  { %224 = vmatmul.bf16.vlgmr.msra.gmra.mxu0 %v315_v30  ;;  %229 = vmatmul.bf16.vlgmr.msra.gmra.mxu3 %v327_v32 }
  0x22   :  { %243 = vmatmul.bf16.vlgmr.msra.gmra.mxu1 %v319_v31 }
  0x32   :  { %248 = vmatmul.bf16.gmra.mxu1 %v331_v35 }
  0x8e   :  { %v263_v36 = vpop.f32.mrf.mxu2 }
  0x96   :  { %v265_v40 = vpop.f32.mrf.mxu2 }
  0x9e   :  { %v225_v37 = vpop.f32.mrf.mxu0  ;;  %v268_v52 = vpop.f32.mrf.mxu2 }
  0x9f   :  { %v244_v38 = vpop.f32.mrf.mxu1 }
  0xa0   :  { %v245_v39 = vadd.f32 %v244_v38, %v225_v37 }
  0xa2   :  { %v264_v41 = vadd.f32 %v263_v36, %v245_v39 }
  0xa4   :  { %v292_v46 = vadd.f32 %v453_v42, %v264_v41  ;;  %v230_v49 = vpop.f32.mrf.mxu3 }
  0xa6   :  { %v227_v43 = vpop.f32.mrf.mxu0  ;;  %v296_v50 = vmax.f32 %v292_v46, 0.0  ;;  %v270_v60 = vpop.f32.mrf.mxu2 }
  0xa7   :  { %v246_v44 = vpop.f32.mrf.mxu1 }
  0xa8   :  { %v247_v45 = vadd.f32 %v246_v44, %v227_v43 }
  0xaa   :  { %v266_v47 = vadd.f32 %v265_v40, %v247_v45 }
  0xac   :  { %v293_v48 = vadd.f32 %v453_v42, %v266_v47  ;;  %v232_v57 = vpop.f32.mrf.mxu3 }
  0xae   :  { %v297_v51 = vmax.f32 %v293_v48, 0.0 }
  0xaf   :  { %v249_v53 = vpop.f32.mrf.mxu1 }
  0xb0   :  { %v437_v54 = vpack.c.bf16 %v297_v51, %v296_v50  ;;  %v250_v55 = vadd.f32 %v249_v53, %v230_v49 }
  0xb2   :  { %438 = vst [vmem:[%s578_s3] sm:$0xff] %v437_v54   ;;  %v269_v56 = vadd.f32 %v268_v52, %v250_v55 }
  0xb4   :  { %v294_v61 = vadd.f32 %v453_v42, %v269_v56 }
  0xb6   :  { %v298_v0 = vmax.f32 %v294_v61, 0.0 }
  0xb7   :  { %v251_v58 = vpop.f32.mrf.mxu1 }
  0xb8   :  { %v252_v59 = vadd.f32 %v251_v58, %v232_v57 }
  0xba   :  { %v271_v62 = vadd.f32 %v270_v60, %v252_v59 }
  0xbc   :  { %v295_v63 = vadd.f32 %v453_v42, %v271_v62 }
  0xbe   :  { %v299_v1 = vmax.f32 %v295_v63, 0.0 }
  0xc0   :  { %v442_v2 = vpack.c.bf16 %v299_v1, %v298_v0 }
  0xc2   :  { %444 = vst [vmem:[%s578_s3 + $0x8] sm:$0xff] %v442_v2  }

// kernel: autonomous_driver_forward.7
= control target key start
LH: loop header
LB: loop body
LE: loop exit
PB: predicated region body
PF: predicated region fallthrough
CT: control target
= control target key end

     0   :  { %s6656_s1 = inlined_call_operand.vmem [shape: bf16[1024,512], index: 1, kind: input, shape index: {}]   ;;  %s6657_s0 = inlined_call_operand.vmem [shape: bf16[16,1024], index: 0, kind: input, shape index: {}]   ;;  %s6658_s2 = inlined_call_operand.vmem [shape: f32[1,512], index: 2, kind: input, shape index: {}]   ;;  %s6659_s3 = inlined_call_operand.vmem [shape: bf16[512,256], index: 3, kind: input, shape index: {}]   ;;  %s6660_s6 = inlined_call_operand.vmem [shape: f32[1,128], index: 6, kind: input, shape index: {}]   ;;  %s6661_s5 = inlined_call_operand.vmem [shape: bf16[256,128], index: 5, kind: input, shape index: {}]   ;;  %s6662_s4 = inlined_call_operand.vmem [shape: f32[1,256], index: 4, kind: input, shape index: {}]   ;;  %s6663_s7 = inlined_call_operand.vmem [shape: f32[16,128], index: 7, kind: output, shape index: {}]  }
   0x1   :  { %v2900_v0 = vld [vmem:[%s6656_s1 + $0xe0] sm:$0xf]  ;;  %v4168_v1 = vld [vmem:[%s6656_s1 + $0xec] sm:$0xf0] }
   0x2   :  { %v3028_v2 = vld [vmem:[%s6656_s1 + $0x1e0] sm:$0xf]  ;;  %v2901_v3 = vor.u32 %v4168_v1, %v2900_v0  ;;  %v4200_v4 = vld [vmem:[%s6656_s1 + $0x1ec] sm:$0xf0] }
   0x3   :  { %v3156_v5 = vld [vmem:[%s6656_s1 + $0x2e0] sm:$0xf]  ;;  %v4232_v6 = vld [vmem:[%s6656_s1 + $0x2ec] sm:$0xf0]  ;;  %v3029_v7 = vor.u32 %v4200_v4, %v3028_v2 }
   0x4   :  { %v3157_v8 = vor.u32 %v4232_v6, %v3156_v5  ;;  %v3284_v9 = vld [vmem:[%s6656_s1 + $0x3e0] sm:$0xf]  ;;  %v4264_v10 = vld [vmem:[%s6656_s1 + $0x3ec] sm:$0xf0]  ;;  %1620 = vmatpush.bf16.msra.mxu0 %v2901_v3 }
   0x5   :  { %v2884_v11 = vld [vmem:[%s6656_s1 + $0xc0] sm:$0xf]  ;;  %v3285_v12 = vor.u32 %v4264_v10, %v3284_v9  ;;  %v4164_v13 = vld [vmem:[%s6656_s1 + $0xcc] sm:$0xf0]  ;;  %1634 = vmatpush.bf16.msra.mxu1 %v3029_v7 }
   0x6   :  { %v3012_v14 = vld [vmem:[%s6656_s1 + $0x1c0] sm:$0xf]  ;;  %v4196_v15 = vld [vmem:[%s6656_s1 + $0x1cc] sm:$0xf0]  ;;  %1648 = vmatpush.bf16.msra.mxu2 %v3157_v8  ;;  %v2885_v16 = vor.u32 %v4164_v13, %v2884_v11 }
   0x7   :  { %v3013_v17 = vor.u32 %v4196_v15, %v3012_v14  ;;  %v3140_v18 = vld [vmem:[%s6656_s1 + $0x2c0] sm:$0xf]  ;;  %v4228_v19 = vld [vmem:[%s6656_s1 + $0x2cc] sm:$0xf0]  ;;  %1662 = vmatpush.bf16.msra.mxu3 %v3285_v12 }
   0x8   :  { %v3268_v20 = vld [vmem:[%s6656_s1 + $0x3c0] sm:$0xf]  ;;  %v3141_v21 = vor.u32 %v4228_v19, %v3140_v18  ;;  %v4260_v22 = vld [vmem:[%s6656_s1 + $0x3cc] sm:$0xf0]  ;;  %1621 = vmatpush.bf16.msra.mxu0 %v2885_v16 }
   0x9   :  { %v2868_v23 = vld [vmem:[%s6656_s1 + $0xa0] sm:$0xf]  ;;  %v4160_v24 = vld [vmem:[%s6656_s1 + $0xac] sm:$0xf0]  ;;  %v3269_v25 = vor.u32 %v4260_v22, %v3268_v20  ;;  %1635 = vmatpush.bf16.msra.mxu1 %v3013_v17 }
   0xa   :  { %v2996_v26 = vld [vmem:[%s6656_s1 + $0x1a0] sm:$0xf]  ;;  %v4192_v27 = vld [vmem:[%s6656_s1 + $0x1ac] sm:$0xf0]  ;;  %v2869_v29 = vor.u32 %v4160_v24, %v2868_v23  ;;  %1649 = vmatpush.bf16.msra.mxu2 %v3141_v21 }
   0xb   :  { %v3124_v28 = vld [vmem:[%s6656_s1 + $0x2a0] sm:$0xf]  ;;  %v4224_v30 = vld [vmem:[%s6656_s1 + $0x2ac] sm:$0xf0]  ;;  %v2997_v33 = vor.u32 %v4192_v27, %v2996_v26  ;;  %1663 = vmatpush.bf16.msra.mxu3 %v3269_v25 }
   0xc   :  { %v3252_v31 = vld [vmem:[%s6656_s1 + $0x3a0] sm:$0xf]  ;;  %v4256_v32 = vld [vmem:[%s6656_s1 + $0x3ac] sm:$0xf0]  ;;  %v3125_v34 = vor.u32 %v4224_v30, %v3124_v28  ;;  %1622 = vmatpush.bf16.msra.mxu0 %v2869_v29 }
   0xd   :  { %v2852_v35 = vld [vmem:[%s6656_s1 + $0x80] sm:$0xf]  ;;  %v4156_v36 = vld [vmem:[%s6656_s1 + $0x8c] sm:$0xf0]  ;;  %v3253_v38 = vor.u32 %v4256_v32, %v3252_v31  ;;  %1636 = vmatpush.bf16.msra.mxu1 %v2997_v33 }
   0xe   :  { %v2980_v37 = vld [vmem:[%s6656_s1 + $0x180] sm:$0xf]  ;;  %v4188_v39 = vld [vmem:[%s6656_s1 + $0x18c] sm:$0xf0]  ;;  %v2853_v44 = vor.u32 %v4156_v36, %v2852_v35  ;;  %1650 = vmatpush.bf16.msra.mxu2 %v3125_v34 }
   0xf   :  { %v3108_v40 = vld [vmem:[%s6656_s1 + $0x280] sm:$0xf]  ;;  %v4220_v41 = vld [vmem:[%s6656_s1 + $0x28c] sm:$0xf0]  ;;  %v2981_v45 = vor.u32 %v4188_v39, %v2980_v37  ;;  %1664 = vmatpush.bf16.msra.mxu3 %v3253_v38 }
  0x10   :  { %v3236_v42 = vld [vmem:[%s6656_s1 + $0x380] sm:$0xf]  ;;  %v4252_v43 = vld [vmem:[%s6656_s1 + $0x38c] sm:$0xf0]  ;;  %v3109_v46 = vor.u32 %v4220_v41, %v3108_v40  ;;  %1623 = vmatpush.bf16.msra.mxu0 %v2853_v44 }
  0x11   :  { %v2836_v47 = vld [vmem:[%s6656_s1 + $0x60] sm:$0xf]  ;;  %v4152_v48 = vld [vmem:[%s6656_s1 + $0x6c] sm:$0xf0]  ;;  %v3237_v50 = vor.u32 %v4252_v43, %v3236_v42  ;;  %1637 = vmatpush.bf16.msra.mxu1 %v2981_v45 }
  0x12   :  { %v2964_v49 = vld [vmem:[%s6656_s1 + $0x160] sm:$0xf]  ;;  %v4184_v51 = vld [vmem:[%s6656_s1 + $0x16c] sm:$0xf0]  ;;  %v2837_v56 = vor.u32 %v4152_v48, %v2836_v47  ;;  %1651 = vmatpush.bf16.msra.mxu2 %v3109_v46 }
  0x13   :  { %v3092_v52 = vld [vmem:[%s6656_s1 + $0x260] sm:$0xf]  ;;  %v4216_v53 = vld [vmem:[%s6656_s1 + $0x26c] sm:$0xf0]  ;;  %v2965_v57 = vor.u32 %v4184_v51, %v2964_v49  ;;  %1665 = vmatpush.bf16.msra.mxu3 %v3237_v50 }
  0x14   :  { %v3220_v54 = vld [vmem:[%s6656_s1 + $0x360] sm:$0xf]  ;;  %v4248_v55 = vld [vmem:[%s6656_s1 + $0x36c] sm:$0xf0]  ;;  %v3093_v58 = vor.u32 %v4216_v53, %v3092_v52  ;;  %1624 = vmatpush.bf16.msra.mxu0 %v2837_v56 }
  0x15   :  { %v2820_v59 = vld [vmem:[%s6656_s1 + $0x40] sm:$0xf]  ;;  %v4148_v60 = vld [vmem:[%s6656_s1 + $0x4c] sm:$0xf0]  ;;  %v3221_v62 = vor.u32 %v4248_v55, %v3220_v54  ;;  %1638 = vmatpush.bf16.msra.mxu1 %v2965_v57  ;;  %v2764_v54 = vld [vmem:[%s6657_s0 + $0x8] sm:$0xf] }
  0x16   :  { %v2948_v61 = vld [vmem:[%s6656_s1 + $0x140] sm:$0xf]  ;;  %v4180_v63 = vld [vmem:[%s6656_s1 + $0x14c] sm:$0xf0]  ;;  %v2821_v4 = vor.u32 %v4148_v60, %v2820_v59  ;;  %1652 = vmatpush.bf16.msra.mxu2 %v3093_v58  ;;  %v4135_v59 = vld [vmem:[%s6657_s0 + $0x24] sm:$0xf0] }
  0x17   :  { %v3076_v0 = vld [vmem:[%s6656_s1 + $0x240] sm:$0xf]  ;;  %v4212_v1 = vld [vmem:[%s6656_s1 + $0x24c] sm:$0xf0]  ;;  %v2949_v5 = vor.u32 %v4180_v63, %v2948_v61  ;;  %1666 = vmatpush.bf16.msra.mxu3 %v3221_v62 }
  0x18   :  { %v3204_v2 = vld [vmem:[%s6656_s1 + $0x340] sm:$0xf]  ;;  %v4244_v3 = vld [vmem:[%s6656_s1 + $0x34c] sm:$0xf0]  ;;  %v3077_v6 = vor.u32 %v4212_v1, %v3076_v0  ;;  %1625 = vmatpush.bf16.msra.mxu0 %v2821_v4  ;;  %v4784_v1 = vor.u32 %v4135_v59, %v2764_v54 }
  0x19   :  { %v2804_v7 = vld [vmem:[%s6656_s1 + $0x20] sm:$0xf]  ;;  %v4144_v8 = vld [vmem:[%s6656_s1 + $0x2c] sm:$0xf0]  ;;  %v3205_v10 = vor.u32 %v4244_v3, %v3204_v2  ;;  %1639 = vmatpush.bf16.msra.mxu1 %v2949_v5 }
  0x1a   :  { %v2932_v9 = vld [vmem:[%s6656_s1 + $0x120] sm:$0xf]  ;;  %v4176_v11 = vld [vmem:[%s6656_s1 + $0x12c] sm:$0xf0]  ;;  %v2805_v16 = vor.u32 %v4144_v8, %v2804_v7  ;;  %1653 = vmatpush.bf16.msra.mxu2 %v3077_v6  ;;  %v4130_v6 = vld [vmem:[%s6657_s0 + $0x4] sm:$0xf] }
  0x1b   :  { %v3060_v12 = vld [vmem:[%s6656_s1 + $0x220] sm:$0xf]  ;;  %v4208_v13 = vld [vmem:[%s6656_s1 + $0x22c] sm:$0xf0]  ;;  %v2933_v19 = vor.u32 %v4176_v11, %v2932_v9  ;;  %1667 = vmatpush.bf16.msra.mxu3 %v3205_v10  ;;  %v2758_v7 = vld [vmem:[%s6657_s0 + $0x20] sm:$0xf0] }
  0x1c   :  { %v3188_v14 = vld [vmem:[%s6656_s1 + $0x320] sm:$0xf]  ;;  %v4240_v15 = vld [vmem:[%s6656_s1 + $0x32c] sm:$0xf0]  ;;  %v3061_v20 = vor.u32 %v4208_v13, %v3060_v12  ;;  %1626 = vmatpush.bf16.msra.mxu0 %v2805_v16  ;;  %v4131_v8 = vld [vmem:[%s6657_s0 + $0xc] sm:$0xf]  ;;  %v4806_v10 = vor.u32 %v4130_v6, %v2758_v7 }
  0x1d   :  { %v2788_v17 = vld [vmem:[%s6656_s1] sm:$0xf]  ;;  %v4140_v18 = vld [vmem:[%s6656_s1 + $0xc] sm:$0xf0]  ;;  %v3189_v24 = vor.u32 %v4240_v15, %v3188_v14  ;;  %1640 = vmatpush.bf16.msra.mxu1 %v2933_v19  ;;  %v2766_v11 = vld [vmem:[%s6657_s0 + $0x28] sm:$0xf0] }
  0x1e   :  { %v2916_v21 = vld [vmem:[%s6656_s1 + $0x100] sm:$0xf]  ;;  %v4172_v22 = vld [vmem:[%s6656_s1 + $0x10c] sm:$0xf0]  ;;  %v2789_v31 = vor.u32 %v4140_v18, %v2788_v17  ;;  %1654 = vmatpush.bf16.msra.mxu2 %v3061_v20  ;;  %v4820_v17 = vor.u32 %v4131_v8, %v2766_v11 }
  0x1f   :  { %v3044_v23 = vld [vmem:[%s6656_s1 + $0x200] sm:$0xf]  ;;  %v4204_v25 = vld [vmem:[%s6656_s1 + $0x20c] sm:$0xf0]  ;;  %v2917_v35 = vor.u32 %v4172_v22, %v2916_v21  ;;  %1668 = vmatpush.bf16.msra.mxu3 %v3189_v24 }
  0x20   :  { %v3172_v26 = vld [vmem:[%s6656_s1 + $0x300] sm:$0xf]  ;;  %v4236_v27 = vld [vmem:[%s6656_s1 + $0x30c] sm:$0xf0]  ;;  %v3045_v36 = vor.u32 %v4204_v25, %v3044_v23  ;;  %1627 = vmatpush.bf16.msra.mxu0 %v2789_v31 }
  0x21   :  { %v3412_v28 = vld [vmem:[%s6656_s1 + $0x4e0] sm:$0xf]  ;;  %v4296_v29 = vld [vmem:[%s6656_s1 + $0x4ec] sm:$0xf0]  ;;  %v3173_v39 = vor.u32 %v4236_v27, %v3172_v26  ;;  %1641 = vmatpush.bf16.msra.mxu1 %v2917_v35 }
  0x22   :  { %v3540_v30 = vld [vmem:[%s6656_s1 + $0x5e0] sm:$0xf]  ;;  %v4328_v32 = vld [vmem:[%s6656_s1 + $0x5ec] sm:$0xf0]  ;;  %v3413_v40 = vor.u32 %v4296_v29, %v3412_v28  ;;  %1655 = vmatpush.bf16.msra.mxu2 %v3045_v36 }
  0x23   :  { %v3668_v33 = vld [vmem:[%s6656_s1 + $0x6e0] sm:$0xf]  ;;  %v4360_v34 = vld [vmem:[%s6656_s1 + $0x6ec] sm:$0xf0]  ;;  %v3541_v43 = vor.u32 %v4328_v32, %v3540_v30  ;;  %1669 = vmatpush.bf16.msra.mxu3 %v3173_v39 }
  0x24   :  { %v3796_v37 = vld [vmem:[%s6656_s1 + $0x7e0] sm:$0xf]  ;;  %v4392_v38 = vld [vmem:[%s6656_s1 + $0x7ec] sm:$0xf0]  ;;  %v3669_v44 = vor.u32 %v4360_v34, %v3668_v33  ;;  %1676 = vmatpush.bf16.msrb.mxu0 %v3413_v40  ;;  %1642 = vmatmul.bf16.vlgmr.msra.gmra.mxu1 %v4806_v10 }
  0x25   :  { %v3396_v41 = vld [vmem:[%s6656_s1 + $0x4c0] sm:$0xf]  ;;  %v4292_v42 = vld [vmem:[%s6656_s1 + $0x4cc] sm:$0xf0]  ;;  %v3797_v48 = vor.u32 %v4392_v38, %v3796_v37  ;;  %1690 = vmatpush.bf16.msrb.mxu1 %v3541_v43  ;;  %1656 = vmatmul.bf16.vlgmr.msra.gmra.mxu2 %v4784_v1 }
  0x26   :  { %v3524_v45 = vld [vmem:[%s6656_s1 + $0x5c0] sm:$0xf]  ;;  %v4324_v46 = vld [vmem:[%s6656_s1 + $0x5cc] sm:$0xf0]  ;;  %v3397_v55 = vor.u32 %v4292_v42, %v3396_v41  ;;  %1704 = vmatpush.bf16.msrb.mxu2 %v3669_v44  ;;  %1670 = vmatmul.bf16.vlgmr.msra.gmra.mxu3 %v4820_v17 }
  0x27   :  { %v3652_v47 = vld [vmem:[%s6656_s1 + $0x6c0] sm:$0xf]  ;;  %v4356_v49 = vld [vmem:[%s6656_s1 + $0x6cc] sm:$0xf0]  ;;  %v3525_v60 = vor.u32 %v4324_v46, %v3524_v45  ;;  %1718 = vmatpush.bf16.msrb.mxu3 %v3797_v48 }
  0x28   :  { %v3780_v50 = vld [vmem:[%s6656_s1 + $0x7c0] sm:$0xf]  ;;  %v4388_v51 = vld [vmem:[%s6656_s1 + $0x7cc] sm:$0xf0]  ;;  %v3653_v61 = vor.u32 %v4356_v49, %v3652_v47  ;;  %1677 = vmatpush.bf16.msrb.mxu0 %v3397_v55 }
  0x29   :  { %v2756_v52 = vld [vmem:[%s6657_s0] sm:$0xf]  ;;  %v4288_v57 = vld [vmem:[%s6656_s1 + $0x4ac] sm:$0xf0]  ;;  %v3781_v2 = vor.u32 %v4388_v51, %v3780_v50  ;;  %1691 = vmatpush.bf16.msrb.mxu1 %v3525_v60 }
  0x2a   :  { %v4134_v53 = vld [vmem:[%s6657_s0 + $0x1c] sm:$0xf0]  ;;  %v4320_v63 = vld [vmem:[%s6656_s1 + $0x5ac] sm:$0xf0]  ;;  %1705 = vmatpush.bf16.msrb.mxu2 %v3653_v61 }
  0x2b   :  { %v3380_v56 = vld [vmem:[%s6656_s1 + $0x4a0] sm:$0xf]  ;;  %v4770_v58 = vor.u32 %v4134_v53, %v2756_v52  ;;  %v4352_v3 = vld [vmem:[%s6656_s1 + $0x6ac] sm:$0xf0]  ;;  %1719 = vmatpush.bf16.msrb.mxu3 %v3781_v2 }
  0x2c   :  { %v3508_v62 = vld [vmem:[%s6656_s1 + $0x5a0] sm:$0xf]  ;;  %v4384_v5 = vld [vmem:[%s6656_s1 + $0x7ac] sm:$0xf0]  ;;  %v3381_v9 = vor.u32 %v4288_v57, %v3380_v56 }
  0x2d   :  { %v3636_v0 = vld [vmem:[%s6656_s1 + $0x6a0] sm:$0xf]  ;;  %1628 = vmatmul.bf16.vlgmr.msra.gmra.mxu0 %v4770_v58  ;;  %v3509_v12 = vor.u32 %v4320_v63, %v3508_v62  ;;  %v4284_v15 = vld [vmem:[%s6656_s1 + $0x48c] sm:$0xf0] }
  0x2e   :  { %v3764_v4 = vld [vmem:[%s6656_s1 + $0x7a0] sm:$0xf]  ;;  %v3637_v13 = vor.u32 %v4352_v3, %v3636_v0  ;;  %v4316_v19 = vld [vmem:[%s6656_s1 + $0x58c] sm:$0xf0]  ;;  %1678 = vmatpush.bf16.msrb.mxu0 %v3381_v9  ;;  %v4166_v9 = vld [vmem:[%s6656_s1 + $0xe4] sm:$0xf] }
  0x2f   :  { %v3364_v14 = vld [vmem:[%s6656_s1 + $0x480] sm:$0xf]  ;;  %v3765_v18 = vor.u32 %v4384_v5, %v3764_v4  ;;  %v4348_v21 = vld [vmem:[%s6656_s1 + $0x68c] sm:$0xf0]  ;;  %1692 = vmatpush.bf16.msrb.mxu1 %v3509_v12  ;;  %v2902_v12 = vld [vmem:[%s6656_s1 + $0xf0] sm:$0xf0] }
  0x30   :  { %v3492_v16 = vld [vmem:[%s6656_s1 + $0x580] sm:$0xf]  ;;  %v4380_v23 = vld [vmem:[%s6656_s1 + $0x78c] sm:$0xf0]  ;;  %v3365_v24 = vor.u32 %v4284_v15, %v3364_v14  ;;  %1706 = vmatpush.bf16.msrb.mxu2 %v3637_v13  ;;  %v4198_v13 = vld [vmem:[%s6656_s1 + $0x1e4] sm:$0xf] }
  0x31   :  { %v3620_v20 = vld [vmem:[%s6656_s1 + $0x680] sm:$0xf]  ;;  %v3493_v25 = vor.u32 %v4316_v19, %v3492_v16  ;;  %v4280_v28 = vld [vmem:[%s6656_s1 + $0x46c] sm:$0xf0]  ;;  %1720 = vmatpush.bf16.msrb.mxu3 %v3765_v18  ;;  %v3030_v14 = vld [vmem:[%s6656_s1 + $0x1f0] sm:$0xf0] }
  0x32   :  { %v3748_v22 = vld [vmem:[%s6656_s1 + $0x780] sm:$0xf]  ;;  %v3621_v26 = vor.u32 %v4348_v21, %v3620_v20  ;;  %v4312_v31 = vld [vmem:[%s6656_s1 + $0x56c] sm:$0xf0]  ;;  %1679 = vmatpush.bf16.msrb.mxu0 %v3365_v24  ;;  %v4230_v15 = vld [vmem:[%s6656_s1 + $0x2e4] sm:$0xf] }
  0x33   :  { %v3348_v27 = vld [vmem:[%s6656_s1 + $0x460] sm:$0xf]  ;;  %v3749_v30 = vor.u32 %v4380_v23, %v3748_v22  ;;  %v4344_v33 = vld [vmem:[%s6656_s1 + $0x66c] sm:$0xf0]  ;;  %1693 = vmatpush.bf16.msrb.mxu1 %v3493_v25  ;;  %v3158_v16 = vld [vmem:[%s6656_s1 + $0x2f0] sm:$0xf0] }
  0x34   :  { %v3476_v29 = vld [vmem:[%s6656_s1 + $0x560] sm:$0xf]  ;;  %v4376_v35 = vld [vmem:[%s6656_s1 + $0x76c] sm:$0xf0]  ;;  %v3349_v36 = vor.u32 %v4280_v28, %v3348_v27  ;;  %1707 = vmatpush.bf16.msrb.mxu2 %v3621_v26  ;;  %v4262_v18 = vld [vmem:[%s6656_s1 + $0x3e4] sm:$0xf] }
  0x35   :  { %v3604_v32 = vld [vmem:[%s6656_s1 + $0x660] sm:$0xf]  ;;  %v3477_v37 = vor.u32 %v4312_v31, %v3476_v29  ;;  %v4276_v40 = vld [vmem:[%s6656_s1 + $0x44c] sm:$0xf0]  ;;  %1721 = vmatpush.bf16.msrb.mxu3 %v3749_v30  ;;  %v3286_v20 = vld [vmem:[%s6656_s1 + $0x3f0] sm:$0xf0]  ;;  %v2905_v29 = vor.u32 %v4166_v9, %v2902_v12 }
  0x36   :  { %v3732_v34 = vld [vmem:[%s6656_s1 + $0x760] sm:$0xf]  ;;  %v3605_v38 = vor.u32 %v4344_v33, %v3604_v32  ;;  %v4308_v43 = vld [vmem:[%s6656_s1 + $0x54c] sm:$0xf0]  ;;  %1680 = vmatpush.bf16.msrb.mxu0 %v3349_v36  ;;  %v2780_v25 = vld [vmem:[%s6657_s0 + $0x18] sm:$0xf]  ;;  %v3033_v33 = vor.u32 %v4198_v13, %v3030_v14 }
  0x37   :  { %v3332_v39 = vld [vmem:[%s6656_s1 + $0x440] sm:$0xf]  ;;  %v3733_v42 = vor.u32 %v4376_v35, %v3732_v34  ;;  %v4340_v45 = vld [vmem:[%s6656_s1 + $0x64c] sm:$0xf0]  ;;  %1694 = vmatpush.bf16.msrb.mxu1 %v3477_v37  ;;  %v4137_v26 = vld [vmem:[%s6657_s0 + $0x34] sm:$0xf0]  ;;  %v3161_v34 = vor.u32 %v4230_v15, %v3158_v16 }
  0x38   :  { %v3460_v41 = vld [vmem:[%s6656_s1 + $0x540] sm:$0xf]  ;;  %v4372_v47 = vld [vmem:[%s6656_s1 + $0x74c] sm:$0xf0]  ;;  %v3333_v48 = vor.u32 %v4276_v40, %v3332_v39  ;;  %1708 = vmatpush.bf16.msrb.mxu2 %v3605_v38  ;;  %v4132_v27 = vld [vmem:[%s6657_s0 + $0x14] sm:$0xf]  ;;  %v3289_v38 = vor.u32 %v4262_v18, %v3286_v20 }
  0x39   :  { %v3588_v44 = vld [vmem:[%s6656_s1 + $0x640] sm:$0xf]  ;;  %v3461_v50 = vor.u32 %v4308_v43, %v3460_v41  ;;  %v4272_v52 = vld [vmem:[%s6656_s1 + $0x42c] sm:$0xf0]  ;;  %1722 = vmatpush.bf16.msrb.mxu3 %v3733_v42  ;;  %v2774_v30 = vld [vmem:[%s6657_s0 + $0x30] sm:$0xf0]  ;;  %v5003_v43 = vor.u32 %v4137_v26, %v2780_v25 }
  0x3a   :  { %v3716_v46 = vld [vmem:[%s6656_s1 + $0x740] sm:$0xf]  ;;  %v3589_v51 = vor.u32 %v4340_v45, %v3588_v44  ;;  %v4304_v54 = vld [vmem:[%s6656_s1 + $0x52c] sm:$0xf0]  ;;  %1681 = vmatpush.bf16.msrb.mxu0 %v3333_v48  ;;  %v4133_v31 = vld [vmem:[%s6657_s0 + $0x1c] sm:$0xf]  ;;  %v5005_v44 = vor.u32 %v4132_v27, %v2774_v30 }
  0x3b   :  { %v3316_v49 = vld [vmem:[%s6656_s1 + $0x420] sm:$0xf]  ;;  %v3717_v55 = vor.u32 %v4372_v47, %v3716_v46  ;;  %v4336_v57 = vld [vmem:[%s6656_s1 + $0x62c] sm:$0xf0]  ;;  %1695 = vmatpush.bf16.msrb.mxu1 %v3461_v50  ;;  %v2782_v32 = vld [vmem:[%s6657_s0 + $0x38] sm:$0xf0] }
  0x3c   :  { %v3444_v53 = vld [vmem:[%s6656_s1 + $0x520] sm:$0xf]  ;;  %v4368_v60 = vld [vmem:[%s6656_s1 + $0x72c] sm:$0xf0]  ;;  %v3317_v63 = vor.u32 %v4272_v52, %v3316_v49  ;;  %1709 = vmatpush.bf16.msrb.mxu2 %v3589_v51  ;;  %v4162_v35 = vld [vmem:[%s6656_s1 + $0xc4] sm:$0xf]  ;;  %v5013_v47 = vor.u32 %v4133_v31, %v2782_v32 }
  0x3d   :  { %v3572_v56 = vld [vmem:[%s6656_s1 + $0x620] sm:$0xf]  ;;  %v4268_v62 = vld [vmem:[%s6656_s1 + $0x40c] sm:$0xf0]  ;;  %v3445_v5 = vor.u32 %v4304_v54, %v3444_v53  ;;  %1723 = vmatpush.bf16.msrb.mxu3 %v3717_v55  ;;  %v2886_v36 = vld [vmem:[%s6656_s1 + $0xd0] sm:$0xf0] }
  0x3e   :  { %v3700_v59 = vld [vmem:[%s6656_s1 + $0x720] sm:$0xf]  ;;  %v4300_v2 = vld [vmem:[%s6656_s1 + $0x50c] sm:$0xf0]  ;;  %v3573_v6 = vor.u32 %v4336_v57, %v3572_v56  ;;  %1682 = vmatpush.bf16.msrb.mxu0 %v3317_v63  ;;  %v4194_v37 = vld [vmem:[%s6656_s1 + $0x1c4] sm:$0xf]  ;;  %v2889_v48 = vor.u32 %v4162_v35, %v2886_v36 }
  0x3f   :  { %v3300_v61 = vld [vmem:[%s6656_s1 + $0x400] sm:$0xf]  ;;  %v4332_v4 = vld [vmem:[%s6656_s1 + $0x60c] sm:$0xf0]  ;;  %v3701_v11 = vor.u32 %v4368_v60, %v3700_v59  ;;  %1696 = vmatpush.bf16.msrb.mxu1 %v3445_v5  ;;  %v3014_v40 = vld [vmem:[%s6656_s1 + $0x1d0] sm:$0xf0] }
  0x40   :  { %v3428_v0 = vld [vmem:[%s6656_s1 + $0x500] sm:$0xf]  ;;  %v4364_v8 = vld [vmem:[%s6656_s1 + $0x70c] sm:$0xf0]  ;;  %v3301_v19 = vor.u32 %v4268_v62, %v3300_v61  ;;  %1710 = vmatpush.bf16.msrb.mxu2 %v3573_v6  ;;  %v4226_v41 = vld [vmem:[%s6656_s1 + $0x2c4] sm:$0xf]  ;;  %v3017_v49 = vor.u32 %v4194_v37, %v3014_v40 }
  0x41   :  { %v3556_v3 = vld [vmem:[%s6656_s1 + $0x600] sm:$0xf]  ;;  %v2772_v21 = vld [vmem:[%s6657_s0 + $0x10] sm:$0xf]  ;;  %v3429_v23 = vor.u32 %v4300_v2, %v3428_v0  ;;  %1724 = vmatpush.bf16.msrb.mxu3 %v3701_v11  ;;  %v3142_v42 = vld [vmem:[%s6656_s1 + $0x2d0] sm:$0xf0] }
  0x42   :  { %v3684_v7 = vld [vmem:[%s6656_s1 + $0x700] sm:$0xf]  ;;  %v4136_v22 = vld [vmem:[%s6657_s0 + $0x2c] sm:$0xf0]  ;;  %v3557_v24 = vor.u32 %v4332_v4, %v3556_v3  ;;  %1683 = vmatpush.bf16.msrb.mxu0 %v3301_v19  ;;  %v4258_v45 = vld [vmem:[%s6656_s1 + $0x3c4] sm:$0xf]  ;;  %v3145_v50 = vor.u32 %v4226_v41, %v3142_v42 }
  0x43   :  { %v3685_v28 = vor.u32 %v4364_v8, %v3684_v7  ;;  %v4992_v39 = vor.u32 %v4136_v22, %v2772_v21  ;;  %1697 = vmatpush.bf16.msrb.mxu1 %v3429_v23  ;;  %v3270_v46 = vld [vmem:[%s6656_s1 + $0x3d0] sm:$0xf0]  ;;  %v4158_v51 = vld [vmem:[%s6656_s1 + $0xa4] sm:$0xf] }
  0x44   :  { %1711 = vmatpush.bf16.msrb.mxu2 %v3557_v24  ;;  %v2870_v52 = vld [vmem:[%s6656_s1 + $0xb0] sm:$0xf0]  ;;  %v4190_v53 = vld [vmem:[%s6656_s1 + $0x1a4] sm:$0xf]  ;;  %v3273_v54 = vor.u32 %v4258_v45, %v3270_v46 }
  0x45   :  { %1725 = vmatpush.bf16.msrb.mxu3 %v3685_v28  ;;  %1684 = vmatmul.bf16.vlgmr.msrb.gmra.mxu0 %v4992_v39  ;;  %v2998_v55 = vld [vmem:[%s6656_s1 + $0x1b0] sm:$0xf0]  ;;  %v4222_v56 = vld [vmem:[%s6656_s1 + $0x2a4] sm:$0xf]  ;;  %v2873_v61 = vor.u32 %v4158_v51, %v2870_v52 }
  0x46   :  { %1732 = vmatpush.bf16.msra.mxu0 %v2905_v29  ;;  %v3126_v57 = vld [vmem:[%s6656_s1 + $0x2b0] sm:$0xf0]  ;;  %1698 = vmatmul.bf16.vlgmr.msrb.gmra.mxu1 %v5005_v44  ;;  %v4254_v59 = vld [vmem:[%s6656_s1 + $0x3a4] sm:$0xf]  ;;  %v3001_v62 = vor.u32 %v4190_v53, %v2998_v55 }
  0x47   :  { %1746 = vmatpush.bf16.msra.mxu1 %v3033_v33  ;;  %1712 = vmatmul.bf16.vlgmr.msrb.gmra.mxu2 %v5003_v43  ;;  %v3254_v60 = vld [vmem:[%s6656_s1 + $0x3b0] sm:$0xf0]  ;;  %v3129_v63 = vor.u32 %v4222_v56, %v3126_v57  ;;  %v4154_v0 = vld [vmem:[%s6656_s1 + $0x84] sm:$0xf] }
  0x48   :  { %1760 = vmatpush.bf16.msra.mxu2 %v3161_v34  ;;  %1726 = vmatmul.bf16.vlgmr.msrb.gmra.mxu3 %v5013_v47  ;;  %v2854_v2 = vld [vmem:[%s6656_s1 + $0x90] sm:$0xf0]  ;;  %v4186_v3 = vld [vmem:[%s6656_s1 + $0x184] sm:$0xf]  ;;  %v3257_v4 = vor.u32 %v4254_v59, %v3254_v60 }
  0x49   :  { %1774 = vmatpush.bf16.msra.mxu3 %v3289_v38  ;;  %v2982_v5 = vld [vmem:[%s6656_s1 + $0x190] sm:$0xf0]  ;;  %v4218_v6 = vld [vmem:[%s6656_s1 + $0x284] sm:$0xf]  ;;  %v2857_v11 = vor.u32 %v4154_v0, %v2854_v2 }
  0x4a   :  { %1733 = vmatpush.bf16.msra.mxu0 %v2889_v48  ;;  %v3110_v7 = vld [vmem:[%s6656_s1 + $0x290] sm:$0xf0]  ;;  %v4250_v8 = vld [vmem:[%s6656_s1 + $0x384] sm:$0xf]  ;;  %v2985_v12 = vor.u32 %v4186_v3, %v2982_v5 }
  0x4b   :  { %1747 = vmatpush.bf16.msra.mxu1 %v3017_v49  ;;  %v3238_v9 = vld [vmem:[%s6656_s1 + $0x390] sm:$0xf0]  ;;  %v3113_v13 = vor.u32 %v4218_v6, %v3110_v7  ;;  %v4150_v14 = vld [vmem:[%s6656_s1 + $0x64] sm:$0xf] }
  0x4c   :  { %1761 = vmatpush.bf16.msra.mxu2 %v3145_v50  ;;  %v2838_v15 = vld [vmem:[%s6656_s1 + $0x70] sm:$0xf0]  ;;  %v4182_v16 = vld [vmem:[%s6656_s1 + $0x164] sm:$0xf]  ;;  %v3241_v18 = vor.u32 %v4250_v8, %v3238_v9 }
  0x4d   :  { %1775 = vmatpush.bf16.msra.mxu3 %v3273_v54  ;;  %v2966_v19 = vld [vmem:[%s6656_s1 + $0x170] sm:$0xf0]  ;;  %v4214_v20 = vld [vmem:[%s6656_s1 + $0x264] sm:$0xf]  ;;  %v2841_v24 = vor.u32 %v4150_v14, %v2838_v15 }
  0x4e   :  { %1734 = vmatpush.bf16.msra.mxu0 %v2873_v61  ;;  %v3094_v21 = vld [vmem:[%s6656_s1 + $0x270] sm:$0xf0]  ;;  %v4246_v22 = vld [vmem:[%s6656_s1 + $0x364] sm:$0xf]  ;;  %v2969_v25 = vor.u32 %v4182_v16, %v2966_v19 }
  0x4f   :  { %1748 = vmatpush.bf16.msra.mxu1 %v3001_v62  ;;  %v3222_v23 = vld [vmem:[%s6656_s1 + $0x370] sm:$0xf0]  ;;  %v3097_v26 = vor.u32 %v4214_v20, %v3094_v21  ;;  %v4146_v27 = vld [vmem:[%s6656_s1 + $0x44] sm:$0xf] }
  0x50   :  { %1762 = vmatpush.bf16.msra.mxu2 %v3129_v63  ;;  %v2822_v28 = vld [vmem:[%s6656_s1 + $0x50] sm:$0xf0]  ;;  %v4178_v29 = vld [vmem:[%s6656_s1 + $0x144] sm:$0xf]  ;;  %v3225_v30 = vor.u32 %v4246_v22, %v3222_v23 }
  0x51   :  { %1776 = vmatpush.bf16.msra.mxu3 %v3257_v4  ;;  %v2950_v31 = vld [vmem:[%s6656_s1 + $0x150] sm:$0xf0]  ;;  %v4210_v32 = vld [vmem:[%s6656_s1 + $0x244] sm:$0xf]  ;;  %v2825_v36 = vor.u32 %v4146_v27, %v2822_v28 }
  0x52   :  { %1735 = vmatpush.bf16.msra.mxu0 %v2857_v11  ;;  %v3078_v33 = vld [vmem:[%s6656_s1 + $0x250] sm:$0xf0]  ;;  %v4242_v34 = vld [vmem:[%s6656_s1 + $0x344] sm:$0xf]  ;;  %v2953_v37 = vor.u32 %v4178_v29, %v2950_v31 }
  0x53   :  { %1749 = vmatpush.bf16.msra.mxu1 %v2985_v12  ;;  %v3206_v35 = vld [vmem:[%s6656_s1 + $0x350] sm:$0xf0]  ;;  %v3081_v38 = vor.u32 %v4210_v32, %v3078_v33  ;;  %v4142_v40 = vld [vmem:[%s6656_s1 + $0x24] sm:$0xf] }
  0x54   :  { %1763 = vmatpush.bf16.msra.mxu2 %v3113_v13  ;;  %v2806_v41 = vld [vmem:[%s6656_s1 + $0x30] sm:$0xf0]  ;;  %v4174_v42 = vld [vmem:[%s6656_s1 + $0x124] sm:$0xf]  ;;  %v3209_v45 = vor.u32 %v4242_v34, %v3206_v35 }
  0x55   :  { %1777 = vmatpush.bf16.msra.mxu3 %v3241_v18  ;;  %v2934_v46 = vld [vmem:[%s6656_s1 + $0x130] sm:$0xf0]  ;;  %v4206_v48 = vld [vmem:[%s6656_s1 + $0x224] sm:$0xf]  ;;  %v2809_v52 = vor.u32 %v4142_v40, %v2806_v41 }
  0x56   :  { %1736 = vmatpush.bf16.msra.mxu0 %v2841_v24  ;;  %v3062_v49 = vld [vmem:[%s6656_s1 + $0x230] sm:$0xf0]  ;;  %v4238_v50 = vld [vmem:[%s6656_s1 + $0x324] sm:$0xf]  ;;  %v2937_v55 = vor.u32 %v4174_v42, %v2934_v46 }
  0x57   :  { %1750 = vmatpush.bf16.msra.mxu1 %v2969_v25  ;;  %v3190_v51 = vld [vmem:[%s6656_s1 + $0x330] sm:$0xf0]  ;;  %v4138_v53 = vld [vmem:[%s6656_s1 + $0x4] sm:$0xf]  ;;  %v3065_v56 = vor.u32 %v4206_v48, %v3062_v49 }
  0x58   :  { %1764 = vmatpush.bf16.msra.mxu2 %v3097_v26  ;;  %v2790_v54 = vld [vmem:[%s6656_s1 + $0x10] sm:$0xf0]  ;;  %v4170_v57 = vld [vmem:[%s6656_s1 + $0x104] sm:$0xf]  ;;  %v3193_v61 = vor.u32 %v4238_v50, %v3190_v51 }
  0x59   :  { %1778 = vmatpush.bf16.msra.mxu3 %v3225_v30  ;;  %v2918_v59 = vld [vmem:[%s6656_s1 + $0x110] sm:$0xf0]  ;;  %v4202_v60 = vld [vmem:[%s6656_s1 + $0x204] sm:$0xf]  ;;  %v2793_v5 = vor.u32 %v4138_v53, %v2790_v54 }
  0x5a   :  { %1737 = vmatpush.bf16.msra.mxu0 %v2825_v36  ;;  %v3046_v62 = vld [vmem:[%s6656_s1 + $0x210] sm:$0xf0]  ;;  %v4234_v63 = vld [vmem:[%s6656_s1 + $0x304] sm:$0xf]  ;;  %v2921_v9 = vor.u32 %v4170_v57, %v2918_v59 }
  0x5b   :  { %1751 = vmatpush.bf16.msra.mxu1 %v2953_v37  ;;  %v3174_v0 = vld [vmem:[%s6656_s1 + $0x310] sm:$0xf0]  ;;  %v4294_v2 = vld [vmem:[%s6656_s1 + $0x4e4] sm:$0xf]  ;;  %v3049_v11 = vor.u32 %v4202_v60, %v3046_v62 }
  0x5c   :  { %1765 = vmatpush.bf16.msra.mxu2 %v3081_v38  ;;  %v3414_v3 = vld [vmem:[%s6656_s1 + $0x4f0] sm:$0xf0]  ;;  %v4326_v4 = vld [vmem:[%s6656_s1 + $0x5e4] sm:$0xf]  ;;  %v3177_v14 = vor.u32 %v4234_v63, %v3174_v0 }
  0x5d   :  { %1779 = vmatpush.bf16.msra.mxu3 %v3209_v45  ;;  %v3542_v6 = vld [vmem:[%s6656_s1 + $0x5f0] sm:$0xf0]  ;;  %v4358_v7 = vld [vmem:[%s6656_s1 + $0x6e4] sm:$0xf]  ;;  %v3417_v15 = vor.u32 %v4294_v2, %v3414_v3 }
  0x5e   :  { %1738 = vmatpush.bf16.msra.mxu0 %v2809_v52  ;;  %v3670_v8 = vld [vmem:[%s6656_s1 + $0x6f0] sm:$0xf0]  ;;  %v4390_v12 = vld [vmem:[%s6656_s1 + $0x7e4] sm:$0xf]  ;;  %v3545_v16 = vor.u32 %v4326_v4, %v3542_v6 }
  0x5f   :  { %1752 = vmatpush.bf16.msra.mxu1 %v2937_v55  ;;  %v3798_v13 = vld [vmem:[%s6656_s1 + $0x7f0] sm:$0xf0]  ;;  %v3673_v18 = vor.u32 %v4358_v7, %v3670_v8  ;;  %v4290_v19 = vld [vmem:[%s6656_s1 + $0x4c4] sm:$0xf] }
  0x60   :  { %1766 = vmatpush.bf16.msra.mxu2 %v3065_v56  ;;  %v3398_v20 = vld [vmem:[%s6656_s1 + $0x4d0] sm:$0xf0]  ;;  %v4322_v21 = vld [vmem:[%s6656_s1 + $0x5c4] sm:$0xf]  ;;  %v3801_v22 = vor.u32 %v4390_v12, %v3798_v13 }
  0x61   :  { %1780 = vmatpush.bf16.msra.mxu3 %v3193_v61  ;;  %v3526_v23 = vld [vmem:[%s6656_s1 + $0x5d0] sm:$0xf0]  ;;  %v4354_v24 = vld [vmem:[%s6656_s1 + $0x6c4] sm:$0xf]  ;;  %v3401_v28 = vor.u32 %v4290_v19, %v3398_v20 }
  0x62   :  { %1739 = vmatpush.bf16.msra.mxu0 %v2793_v5  ;;  %v3654_v25 = vld [vmem:[%s6656_s1 + $0x6d0] sm:$0xf0]  ;;  %v4386_v26 = vld [vmem:[%s6656_s1 + $0x7c4] sm:$0xf]  ;;  %v3529_v29 = vor.u32 %v4322_v21, %v3526_v23 }
  0x63   :  { %1753 = vmatpush.bf16.msra.mxu1 %v2921_v9  ;;  %v3782_v27 = vld [vmem:[%s6656_s1 + $0x7d0] sm:$0xf0]  ;;  %v3657_v30 = vor.u32 %v4354_v24, %v3654_v25  ;;  %v4286_v31 = vld [vmem:[%s6656_s1 + $0x4a4] sm:$0xf] }
  0x64   :  { %1767 = vmatpush.bf16.msra.mxu2 %v3049_v11  ;;  %v3382_v32 = vld [vmem:[%s6656_s1 + $0x4b0] sm:$0xf0]  ;;  %v4318_v33 = vld [vmem:[%s6656_s1 + $0x5a4] sm:$0xf]  ;;  %v3785_v34 = vor.u32 %v4386_v26, %v3782_v27 }
  0x65   :  { %1781 = vmatpush.bf16.msra.mxu3 %v3177_v14  ;;  %v3510_v35 = vld [vmem:[%s6656_s1 + $0x5b0] sm:$0xf0]  ;;  %v4350_v36 = vld [vmem:[%s6656_s1 + $0x6a4] sm:$0xf]  ;;  %1740 = vmatmul.bf16.vlgmr.msra.gmra.mxu0 %v4770_v58  ;;  %v3385_v41 = vor.u32 %v4286_v31, %v3382_v32 }
  0x66   :  { %1788 = vmatpush.bf16.msrb.mxu0 %v3417_v15  ;;  %v3638_v37 = vld [vmem:[%s6656_s1 + $0x6b0] sm:$0xf0]  ;;  %v4382_v38 = vld [vmem:[%s6656_s1 + $0x7a4] sm:$0xf]  ;;  %1754 = vmatmul.bf16.vlgmr.msra.gmra.mxu1 %v4806_v10  ;;  %v3513_v42 = vor.u32 %v4318_v33, %v3510_v35 }
  0x67   :  { %1802 = vmatpush.bf16.msrb.mxu1 %v3545_v16  ;;  %v3766_v40 = vld [vmem:[%s6656_s1 + $0x7b0] sm:$0xf0]  ;;  %1768 = vmatmul.bf16.vlgmr.msra.gmra.mxu2 %v4784_v1  ;;  %v3641_v45 = vor.u32 %v4350_v36, %v3638_v37  ;;  %v4282_v46 = vld [vmem:[%s6656_s1 + $0x484] sm:$0xf] }
  0x68   :  { %1816 = vmatpush.bf16.msrb.mxu2 %v3673_v18  ;;  %1782 = vmatmul.bf16.vlgmr.msra.gmra.mxu3 %v4820_v17  ;;  %v3366_v48 = vld [vmem:[%s6656_s1 + $0x490] sm:$0xf0]  ;;  %v4314_v49 = vld [vmem:[%s6656_s1 + $0x584] sm:$0xf]  ;;  %v3769_v50 = vor.u32 %v4382_v38, %v3766_v40 }
  0x69   :  { %1830 = vmatpush.bf16.msrb.mxu3 %v3801_v22  ;;  %v3494_v51 = vld [vmem:[%s6656_s1 + $0x590] sm:$0xf0]  ;;  %v4346_v52 = vld [vmem:[%s6656_s1 + $0x684] sm:$0xf]  ;;  %v3369_v56 = vor.u32 %v4282_v46, %v3366_v48  ;;  %v2908_v48 = vld [vmem:[%s6656_s1 + $0xe8] sm:$0xf] }
  0x6a   :  { %1789 = vmatpush.bf16.msrb.mxu0 %v3401_v28  ;;  %v3622_v53 = vld [vmem:[%s6656_s1 + $0x690] sm:$0xf0]  ;;  %v4378_v54 = vld [vmem:[%s6656_s1 + $0x784] sm:$0xf]  ;;  %v3497_v57 = vor.u32 %v4314_v49, %v3494_v51  ;;  %v4169_v49 = vld [vmem:[%s6656_s1 + $0xf4] sm:$0xf0] }
  0x6b   :  { %1803 = vmatpush.bf16.msrb.mxu1 %v3529_v29  ;;  %v3750_v55 = vld [vmem:[%s6656_s1 + $0x790] sm:$0xf0]  ;;  %v3625_v59 = vor.u32 %v4346_v52, %v3622_v53  ;;  %v4278_v60 = vld [vmem:[%s6656_s1 + $0x464] sm:$0xf]  ;;  %v4201_v52 = vld [vmem:[%s6656_s1 + $0x1f4] sm:$0xf0] }
  0x6c   :  { %1817 = vmatpush.bf16.msrb.mxu2 %v3657_v30  ;;  %v3350_v61 = vld [vmem:[%s6656_s1 + $0x470] sm:$0xf0]  ;;  %v4310_v62 = vld [vmem:[%s6656_s1 + $0x564] sm:$0xf]  ;;  %v3753_v63 = vor.u32 %v4378_v54, %v3750_v55  ;;  %v3164_v53 = vld [vmem:[%s6656_s1 + $0x2e8] sm:$0xf] }
  0x6d   :  { %1831 = vmatpush.bf16.msrb.mxu3 %v3785_v34  ;;  %v3478_v0 = vld [vmem:[%s6656_s1 + $0x570] sm:$0xf0]  ;;  %v4342_v2 = vld [vmem:[%s6656_s1 + $0x664] sm:$0xf]  ;;  %v3353_v6 = vor.u32 %v4278_v60, %v3350_v61  ;;  %v4233_v54 = vld [vmem:[%s6656_s1 + $0x2f4] sm:$0xf0]  ;;  %v2909_v61 = vor.u32 %v4169_v49, %v2908_v48 }
  0x6e   :  { %1790 = vmatpush.bf16.msrb.mxu0 %v3385_v41  ;;  %v3606_v3 = vld [vmem:[%s6656_s1 + $0x670] sm:$0xf0]  ;;  %v4374_v4 = vld [vmem:[%s6656_s1 + $0x764] sm:$0xf]  ;;  %v3481_v7 = vor.u32 %v4310_v62, %v3478_v0  ;;  %v2892_v0 = vld [vmem:[%s6656_s1 + $0xc8] sm:$0xf] }
  0x6f   :  { %1804 = vmatpush.bf16.msrb.mxu1 %v3513_v42  ;;  %v3734_v5 = vld [vmem:[%s6656_s1 + $0x770] sm:$0xf0]  ;;  %v3609_v8 = vor.u32 %v4342_v2, %v3606_v3  ;;  %v4274_v9 = vld [vmem:[%s6656_s1 + $0x444] sm:$0xf]  ;;  %v4165_v2 = vld [vmem:[%s6656_s1 + $0xd4] sm:$0xf0] }
  0x70   :  { %1818 = vmatpush.bf16.msrb.mxu2 %v3641_v45  ;;  %v3334_v11 = vld [vmem:[%s6656_s1 + $0x450] sm:$0xf0]  ;;  %v4306_v12 = vld [vmem:[%s6656_s1 + $0x544] sm:$0xf]  ;;  %v3737_v13 = vor.u32 %v4374_v4, %v3734_v5  ;;  %v3020_v3 = vld [vmem:[%s6656_s1 + $0x1c8] sm:$0xf] }
  0x71   :  { %1832 = vmatpush.bf16.msrb.mxu3 %v3769_v50  ;;  %v3462_v14 = vld [vmem:[%s6656_s1 + $0x550] sm:$0xf0]  ;;  %v4338_v15 = vld [vmem:[%s6656_s1 + $0x644] sm:$0xf]  ;;  %v3337_v20 = vor.u32 %v4274_v9, %v3334_v11  ;;  %v3036_v50 = vld [vmem:[%s6656_s1 + $0x1e8] sm:$0xf]  ;;  %v2893_v11 = vor.u32 %v4165_v2, %v2892_v0 }
  0x72   :  { %1791 = vmatpush.bf16.msrb.mxu0 %v3369_v56  ;;  %v3590_v16 = vld [vmem:[%s6656_s1 + $0x650] sm:$0xf0]  ;;  %v4370_v18 = vld [vmem:[%s6656_s1 + $0x744] sm:$0xf]  ;;  %v3465_v21 = vor.u32 %v4306_v12, %v3462_v14  ;;  %v3037_v62 = vor.u32 %v4201_v52, %v3036_v50  ;;  %v4197_v5 = vld [vmem:[%s6656_s1 + $0x1d4] sm:$0xf0] }
  0x73   :  { %1805 = vmatpush.bf16.msrb.mxu1 %v3497_v57  ;;  %v3718_v19 = vld [vmem:[%s6656_s1 + $0x750] sm:$0xf0]  ;;  %v3593_v22 = vor.u32 %v4338_v15, %v3590_v16  ;;  %v4270_v23 = vld [vmem:[%s6656_s1 + $0x424] sm:$0xf]  ;;  %v3292_v57 = vld [vmem:[%s6656_s1 + $0x3e8] sm:$0xf]  ;;  %v3021_v12 = vor.u32 %v4197_v5, %v3020_v3 }
  0x74   :  { %1819 = vmatpush.bf16.msrb.mxu2 %v3625_v59  ;;  %v3318_v24 = vld [vmem:[%s6656_s1 + $0x430] sm:$0xf0]  ;;  %v4302_v25 = vld [vmem:[%s6656_s1 + $0x524] sm:$0xf]  ;;  %v3721_v26 = vor.u32 %v4370_v18, %v3718_v19  ;;  %v4265_v59 = vld [vmem:[%s6656_s1 + $0x3f4] sm:$0xf0] }
  0x75   :  { %1833 = vmatpush.bf16.msrb.mxu3 %v3753_v63  ;;  %v3446_v27 = vld [vmem:[%s6656_s1 + $0x530] sm:$0xf0]  ;;  %v4334_v28 = vld [vmem:[%s6656_s1 + $0x624] sm:$0xf]  ;;  %v3321_v32 = vor.u32 %v4270_v23, %v3318_v24  ;;  %v3165_v63 = vor.u32 %v4233_v54, %v3164_v53  ;;  %v3293_v4 = vor.u32 %v4265_v59, %v3292_v57  ;;  %v4261_v9 = vld [vmem:[%s6656_s1 + $0x3d4] sm:$0xf0] }
  0x76   :  { %1792 = vmatpush.bf16.msrb.mxu0 %v3353_v6  ;;  %v3574_v29 = vld [vmem:[%s6656_s1 + $0x630] sm:$0xf0]  ;;  %v4366_v30 = vld [vmem:[%s6656_s1 + $0x724] sm:$0xf]  ;;  %v3449_v35 = vor.u32 %v4302_v25, %v3446_v27  ;;  %v3148_v6 = vld [vmem:[%s6656_s1 + $0x2c8] sm:$0xf] }
  0x77   :  { %1806 = vmatpush.bf16.msrb.mxu1 %v3481_v7  ;;  %v3702_v31 = vld [vmem:[%s6656_s1 + $0x730] sm:$0xf0]  ;;  %v4266_v33 = vld [vmem:[%s6656_s1 + $0x404] sm:$0xf]  ;;  %v3577_v36 = vor.u32 %v4334_v28, %v3574_v29  ;;  %v4229_v7 = vld [vmem:[%s6656_s1 + $0x2d4] sm:$0xf0] }
  0x78   :  { %1820 = vmatpush.bf16.msrb.mxu2 %v3609_v8  ;;  %v3302_v34 = vld [vmem:[%s6656_s1 + $0x410] sm:$0xf0]  ;;  %v4298_v37 = vld [vmem:[%s6656_s1 + $0x504] sm:$0xf]  ;;  %v3705_v41 = vor.u32 %v4366_v30, %v3702_v31  ;;  %v3276_v8 = vld [vmem:[%s6656_s1 + $0x3c8] sm:$0xf] }
  0x79   :  { %1834 = vmatpush.bf16.msrb.mxu3 %v3737_v13  ;;  %v3430_v38 = vld [vmem:[%s6656_s1 + $0x510] sm:$0xf0]  ;;  %v4330_v40 = vld [vmem:[%s6656_s1 + $0x604] sm:$0xf]  ;;  %v3305_v51 = vor.u32 %v4266_v33, %v3302_v34  ;;  %v3149_v13 = vor.u32 %v4229_v7, %v3148_v6  ;;  %v2876_v14 = vld [vmem:[%s6656_s1 + $0xa8] sm:$0xf]  ;;  %v3277_v18 = vor.u32 %v4261_v9, %v3276_v8 }
  0x7a   :  { %1793 = vmatpush.bf16.msrb.mxu0 %v3337_v20  ;;  %v3558_v42 = vld [vmem:[%s6656_s1 + $0x610] sm:$0xf0]  ;;  %v4362_v45 = vld [vmem:[%s6656_s1 + $0x704] sm:$0xf]  ;;  %v3433_v55 = vor.u32 %v4298_v37, %v3430_v38  ;;  %v4161_v15 = vld [vmem:[%s6656_s1 + $0xb4] sm:$0xf0] }
  0x7b   :  { %1807 = vmatpush.bf16.msrb.mxu1 %v3465_v21  ;;  %v3686_v46 = vld [vmem:[%s6656_s1 + $0x710] sm:$0xf0]  ;;  %v3561_v56 = vor.u32 %v4330_v40, %v3558_v42  ;;  %v3004_v16 = vld [vmem:[%s6656_s1 + $0x1a8] sm:$0xf]  ;;  %v4193_v19 = vld [vmem:[%s6656_s1 + $0x1b4] sm:$0xf0]  ;;  %v2877_v24 = vor.u32 %v4161_v15, %v2876_v14 }
  0x7c   :  { %1821 = vmatpush.bf16.msrb.mxu2 %v3593_v22  ;;  %v3689_v60 = vor.u32 %v4362_v45, %v3686_v46  ;;  %v3132_v20 = vld [vmem:[%s6656_s1 + $0x2a8] sm:$0xf]  ;;  %v4225_v21 = vld [vmem:[%s6656_s1 + $0x2b4] sm:$0xf0]  ;;  %v3005_v25 = vor.u32 %v4193_v19, %v3004_v16 }
  0x7d   :  { %1835 = vmatpush.bf16.msrb.mxu3 %v3721_v26  ;;  %v3260_v22 = vld [vmem:[%s6656_s1 + $0x3a8] sm:$0xf]  ;;  %v4257_v23 = vld [vmem:[%s6656_s1 + $0x3b4] sm:$0xf0]  ;;  %v3133_v26 = vor.u32 %v4225_v21, %v3132_v20 }
  0x7e   :  { %1794 = vmatpush.bf16.msrb.mxu0 %v3321_v32  ;;  %v2860_v27 = vld [vmem:[%s6656_s1 + $0x88] sm:$0xf]  ;;  %v4157_v28 = vld [vmem:[%s6656_s1 + $0x94] sm:$0xf0]  ;;  %v3261_v30 = vor.u32 %v4257_v23, %v3260_v22 }
  0x7f   :  { %1808 = vmatpush.bf16.msrb.mxu1 %v3449_v35  ;;  %v2988_v29 = vld [vmem:[%s6656_s1 + $0x188] sm:$0xf]  ;;  %v4189_v31 = vld [vmem:[%s6656_s1 + $0x194] sm:$0xf0] }
  0x80   :  { %1822 = vmatpush.bf16.msrb.mxu2 %v3577_v36  ;;  %v3116_v32 = vld [vmem:[%s6656_s1 + $0x288] sm:$0xf]  ;;  %v4221_v33 = vld [vmem:[%s6656_s1 + $0x294] sm:$0xf0]  ;;  %v2861_v36 = vor.u32 %v4157_v28, %v2860_v27  ;;  %v2989_v37 = vor.u32 %v4189_v31, %v2988_v29 }
  0x81   :  { %1836 = vmatpush.bf16.msrb.mxu3 %v3705_v41  ;;  %v3244_v34 = vld [vmem:[%s6656_s1 + $0x388] sm:$0xf]  ;;  %v4253_v35 = vld [vmem:[%s6656_s1 + $0x394] sm:$0xf0]  ;;  %v3117_v38 = vor.u32 %v4221_v33, %v3116_v32 }
  0x82   :  { %1795 = vmatpush.bf16.msrb.mxu0 %v3305_v51  ;;  %v2844_v40 = vld [vmem:[%s6656_s1 + $0x68] sm:$0xf]  ;;  %v4153_v41 = vld [vmem:[%s6656_s1 + $0x74] sm:$0xf0]  ;;  %v3245_v45 = vor.u32 %v4253_v35, %v3244_v34 }
  0x83   :  { %1809 = vmatpush.bf16.msrb.mxu1 %v3433_v55  ;;  %v2972_v42 = vld [vmem:[%s6656_s1 + $0x168] sm:$0xf]  ;;  %v4185_v46 = vld [vmem:[%s6656_s1 + $0x174] sm:$0xf0]  ;;  %v2845_v52 = vor.u32 %v4153_v41, %v2844_v40 }
  0x84   :  { %1823 = vmatpush.bf16.msrb.mxu2 %v3561_v56  ;;  %v3100_v48 = vld [vmem:[%s6656_s1 + $0x268] sm:$0xf]  ;;  %v4217_v49 = vld [vmem:[%s6656_s1 + $0x274] sm:$0xf0]  ;;  %v2973_v53 = vor.u32 %v4185_v46, %v2972_v42 }
  0x85   :  { %1837 = vmatpush.bf16.msrb.mxu3 %v3689_v60  ;;  %1796 = vmatmul.bf16.vlgmr.msrb.gmra.mxu0 %v4992_v39  ;;  %v3228_v50 = vld [vmem:[%s6656_s1 + $0x368] sm:$0xf]  ;;  %v4249_v51 = vld [vmem:[%s6656_s1 + $0x374] sm:$0xf0]  ;;  %v3101_v54 = vor.u32 %v4217_v49, %v3100_v48 }
  0x86   :  { %1844 = vmatpush.bf16.msra.mxu0 %v2909_v61  ;;  %1810 = vmatmul.bf16.vlgmr.msrb.gmra.mxu1 %v5005_v44  ;;  %v2828_v55 = vld [vmem:[%s6656_s1 + $0x48] sm:$0xf]  ;;  %v4149_v56 = vld [vmem:[%s6656_s1 + $0x54] sm:$0xf0]  ;;  %v3229_v59 = vor.u32 %v4249_v51, %v3228_v50 }
  0x87   :  { %1858 = vmatpush.bf16.msra.mxu1 %v3037_v62  ;;  %1824 = vmatmul.bf16.vlgmr.msrb.gmra.mxu2 %v5003_v43  ;;  %v2956_v57 = vld [vmem:[%s6656_s1 + $0x148] sm:$0xf]  ;;  %v4181_v60 = vld [vmem:[%s6656_s1 + $0x154] sm:$0xf0]  ;;  %v2829_v2 = vor.u32 %v4149_v56, %v2828_v55 }
  0x88   :  { %1872 = vmatpush.bf16.msra.mxu2 %v3165_v63  ;;  %1838 = vmatmul.bf16.vlgmr.msrb.gmra.mxu3 %v5013_v47  ;;  %v3084_v61 = vld [vmem:[%s6656_s1 + $0x248] sm:$0xf]  ;;  %v4213_v62 = vld [vmem:[%s6656_s1 + $0x254] sm:$0xf0]  ;;  %v2957_v3 = vor.u32 %v4181_v60, %v2956_v57 }
  0x89   :  { %1886 = vmatpush.bf16.msra.mxu3 %v3293_v4  ;;  %v3212_v63 = vld [vmem:[%s6656_s1 + $0x348] sm:$0xf]  ;;  %v4245_v0 = vld [vmem:[%s6656_s1 + $0x354] sm:$0xf0]  ;;  %v3085_v4 = vor.u32 %v4213_v62, %v3084_v61 }
  0x8a   :  { %1845 = vmatpush.bf16.msra.mxu0 %v2893_v11  ;;  %v2812_v5 = vld [vmem:[%s6656_s1 + $0x28] sm:$0xf]  ;;  %v4145_v6 = vld [vmem:[%s6656_s1 + $0x34] sm:$0xf0]  ;;  %v3213_v8 = vor.u32 %v4245_v0, %v3212_v63 }
  0x8b   :  { %1859 = vmatpush.bf16.msra.mxu1 %v3021_v12  ;;  %v2940_v7 = vld [vmem:[%s6656_s1 + $0x128] sm:$0xf]  ;;  %v4177_v9 = vld [vmem:[%s6656_s1 + $0x134] sm:$0xf0]  ;;  %v2813_v15 = vor.u32 %v4145_v6, %v2812_v5 }
  0x8c   :  { %1873 = vmatpush.bf16.msra.mxu2 %v3149_v13  ;;  %v3068_v11 = vld [vmem:[%s6656_s1 + $0x228] sm:$0xf]  ;;  %v4209_v12 = vld [vmem:[%s6656_s1 + $0x234] sm:$0xf0]  ;;  %v2941_v19 = vor.u32 %v4177_v9, %v2940_v7 }
  0x8d   :  { %1887 = vmatpush.bf16.msra.mxu3 %v3277_v18  ;;  %v3196_v13 = vld [vmem:[%s6656_s1 + $0x328] sm:$0xf]  ;;  %v4241_v14 = vld [vmem:[%s6656_s1 + $0x334] sm:$0xf0]  ;;  %v3069_v20 = vor.u32 %v4209_v12, %v3068_v11 }
  0x8e   :  { %1846 = vmatpush.bf16.msra.mxu0 %v2877_v24  ;;  %v2796_v16 = vld [vmem:[%s6656_s1 + $0x8] sm:$0xf]  ;;  %v4141_v18 = vld [vmem:[%s6656_s1 + $0x14] sm:$0xf0]  ;;  %v3197_v24 = vor.u32 %v4241_v14, %v3196_v13 }
  0x8f   :  { %1860 = vmatpush.bf16.msra.mxu1 %v3005_v25  ;;  %v2924_v21 = vld [vmem:[%s6656_s1 + $0x108] sm:$0xf]  ;;  %v4173_v22 = vld [vmem:[%s6656_s1 + $0x114] sm:$0xf0]  ;;  %v2797_v31 = vor.u32 %v4141_v18, %v2796_v16 }
  0x90   :  { %1874 = vmatpush.bf16.msra.mxu2 %v3133_v26  ;;  %v3052_v23 = vld [vmem:[%s6656_s1 + $0x208] sm:$0xf]  ;;  %v4205_v25 = vld [vmem:[%s6656_s1 + $0x214] sm:$0xf0]  ;;  %v2925_v35 = vor.u32 %v4173_v22, %v2924_v21 }
  0x91   :  { %1888 = vmatpush.bf16.msra.mxu3 %v3261_v30  ;;  %v3180_v26 = vld [vmem:[%s6656_s1 + $0x308] sm:$0xf]  ;;  %v4237_v27 = vld [vmem:[%s6656_s1 + $0x314] sm:$0xf0] }
  0x92   :  { %1847 = vmatpush.bf16.msra.mxu0 %v2861_v36  ;;  %v3420_v28 = vld [vmem:[%s6656_s1 + $0x4e8] sm:$0xf]  ;;  %v4297_v29 = vld [vmem:[%s6656_s1 + $0x4f4] sm:$0xf0]  ;;  %v3053_v36 = vor.u32 %v4205_v25, %v3052_v23  ;;  %v3181_v40 = vor.u32 %v4237_v27, %v3180_v26 }
  0x93   :  { %1861 = vmatpush.bf16.msra.mxu1 %v2989_v37  ;;  %v3548_v30 = vld [vmem:[%s6656_s1 + $0x5e8] sm:$0xf]  ;;  %v4329_v32 = vld [vmem:[%s6656_s1 + $0x5f4] sm:$0xf0]  ;;  %v3421_v41 = vor.u32 %v4297_v29, %v3420_v28 }
  0x94   :  { %1875 = vmatpush.bf16.msra.mxu2 %v3117_v38  ;;  %v3676_v33 = vld [vmem:[%s6656_s1 + $0x6e8] sm:$0xf]  ;;  %v4361_v34 = vld [vmem:[%s6656_s1 + $0x6f4] sm:$0xf0]  ;;  %v3549_v42 = vor.u32 %v4329_v32, %v3548_v30 }
  0x95   :  { %1889 = vmatpush.bf16.msra.mxu3 %v3245_v45  ;;  %v3804_v37 = vld [vmem:[%s6656_s1 + $0x7e8] sm:$0xf]  ;;  %v4393_v38 = vld [vmem:[%s6656_s1 + $0x7f4] sm:$0xf0]  ;;  %v3677_v45 = vor.u32 %v4361_v34, %v3676_v33 }
  0x96   :  { %1848 = vmatpush.bf16.msra.mxu0 %v2845_v52  ;;  %v3404_v46 = vld [vmem:[%s6656_s1 + $0x4c8] sm:$0xf]  ;;  %v4293_v48 = vld [vmem:[%s6656_s1 + $0x4d4] sm:$0xf0]  ;;  %v3805_v50 = vor.u32 %v4393_v38, %v3804_v37 }
  0x97   :  { %1862 = vmatpush.bf16.msra.mxu1 %v2973_v53  ;;  %v3532_v49 = vld [vmem:[%s6656_s1 + $0x5c8] sm:$0xf]  ;;  %v4325_v51 = vld [vmem:[%s6656_s1 + $0x5d4] sm:$0xf0]  ;;  %v3405_v56 = vor.u32 %v4293_v48, %v3404_v46 }
  0x98   :  { %1876 = vmatpush.bf16.msra.mxu2 %v3101_v54  ;;  %v3660_v52 = vld [vmem:[%s6656_s1 + $0x6c8] sm:$0xf]  ;;  %v4357_v53 = vld [vmem:[%s6656_s1 + $0x6d4] sm:$0xf0]  ;;  %v3533_v57 = vor.u32 %v4325_v51, %v3532_v49 }
  0x99   :  { %1890 = vmatpush.bf16.msra.mxu3 %v3229_v59  ;;  %v3788_v54 = vld [vmem:[%s6656_s1 + $0x7c8] sm:$0xf]  ;;  %v4389_v55 = vld [vmem:[%s6656_s1 + $0x7d4] sm:$0xf0]  ;;  %v3661_v59 = vor.u32 %v4357_v53, %v3660_v52 }
  0x9a   :  { %1849 = vmatpush.bf16.msra.mxu0 %v2829_v2  ;;  %v3388_v60 = vld [vmem:[%s6656_s1 + $0x4a8] sm:$0xf]  ;;  %v4289_v61 = vld [vmem:[%s6656_s1 + $0x4b4] sm:$0xf0]  ;;  %v3789_v63 = vor.u32 %v4389_v55, %v3788_v54 }
  0x9b   :  { %1863 = vmatpush.bf16.msra.mxu1 %v2957_v3  ;;  %v3516_v62 = vld [vmem:[%s6656_s1 + $0x5a8] sm:$0xf]  ;;  %v4321_v0 = vld [vmem:[%s6656_s1 + $0x5b4] sm:$0xf0]  ;;  %v3389_v6 = vor.u32 %v4289_v61, %v3388_v60 }
  0x9c   :  { %1877 = vmatpush.bf16.msra.mxu2 %v3085_v4  ;;  %v3644_v2 = vld [vmem:[%s6656_s1 + $0x6a8] sm:$0xf]  ;;  %v4353_v3 = vld [vmem:[%s6656_s1 + $0x6b4] sm:$0xf0]  ;;  %v3517_v7 = vor.u32 %v4321_v0, %v3516_v62 }
  0x9d   :  { %1891 = vmatpush.bf16.msra.mxu3 %v3213_v8  ;;  %v3772_v4 = vld [vmem:[%s6656_s1 + $0x7a8] sm:$0xf]  ;;  %v4385_v5 = vld [vmem:[%s6656_s1 + $0x7b4] sm:$0xf0]  ;;  %v3645_v8 = vor.u32 %v4353_v3, %v3644_v2 }
  0x9e   :  { %1850 = vmatpush.bf16.msra.mxu0 %v2813_v15  ;;  %v3372_v9 = vld [vmem:[%s6656_s1 + $0x488] sm:$0xf]  ;;  %v4285_v11 = vld [vmem:[%s6656_s1 + $0x494] sm:$0xf0]  ;;  %v3773_v13 = vor.u32 %v4385_v5, %v3772_v4 }
  0x9f   :  { %1864 = vmatpush.bf16.msra.mxu1 %v2941_v19  ;;  %v3500_v12 = vld [vmem:[%s6656_s1 + $0x588] sm:$0xf]  ;;  %v4317_v14 = vld [vmem:[%s6656_s1 + $0x594] sm:$0xf0] }
  0xa0   :  { %1878 = vmatpush.bf16.msra.mxu2 %v3069_v20  ;;  %v3628_v15 = vld [vmem:[%s6656_s1 + $0x688] sm:$0xf]  ;;  %v4349_v16 = vld [vmem:[%s6656_s1 + $0x694] sm:$0xf0]  ;;  %v3373_v20 = vor.u32 %v4285_v11, %v3372_v9  ;;  %v3501_v21 = vor.u32 %v4317_v14, %v3500_v12  ;;  %v4167_v11 = vld [vmem:[%s6656_s1 + $0xec] sm:$0xf] }
  0xa1   :  { %1892 = vmatpush.bf16.msra.mxu3 %v3197_v24  ;;  %v3756_v18 = vld [vmem:[%s6656_s1 + $0x788] sm:$0xf]  ;;  %v4381_v19 = vld [vmem:[%s6656_s1 + $0x794] sm:$0xf0]  ;;  %v3629_v22 = vor.u32 %v4349_v16, %v3628_v15  ;;  %v2910_v12 = vld [vmem:[%s6656_s1 + $0xf8] sm:$0xf0] }
  0xa2   :  { %1851 = vmatpush.bf16.msra.mxu0 %v2797_v31  ;;  %v3356_v23 = vld [vmem:[%s6656_s1 + $0x468] sm:$0xf]  ;;  %v4281_v24 = vld [vmem:[%s6656_s1 + $0x474] sm:$0xf0]  ;;  %v3757_v26 = vor.u32 %v4381_v19, %v3756_v18  ;;  %v3038_v15 = vld [vmem:[%s6656_s1 + $0x1f8] sm:$0xf0] }
  0xa3   :  { %1865 = vmatpush.bf16.msra.mxu1 %v2925_v35  ;;  %v3484_v25 = vld [vmem:[%s6656_s1 + $0x568] sm:$0xf]  ;;  %v4313_v27 = vld [vmem:[%s6656_s1 + $0x574] sm:$0xf0]  ;;  %v3357_v32 = vor.u32 %v4281_v24, %v3356_v23  ;;  %v4231_v16 = vld [vmem:[%s6656_s1 + $0x2ec] sm:$0xf]  ;;  %v2913_v24 = vor.u32 %v4167_v11, %v2910_v12 }
  0xa4   :  { %1879 = vmatpush.bf16.msra.mxu2 %v3053_v36  ;;  %v3612_v28 = vld [vmem:[%s6656_s1 + $0x668] sm:$0xf]  ;;  %v4345_v29 = vld [vmem:[%s6656_s1 + $0x674] sm:$0xf0]  ;;  %v3485_v33 = vor.u32 %v4313_v27, %v3484_v25  ;;  %v3166_v18 = vld [vmem:[%s6656_s1 + $0x2f8] sm:$0xf0] }
  0xa5   :  { %1893 = vmatpush.bf16.msra.mxu3 %v3181_v40  ;;  %1852 = vmatmul.bf16.vlgmr.msra.gmra.mxu0 %v4770_v58  ;;  %v3740_v30 = vld [vmem:[%s6656_s1 + $0x768] sm:$0xf]  ;;  %v4377_v31 = vld [vmem:[%s6656_s1 + $0x774] sm:$0xf0]  ;;  %v3613_v34 = vor.u32 %v4345_v29, %v3612_v28  ;;  %v4163_v27 = vld [vmem:[%s6656_s1 + $0xcc] sm:$0xf] }
  0xa6   :  { %1900 = vmatpush.bf16.msrb.mxu0 %v3421_v41  ;;  %1866 = vmatmul.bf16.vlgmr.msra.gmra.mxu1 %v4806_v10  ;;  %v3340_v35 = vld [vmem:[%s6656_s1 + $0x448] sm:$0xf]  ;;  %v4277_v36 = vld [vmem:[%s6656_s1 + $0x454] sm:$0xf0]  ;;  %v3741_v38 = vor.u32 %v4377_v31, %v3740_v30  ;;  %v2894_v28 = vld [vmem:[%s6656_s1 + $0xd8] sm:$0xf0] }
  0xa7   :  { %1914 = vmatpush.bf16.msrb.mxu1 %v3549_v42  ;;  %1880 = vmatmul.bf16.vlgmr.msra.gmra.mxu2 %v4784_v1  ;;  %v3468_v37 = vld [vmem:[%s6656_s1 + $0x548] sm:$0xf]  ;;  %v4309_v40 = vld [vmem:[%s6656_s1 + $0x554] sm:$0xf0]  ;;  %v3341_v48 = vor.u32 %v4277_v36, %v3340_v35  ;;  %v4195_v29 = vld [vmem:[%s6656_s1 + $0x1cc] sm:$0xf]  ;;  %v2897_v36 = vor.u32 %v4163_v27, %v2894_v28 }
  0xa8   :  { %1928 = vmatpush.bf16.msrb.mxu2 %v3677_v45  ;;  %1894 = vmatmul.bf16.vlgmr.msra.gmra.mxu3 %v4820_v17  ;;  %v3596_v41 = vld [vmem:[%s6656_s1 + $0x648] sm:$0xf]  ;;  %v4341_v42 = vld [vmem:[%s6656_s1 + $0x654] sm:$0xf0]  ;;  %v3469_v49 = vor.u32 %v4309_v40, %v3468_v37  ;;  %v3022_v31 = vld [vmem:[%s6656_s1 + $0x1d8] sm:$0xf0] }
  0xa9   :  { %1942 = vmatpush.bf16.msrb.mxu3 %v3805_v50  ;;  %v3724_v45 = vld [vmem:[%s6656_s1 + $0x748] sm:$0xf]  ;;  %v4373_v46 = vld [vmem:[%s6656_s1 + $0x754] sm:$0xf0]  ;;  %v3597_v50 = vor.u32 %v4341_v42, %v3596_v41  ;;  %v3278_v35 = vld [vmem:[%s6656_s1 + $0x3d8] sm:$0xf0]  ;;  %v3025_v37 = vor.u32 %v4195_v29, %v3022_v31 }
  0xaa   :  { %1901 = vmatpush.bf16.msrb.mxu0 %v3405_v56  ;;  %v3324_v51 = vld [vmem:[%s6656_s1 + $0x428] sm:$0xf]  ;;  %v4273_v52 = vld [vmem:[%s6656_s1 + $0x434] sm:$0xf0]  ;;  %v3725_v54 = vor.u32 %v4373_v46, %v3724_v45  ;;  %v4159_v40 = vld [vmem:[%s6656_s1 + $0xac] sm:$0xf] }
  0xab   :  { %1915 = vmatpush.bf16.msrb.mxu1 %v3533_v57  ;;  %v3452_v53 = vld [vmem:[%s6656_s1 + $0x528] sm:$0xf]  ;;  %v4305_v55 = vld [vmem:[%s6656_s1 + $0x534] sm:$0xf0]  ;;  %v3325_v61 = vor.u32 %v4273_v52, %v3324_v51  ;;  %v2878_v41 = vld [vmem:[%s6656_s1 + $0xb8] sm:$0xf0] }
  0xac   :  { %1929 = vmatpush.bf16.msrb.mxu2 %v3661_v59  ;;  %v3580_v56 = vld [vmem:[%s6656_s1 + $0x628] sm:$0xf]  ;;  %v4337_v57 = vld [vmem:[%s6656_s1 + $0x634] sm:$0xf0]  ;;  %v3453_v0 = vor.u32 %v4305_v55, %v3452_v53  ;;  %v4191_v42 = vld [vmem:[%s6656_s1 + $0x1ac] sm:$0xf]  ;;  %v2881_v52 = vor.u32 %v4159_v40, %v2878_v41 }
  0xad   :  { %1943 = vmatpush.bf16.msrb.mxu3 %v3789_v63  ;;  %v3708_v59 = vld [vmem:[%s6656_s1 + $0x728] sm:$0xf]  ;;  %v4369_v60 = vld [vmem:[%s6656_s1 + $0x734] sm:$0xf0]  ;;  %v3581_v2 = vor.u32 %v4337_v57, %v3580_v56  ;;  %v3006_v46 = vld [vmem:[%s6656_s1 + $0x1b8] sm:$0xf0] }
  0xae   :  { %1902 = vmatpush.bf16.msrb.mxu0 %v3389_v6  ;;  %v3308_v62 = vld [vmem:[%s6656_s1 + $0x408] sm:$0xf]  ;;  %v4269_v63 = vld [vmem:[%s6656_s1 + $0x414] sm:$0xf0]  ;;  %v3709_v6 = vor.u32 %v4369_v60, %v3708_v59  ;;  %v3262_v51 = vld [vmem:[%s6656_s1 + $0x3b8] sm:$0xf0]  ;;  %v3009_v53 = vor.u32 %v4191_v42, %v3006_v46 }
  0xaf   :  { %1916 = vmatpush.bf16.msrb.mxu1 %v3517_v7  ;;  %v3436_v3 = vld [vmem:[%s6656_s1 + $0x508] sm:$0xf]  ;;  %v4301_v4 = vld [vmem:[%s6656_s1 + $0x514] sm:$0xf0]  ;;  %v3309_v14 = vor.u32 %v4269_v63, %v3308_v62  ;;  %v4155_v55 = vld [vmem:[%s6656_s1 + $0x8c] sm:$0xf] }
  0xb0   :  { %1930 = vmatpush.bf16.msrb.mxu2 %v3645_v8  ;;  %v3564_v5 = vld [vmem:[%s6656_s1 + $0x608] sm:$0xf]  ;;  %v4333_v7 = vld [vmem:[%s6656_s1 + $0x614] sm:$0xf0]  ;;  %v3437_v19 = vor.u32 %v4301_v4, %v3436_v3  ;;  %v2862_v56 = vld [vmem:[%s6656_s1 + $0x98] sm:$0xf0]  ;;  %v5851_v3 = vpop.f32.mrf.mxu0 }
  0xb1   :  { %1944 = vmatpush.bf16.msrb.mxu3 %v3773_v13  ;;  %v3692_v8 = vld [vmem:[%s6656_s1 + $0x708] sm:$0xf]  ;;  %v4365_v9 = vld [vmem:[%s6656_s1 + $0x714] sm:$0xf0]  ;;  %v4199_v13 = vld [vmem:[%s6656_s1 + $0x1ec] sm:$0xf] }
  0xb2   :  { %1903 = vmatpush.bf16.msrb.mxu0 %v3373_v20  ;;  %v3565_v20 = vor.u32 %v4333_v7, %v3564_v5  ;;  %v3693_v23 = vor.u32 %v4365_v9, %v3692_v8  ;;  %v3041_v25 = vor.u32 %v4199_v13, %v3038_v15  ;;  %v4187_v57 = vld [vmem:[%s6656_s1 + $0x18c] sm:$0xf]  ;;  %v2990_v60 = vld [vmem:[%s6656_s1 + $0x198] sm:$0xf0]  ;;  %v5862_v9 = vpop.f32.mrf.mxu1 }
  0xb3   :  { %1917 = vmatpush.bf16.msrb.mxu1 %v3501_v21  ;;  %v4263_v21 = vld [vmem:[%s6656_s1 + $0x3ec] sm:$0xf]  ;;  %v3118_v62 = vld [vmem:[%s6656_s1 + $0x298] sm:$0xf0]  ;;  %v2993_v4 = vor.u32 %v4187_v57, %v2990_v60 }
  0xb4   :  { %1931 = vmatpush.bf16.msrb.mxu2 %v3629_v22  ;;  %v3294_v22 = vld [vmem:[%s6656_s1 + $0x3f8] sm:$0xf0]  ;;  %v4251_v63 = vld [vmem:[%s6656_s1 + $0x38c] sm:$0xf] }
  0xb5   :  { %1945 = vmatpush.bf16.msrb.mxu3 %v3757_v26  ;;  %v3169_v26 = vor.u32 %v4231_v16, %v3166_v18  ;;  %v3297_v30 = vor.u32 %v4263_v21, %v3294_v22  ;;  %v2846_v7 = vld [vmem:[%s6656_s1 + $0x78] sm:$0xf0]  ;;  %v4183_v8 = vld [vmem:[%s6656_s1 + $0x16c] sm:$0xf] }
  0xb6   :  { %1904 = vmatpush.bf16.msrb.mxu0 %v3357_v32  ;;  %v4227_v32 = vld [vmem:[%s6656_s1 + $0x2cc] sm:$0xf]  ;;  %v2974_v12 = vld [vmem:[%s6656_s1 + $0x178] sm:$0xf0] }
  0xb7   :  { %1918 = vmatpush.bf16.msrb.mxu1 %v3485_v33  ;;  %v3150_v33 = vld [vmem:[%s6656_s1 + $0x2d8] sm:$0xf0]  ;;  %v4215_v13 = vld [vmem:[%s6656_s1 + $0x26c] sm:$0xf] }
  0xb8   :  { %1932 = vmatpush.bf16.msrb.mxu2 %v3613_v34  ;;  %v4259_v34 = vld [vmem:[%s6656_s1 + $0x3cc] sm:$0xf]  ;;  %v3230_v16 = vld [vmem:[%s6656_s1 + $0x378] sm:$0xf0] }
  0xb9   :  { %1946 = vmatpush.bf16.msrb.mxu3 %v3741_v38  ;;  %v3153_v38 = vor.u32 %v4227_v32, %v3150_v33  ;;  %v3281_v45 = vor.u32 %v4259_v34, %v3278_v35  ;;  %v4247_v15 = vld [vmem:[%s6656_s1 + $0x36c] sm:$0xf]  ;;  %v2830_v22 = vld [vmem:[%s6656_s1 + $0x58] sm:$0xf0]  ;;  %v5905_v32 = vpop.f32.mrf.mxu3 }
  0xba   :  { %1905 = vmatpush.bf16.msrb.mxu0 %v3341_v48  ;;  %v4223_v48 = vld [vmem:[%s6656_s1 + $0x2ac] sm:$0xf]  ;;  %v3086_v27 = vld [vmem:[%s6656_s1 + $0x258] sm:$0xf0] }
  0xbb   :  { %1919 = vmatpush.bf16.msrb.mxu1 %v3469_v49  ;;  %v3134_v49 = vld [vmem:[%s6656_s1 + $0x2b8] sm:$0xf0]  ;;  %v4147_v21 = vld [vmem:[%s6656_s1 + $0x4c] sm:$0xf] }
  0xbc   :  { %1933 = vmatpush.bf16.msrb.mxu2 %v3597_v50  ;;  %v4255_v50 = vld [vmem:[%s6656_s1 + $0x3ac] sm:$0xf]  ;;  %v3214_v29 = vld [vmem:[%s6656_s1 + $0x358] sm:$0xf0]  ;;  %v2833_v31 = vor.u32 %v4147_v21, %v2830_v22 }
  0xbd   :  { %1947 = vmatpush.bf16.msrb.mxu3 %v3725_v54  ;;  %v3137_v54 = vor.u32 %v4223_v48, %v3134_v49  ;;  %v3265_v59 = vor.u32 %v4255_v50, %v3262_v51  ;;  %v4243_v28 = vld [vmem:[%s6656_s1 + $0x34c] sm:$0xf]  ;;  %v2942_v40 = vld [vmem:[%s6656_s1 + $0x138] sm:$0xf0]  ;;  %v5933_v49 = vpop.f32.mrf.mxu1 }
  0xbe   :  { %1906 = vmatpush.bf16.msrb.mxu0 %v3325_v61  ;;  %v4219_v61 = vld [vmem:[%s6656_s1 + $0x28c] sm:$0xf]  ;;  %v3070_v42 = vld [vmem:[%s6656_s1 + $0x238] sm:$0xf0] }
  0xbf   :  { %1920 = vmatpush.bf16.msrb.mxu1 %v3453_v0  ;;  %v3246_v0 = vld [vmem:[%s6656_s1 + $0x398] sm:$0xf0]  ;;  %v3121_v5 = vor.u32 %v4219_v61, %v3118_v62  ;;  %v4143_v35 = vld [vmem:[%s6656_s1 + $0x2c] sm:$0xf] }
  0xc0   :  { %1934 = vmatpush.bf16.msrb.mxu2 %v3581_v2  ;;  %v2865_v2 = vor.u32 %v4155_v55, %v2862_v56  ;;  %v3249_v11 = vor.u32 %v4251_v63, %v3246_v0  ;;  %v4207_v41 = vld [vmem:[%s6656_s1 + $0x22c] sm:$0xf]  ;;  %v3198_v48 = vld [vmem:[%s6656_s1 + $0x338] sm:$0xf0] }
  0xc1   :  { %1948 = vmatpush.bf16.msrb.mxu3 %v3709_v6  ;;  %v4151_v6 = vld [vmem:[%s6656_s1 + $0x6c] sm:$0xf]  ;;  %v2926_v56 = vld [vmem:[%s6656_s1 + $0x118] sm:$0xf0] }
  0xc2   :  { %1907 = vmatpush.bf16.msrb.mxu0 %v3309_v14  ;;  %v3102_v14 = vld [vmem:[%s6656_s1 + $0x278] sm:$0xf0]  ;;  %v2849_v18 = vor.u32 %v4151_v6, %v2846_v7  ;;  %v4239_v46 = vld [vmem:[%s6656_s1 + $0x32c] sm:$0xf] }
  0xc3   :  { %1921 = vmatpush.bf16.msrb.mxu1 %v3437_v19  ;;  %v2977_v19 = vor.u32 %v4183_v8, %v2974_v12  ;;  %v4139_v51 = vld [vmem:[%s6656_s1 + $0xc] sm:$0xf]  ;;  %v3054_v60 = vld [vmem:[%s6656_s1 + $0x218] sm:$0xf0] }
  0xc4   :  { %1935 = vmatpush.bf16.msrb.mxu2 %v3565_v20  ;;  %v3105_v20 = vor.u32 %v4215_v13, %v3102_v14  ;;  %v4171_v55 = vld [vmem:[%s6656_s1 + $0x10c] sm:$0xf]  ;;  %v3182_v62 = vld [vmem:[%s6656_s1 + $0x318] sm:$0xf0] }
  0xc5   :  { %1949 = vmatpush.bf16.msrb.mxu3 %v3693_v23  ;;  %1908 = vmatmul.bf16.vlgmr.msrb.gmra.mxu0 %v4992_v39  ;;  %v4179_v23 = vld [vmem:[%s6656_s1 + $0x14c] sm:$0xf]  ;;  %v3422_v0 = vld [vmem:[%s6656_s1 + $0x4f8] sm:$0xf0]  ;;  %v2929_v8 = vor.u32 %v4171_v55, %v2926_v56 }
  0xc6   :  { %1956 = vmatpush.bf16.msra.mxu0 %v2913_v24  ;;  %1922 = vmatmul.bf16.vlgmr.msrb.gmra.mxu1 %v5005_v44  ;;  %v3233_v24 = vor.u32 %v4247_v15, %v3230_v16  ;;  %v4203_v57 = vld [vmem:[%s6656_s1 + $0x20c] sm:$0xf]  ;;  %v3678_v7 = vld [vmem:[%s6656_s1 + $0x6f8] sm:$0xf0] }
  0xc7   :  { %1970 = vmatpush.bf16.msra.mxu1 %v3041_v25  ;;  %1936 = vmatmul.bf16.vlgmr.msrb.gmra.mxu2 %v5003_v43  ;;  %v2958_v25 = vld [vmem:[%s6656_s1 + $0x158] sm:$0xf0]  ;;  %v4235_v61 = vld [vmem:[%s6656_s1 + $0x30c] sm:$0xf] }
  0xc8   :  { %1984 = vmatpush.bf16.msra.mxu2 %v3169_v26  ;;  %1950 = vmatmul.bf16.vlgmr.msrb.gmra.mxu3 %v5013_v47  ;;  %v4211_v26 = vld [vmem:[%s6656_s1 + $0x24c] sm:$0xf]  ;;  %v2961_v33 = vor.u32 %v4179_v23, %v2958_v25  ;;  %v3806_v13 = vld [vmem:[%s6656_s1 + $0x7f8] sm:$0xf0]  ;;  %v3185_v15 = vor.u32 %v4235_v61, %v3182_v62 }
  0xc9   :  { %1998 = vmatpush.bf16.msra.mxu3 %v3297_v30  ;;  %v5903_v30 = vpop.f32.mrf.mxu2  ;;  %v3089_v34 = vor.u32 %v4211_v26, %v3086_v27  ;;  %v4295_v63 = vld [vmem:[%s6656_s1 + $0x4ec] sm:$0xf]  ;;  %v3406_v22 = vld [vmem:[%s6656_s1 + $0x4d8] sm:$0xf0] }
  0xca   :  { %1957 = vmatpush.bf16.msra.mxu0 %v2897_v36  ;;  %v2814_v36 = vld [vmem:[%s6656_s1 + $0x38] sm:$0xf0]  ;;  %v4359_v6 = vld [vmem:[%s6656_s1 + $0x6ec] sm:$0xf]  ;;  %v3425_v16 = vor.u32 %v4295_v63, %v3422_v0 }
  0xcb   :  { %1971 = vmatpush.bf16.msra.mxu1 %v3025_v37  ;;  %v4175_v37 = vld [vmem:[%s6656_s1 + $0x12c] sm:$0xf]  ;;  %v2817_v50 = vor.u32 %v4143_v35, %v2814_v36  ;;  %v3534_v25 = vld [vmem:[%s6656_s1 + $0x5d8] sm:$0xf0] }
  0xcc   :  { %1985 = vmatpush.bf16.msra.mxu2 %v3153_v38  ;;  %v3217_v38 = vor.u32 %v4243_v28, %v3214_v29  ;;  %v4391_v12 = vld [vmem:[%s6656_s1 + $0x7ec] sm:$0xf]  ;;  %v3662_v27 = vld [vmem:[%s6656_s1 + $0x6d8] sm:$0xf0] }
  0xcd   :  { %1999 = vmatpush.bf16.msra.mxu3 %v3281_v45  ;;  %v5925_v45 = vpop.f32.mrf.mxu0  ;;  %v4291_v21 = vld [vmem:[%s6656_s1 + $0x4cc] sm:$0xf]  ;;  %v3374_v55 = vld [vmem:[%s6656_s1 + $0x498] sm:$0xf0] }
  0xce   :  { %1958 = vmatpush.bf16.msra.mxu0 %v2881_v52  ;;  %v2798_v52 = vld [vmem:[%s6656_s1 + $0x18] sm:$0xf0]  ;;  %v4323_v23 = vld [vmem:[%s6656_s1 + $0x5cc] sm:$0xf] }
  0xcf   :  { %1972 = vmatpush.bf16.msra.mxu1 %v3009_v53  ;;  %v2945_v53 = vor.u32 %v4175_v37, %v2942_v40  ;;  %v4355_v26 = vld [vmem:[%s6656_s1 + $0x6cc] sm:$0xf]  ;;  %v3537_v35 = vor.u32 %v4323_v23, %v3534_v25  ;;  %v3502_v56 = vld [vmem:[%s6656_s1 + $0x598] sm:$0xf0] }
  0xd0   :  { %1986 = vmatpush.bf16.msra.mxu2 %v3137_v54  ;;  %v3073_v54 = vor.u32 %v4207_v41, %v3070_v42  ;;  %v4387_v29 = vld [vmem:[%s6656_s1 + $0x7cc] sm:$0xf]  ;;  %v3665_v36 = vor.u32 %v4355_v26, %v3662_v27  ;;  %v3518_v42 = vld [vmem:[%s6656_s1 + $0x5b8] sm:$0xf0] }
  0xd1   :  { %2000 = vmatpush.bf16.msra.mxu3 %v3265_v59  ;;  %v3201_v59 = vor.u32 %v4239_v46, %v3198_v48  ;;  %v5983_v14 = vpop.f32.mrf.mxu2  ;;  %v4287_v37 = vld [vmem:[%s6656_s1 + $0x4ac] sm:$0xf]  ;;  %v3646_v48 = vld [vmem:[%s6656_s1 + $0x6b8] sm:$0xf0] }
  0xd2   :  { %1959 = vmatpush.bf16.msra.mxu0 %v2865_v2  ;;  %v4327_v2 = vld [vmem:[%s6656_s1 + $0x5ec] sm:$0xf]  ;;  %v3758_v62 = vld [vmem:[%s6656_s1 + $0x798] sm:$0xf0] }
  0xd3   :  { %1973 = vmatpush.bf16.msra.mxu1 %v2993_v4  ;;  %v2801_v4 = vor.u32 %v4139_v51, %v2798_v52  ;;  %v4319_v40 = vld [vmem:[%s6656_s1 + $0x5ac] sm:$0xf]  ;;  %v3342_v25 = vld [vmem:[%s6656_s1 + $0x458] sm:$0xf0] }
  0xd4   :  { %1987 = vmatpush.bf16.msra.mxu2 %v3121_v5  ;;  %v3550_v5 = vld [vmem:[%s6656_s1 + $0x5f8] sm:$0xf0]  ;;  %v4351_v46 = vld [vmem:[%s6656_s1 + $0x6ac] sm:$0xf]  ;;  %v3521_v52 = vor.u32 %v4319_v40, %v3518_v42 }
  0xd5   :  { %2001 = vmatpush.bf16.msra.mxu3 %v3249_v11  ;;  %v3057_v11 = vor.u32 %v4203_v57, %v3054_v60  ;;  %v6005_v28 = vpop.f32.mrf.mxu0  ;;  %v4347_v57 = vld [vmem:[%s6656_s1 + $0x68c] sm:$0xf] }
  0xd6   :  { %1960 = vmatpush.bf16.msra.mxu0 %v2849_v18  ;;  %v5985_v18 = vpop.f32.mrf.mxu3  ;;  %v4379_v61 = vld [vmem:[%s6656_s1 + $0x78c] sm:$0xf] }
  0xd7   :  { %1974 = vmatpush.bf16.msra.mxu1 %v2977_v19  ;;  %v3553_v19 = vor.u32 %v4327_v2, %v3550_v5  ;;  %v4279_v5 = vld [vmem:[%s6656_s1 + $0x46c] sm:$0xf] }
  0xd8   :  { %1988 = vmatpush.bf16.msra.mxu2 %v3105_v20  ;;  %v3681_v20 = vor.u32 %v4359_v6, %v3678_v7  ;;  %v3358_v6 = vld [vmem:[%s6656_s1 + $0x478] sm:$0xf0]  ;;  %v4311_v7 = vld [vmem:[%s6656_s1 + $0x56c] sm:$0xf] }
  0xd9   :  { %2002 = vmatpush.bf16.msra.mxu3 %v3233_v24  ;;  %v3809_v24 = vor.u32 %v4391_v12, %v3806_v13  ;;  %v3486_v12 = vld [vmem:[%s6656_s1 + $0x578] sm:$0xf0]  ;;  %v4343_v13 = vld [vmem:[%s6656_s1 + $0x66c] sm:$0xf] }
  0xda   :  { %1961 = vmatpush.bf16.msra.mxu0 %v2833_v31  ;;  %v3790_v31 = vld [vmem:[%s6656_s1 + $0x7d8] sm:$0xf0]  ;;  %v4307_v26 = vld [vmem:[%s6656_s1 + $0x54c] sm:$0xf] }
  0xdb   :  { %1975 = vmatpush.bf16.msra.mxu1 %v2961_v33  ;;  %v6013_v33 = vpop.f32.mrf.mxu1  ;;  %v3793_v41 = vor.u32 %v4387_v29, %v3790_v31  ;;  %v3470_v29 = vld [vmem:[%s6656_s1 + $0x558] sm:$0xf0]  ;;  %v4339_v31 = vld [vmem:[%s6656_s1 + $0x64c] sm:$0xf] }
  0xdc   :  { %1989 = vmatpush.bf16.msra.mxu2 %v3089_v34  ;;  %v3409_v34 = vor.u32 %v4291_v21, %v3406_v22  ;;  %v3361_v21 = vor.u32 %v4279_v5, %v3358_v6  ;;  %v3489_v22 = vor.u32 %v4311_v7, %v3486_v12  ;;  %v3473_v42 = vor.u32 %v4307_v26, %v3470_v29  ;;  %v3438_v5 = vld [vmem:[%s6656_s1 + $0x518] sm:$0xf0] }
  0xdd   :  { %2003 = vmatpush.bf16.msra.mxu3 %v3217_v38  ;;  %v3390_v38 = vld [vmem:[%s6656_s1 + $0x4b8] sm:$0xf0]  ;;  %v6071_v0 = vpop.f32.mrf.mxu0 }
  0xde   :  { %1962 = vmatpush.bf16.msra.mxu0 %v2817_v50  ;;  %v4383_v50 = vld [vmem:[%s6656_s1 + $0x7ac] sm:$0xf]  ;;  %v3393_v51 = vor.u32 %v4287_v37, %v3390_v38  ;;  %v6063_v60 = vpop.f32.mrf.mxu3  ;;  %v3566_v12 = vld [vmem:[%s6656_s1 + $0x618] sm:$0xf0] }
  0xdf   :  { %1976 = vmatpush.bf16.msra.mxu1 %v2945_v53  ;;  %v3649_v53 = vor.u32 %v4351_v46, %v3646_v48 }
  0xe0   :  { %1990 = vmatpush.bf16.msra.mxu2 %v3073_v54  ;;  %v4283_v54 = vld [vmem:[%s6656_s1 + $0x48c] sm:$0xf] }
  0xe1   :  { %2004 = vmatpush.bf16.msra.mxu3 %v3201_v59  ;;  %v3630_v59 = vld [vmem:[%s6656_s1 + $0x698] sm:$0xf0]  ;;  %v3377_v63 = vor.u32 %v4283_v54, %v3374_v55  ;;  %v4335_v54 = vld [vmem:[%s6656_s1 + $0x62c] sm:$0xf] }
  0xe2   :  { %1963 = vmatpush.bf16.msra.mxu0 %v2801_v4  ;;  %v3633_v4 = vor.u32 %v4347_v57, %v3630_v59  ;;  %v3582_v55 = vld [vmem:[%s6656_s1 + $0x638] sm:$0xf0] }
  0xe3   :  { %1977 = vmatpush.bf16.msra.mxu1 %v2929_v8  ;;  %v6082_v8 = vpop.f32.mrf.mxu1 }
  0xe4   :  { %1991 = vmatpush.bf16.msra.mxu2 %v3057_v11  ;;  %v3761_v11 = vor.u32 %v4379_v61, %v3758_v62  ;;  %v4267_v61 = vld [vmem:[%s6656_s1 + $0x40c] sm:$0xf] }
  0xe5   :  { %2005 = vmatpush.bf16.msra.mxu3 %v3185_v15  ;;  %1964 = vmatmul.bf16.vlgmr.msra.gmra.mxu0 %v4770_v58  ;;  %v4315_v58 = vld [vmem:[%s6656_s1 + $0x58c] sm:$0xf]  ;;  %v3614_v15 = vld [vmem:[%s6656_s1 + $0x678] sm:$0xf0]  ;;  %v1741_v48 = vpop.f32.mrf.mxu0 }
  0xe6   :  { %2012 = vmatpush.bf16.msrb.mxu0 %v3425_v16  ;;  %1978 = vmatmul.bf16.vlgmr.msra.gmra.mxu1 %v4806_v10  ;;  %v3505_v2 = vor.u32 %v4315_v58, %v3502_v56  ;;  %v4375_v16 = vld [vmem:[%s6656_s1 + $0x76c] sm:$0xf]  ;;  %v3617_v23 = vor.u32 %v4343_v13, %v3614_v15  ;;  %v3710_v56 = vld [vmem:[%s6656_s1 + $0x738] sm:$0xf0] }
  0xe7   :  { %2026 = vmatpush.bf16.msrb.mxu1 %v3553_v19  ;;  %1992 = vmatmul.bf16.vlgmr.msra.gmra.mxu2 %v4784_v1  ;;  %v3774_v1 = vld [vmem:[%s6656_s1 + $0x7b8] sm:$0xf0]  ;;  %v4363_v13 = vld [vmem:[%s6656_s1 + $0x70c] sm:$0xf] }
  0xe8   :  { %2040 = vmatpush.bf16.msrb.mxu2 %v3681_v20  ;;  %2006 = vmatmul.bf16.vlgmr.msra.gmra.mxu3 %v4820_v17  ;;  %v6052_v17 = vpop.f32.mrf.mxu2  ;;  %v3777_v10 = vor.u32 %v4383_v50, %v3774_v1  ;;  %v3742_v19 = vld [vmem:[%s6656_s1 + $0x778] sm:$0xf0]  ;;  %v6102_v20 = vld [vmem:[%s6658_s2] sm:$0xf]  ;;  %v4271_v50 = vld [vmem:[%s6656_s1 + $0x42c] sm:$0xf] }
  0xe9   :  { %2054 = vmatpush.bf16.msrb.mxu3 %v3809_v24  ;;  %v4275_v24 = vld [vmem:[%s6656_s1 + $0x44c] sm:$0xf]  ;;  %v3745_v27 = vor.u32 %v4375_v16, %v3742_v19  ;;  %v292_v37 = vperm.slane %v6102_v20, 0  ;;  %v3326_v1 = vld [vmem:[%s6656_s1 + $0x438] sm:$0xf0]  ;;  %v293_v57 = vperm.slane %v6102_v20, 1 }
  0xea   :  { %2013 = vmatpush.bf16.msrb.mxu0 %v3409_v34  ;;  %v3598_v34 = vld [vmem:[%s6656_s1 + $0x658] sm:$0xf0]  ;;  %v3345_v40 = vor.u32 %v4275_v24, %v3342_v25  ;;  %v3329_v59 = vor.u32 %v4271_v50, %v3326_v1  ;;  %v4409_v16 = vld [vmem:[%s6659_s3 + $0x74] sm:$0xf0] }
  0xeb   :  { %2027 = vmatpush.bf16.msrb.mxu1 %v3537_v35  ;;  %v4371_v35 = vld [vmem:[%s6656_s1 + $0x74c] sm:$0xf]  ;;  %v3601_v46 = vor.u32 %v4339_v31, %v3598_v34  ;;  %v1755_v58 = vpop.f32.mrf.mxu1  ;;  %v1630_v6 = vadd.f32 %v5851_v3, %v292_v37  ;;  %v3694_v15 = vld [vmem:[%s6656_s1 + $0x718] sm:$0xf0]  ;;  %v3868_v3 = vld [vmem:[%s6659_s3 + $0x70] sm:$0xf]  ;;  %v1632_v19 = vadd.f32 %v5925_v45, %v292_v37  ;;  %v1742_v25 = vadd.f32 %v1741_v48, %v293_v57 }
  0xec   :  { %2041 = vmatpush.bf16.msrb.mxu2 %v3665_v36  ;;  %v3726_v36 = vld [vmem:[%s6656_s1 + $0x758] sm:$0xf0]  ;;  %v3697_v45 = vor.u32 %v4363_v13, %v3694_v15  ;;  %v3869_v34 = vor.u32 %v4409_v16, %v3868_v3  ;;  %v3860_v37 = vld [vmem:[%s6659_s3 + $0x60] sm:$0xf]  ;;  %v4401_v13 = vld [vmem:[%s6659_s3 + $0x34] sm:$0xf0] }
  0xed   :  { %2055 = vmatpush.bf16.msrb.mxu3 %v3793_v41  ;;  %v6131_v41 = vpop.f32.mrf.mxu3  ;;  %v1644_v31 = vadd.f32 %v5862_v9, %v1630_v6  ;;  %v4423_v9 = vld [vmem:[%s6659_s3 + $0xe4] sm:$0xf0]  ;;  %v1646_v48 = vadd.f32 %v5933_v49, %v1632_v19  ;;  %v1756_v50 = vadd.f32 %v1755_v58, %v1742_v25  ;;  %v4405_v49 = vld [vmem:[%s6659_s3 + $0x54] sm:$0xf0] }
  0xee   :  { %2014 = vmatpush.bf16.msrb.mxu0 %v3393_v51  ;;  %v4303_v51 = vld [vmem:[%s6656_s1 + $0x52c] sm:$0xf] }
  0xef   :  { %2028 = vmatpush.bf16.msrb.mxu1 %v3521_v52  ;;  %v3729_v52 = vor.u32 %v4371_v35, %v3726_v36  ;;  %v1743_v36 = vpop.f32.mrf.mxu0  ;;  %v1658_v1 = vadd.f32 %v5903_v30, %v1644_v31  ;;  %v3916_v30 = vld [vmem:[%s6659_s3 + $0xd0] sm:$0xf] }
  0xf0   :  { %2042 = vmatpush.bf16.msrb.mxu2 %v3649_v53  ;;  %v6129_v38 = vpop.f32.mrf.mxu2  ;;  %v3454_v53 = vld [vmem:[%s6656_s1 + $0x538] sm:$0xf0] }
  0xf1   :  { %2056 = vmatpush.bf16.msrb.mxu3 %v3777_v10  ;;  %v4367_v10 = vld [vmem:[%s6656_s1 + $0x72c] sm:$0xf]  ;;  %v3457_v62 = vor.u32 %v4303_v51, %v3454_v53 }
  0xf2   :  { %2015 = vmatpush.bf16.msrb.mxu0 %v3377_v63  ;;  %v3585_v63 = vor.u32 %v4335_v54, %v3582_v55  ;;  %v3713_v7 = vor.u32 %v4367_v10, %v3710_v56  ;;  %v3852_v54 = vld [vmem:[%s6659_s3 + $0x50] sm:$0xf]  ;;  %v1660_v55 = vadd.f32 %v5983_v14, %v1646_v48  ;;  %v1672_v10 = vadd.f32 %v5905_v32, %v1658_v1  ;;  %v4403_v14 = vld [vmem:[%s6659_s3 + $0x44] sm:$0xf0] }
  0xf3   :  { %2029 = vmatpush.bf16.msrb.mxu1 %v3505_v2  ;;  %v3310_v2 = vld [vmem:[%s6656_s1 + $0x418] sm:$0xf0]  ;;  %v3853_v56 = vor.u32 %v4405_v49, %v3852_v54  ;;  %v4419_v32 = vld [vmem:[%s6659_s3 + $0xc4] sm:$0xf0]  ;;  %v3884_v48 = vld [vmem:[%s6659_s3 + $0x90] sm:$0xf] }
  0xf4   :  { %2043 = vmatpush.bf16.msrb.mxu2 %v3633_v4  ;;  %v4299_v4 = vld [vmem:[%s6656_s1 + $0x50c] sm:$0xf]  ;;  %v4439_v1 = vld [vmem:[%s6659_s3 + $0x164] sm:$0xf0]  ;;  %v3812_v49 = vld [vmem:[%s6659_s3] sm:$0xf] }
  0xf5   :  { %2057 = vmatpush.bf16.msrb.mxu3 %v3761_v11  ;;  %v4331_v11 = vld [vmem:[%s6656_s1 + $0x60c] sm:$0xf]  ;;  %v3441_v26 = vor.u32 %v4299_v4, %v3438_v5  ;;  %v1783_v29 = vpop.f32.mrf.mxu3  ;;  %v1686_v4 = vadd.f32 %v6005_v28, %v1672_v10  ;;  %v4417_v28 = vld [vmem:[%s6659_s3 + $0xb4] sm:$0xf0]  ;;  %v3876_v10 = vld [vmem:[%s6659_s3 + $0x80] sm:$0xf] }
  0xf6   :  { %2016 = vmatpush.bf16.msrb.mxu0 %v3361_v21  ;;  %v3313_v21 = vor.u32 %v4267_v61, %v3310_v2  ;;  %v3844_v61 = vld [vmem:[%s6659_s3 + $0x40] sm:$0xf] }
  0xf7   :  { %2030 = vmatpush.bf16.msrb.mxu1 %v3489_v22  ;;  %v3932_v22 = vld [vmem:[%s6659_s3 + $0xf0] sm:$0xf]  ;;  %v3845_v5 = vor.u32 %v4403_v14, %v3844_v61  ;;  %v1700_v16 = vadd.f32 %v6013_v33, %v1686_v4  ;;  %v4415_v33 = vld [vmem:[%s6659_s3 + $0xa4] sm:$0xf0] }
  0xf8   :  { %2044 = vmatpush.bf16.msrb.mxu2 %v3617_v23  ;;  %v4425_v23 = vld [vmem:[%s6659_s3 + $0xf4] sm:$0xf0]  ;;  %v1769_v24 = vpop.f32.mrf.mxu2 }
  0xf9   :  { %2058 = vmatpush.bf16.msrb.mxu3 %v3745_v27  ;;  %v3569_v27 = vor.u32 %v4331_v11, %v3566_v12  ;;  %v3933_v35 = vor.u32 %v4425_v23, %v3932_v22  ;;  %v1770_v58 = vadd.f32 %v1769_v24, %v1756_v50  ;;  %v3836_v12 = vld [vmem:[%s6659_s3 + $0x30] sm:$0xf]  ;;  %v3828_v23 = vld [vmem:[%s6659_s3 + $0x20] sm:$0xf]  ;;  %v4399_v24 = vld [vmem:[%s6659_s3 + $0x24] sm:$0xf0] }
  0xfa   :  { %2017 = vmatpush.bf16.msrb.mxu0 %v3345_v40  ;;  %v4407_v40 = vld [vmem:[%s6659_s3 + $0x64] sm:$0xf0]  ;;  %v3837_v19 = vor.u32 %v4401_v13, %v3836_v12  ;;  %v3988_v50 = vld [vmem:[%s6659_s3 + $0x160] sm:$0xf]  ;;  %v3862_v13 = vld [vmem:[%s6659_s3 + $0x68] sm:$0xf0] }
  0xfb   :  { %2031 = vmatpush.bf16.msrb.mxu1 %v3473_v42  ;;  %v3924_v42 = vld [vmem:[%s6659_s3 + $0xe0] sm:$0xf]  ;;  %v3861_v51 = vor.u32 %v4407_v40, %v3860_v37  ;;  %v3829_v37 = vor.u32 %v4399_v24, %v3828_v23 }
  0xfc   :  { %2045 = vmatpush.bf16.msrb.mxu2 %v3601_v46  ;;  %v1757_v46 = vpop.f32.mrf.mxu1  ;;  %v3925_v53 = vor.u32 %v4423_v9, %v3924_v42 }
  0xfd   :  { %2059 = vmatpush.bf16.msrb.mxu3 %v3729_v52  ;;  %v1744_v52 = vadd.f32 %v1743_v36, %v293_v57  ;;  %v1714_v36 = vadd.f32 %v6052_v17, %v1700_v16  ;;  %v4422_v16 = vld [vmem:[%s6659_s3 + $0xe4] sm:$0xf] }
  0xfe   :  { %2018 = vmatpush.bf16.msrb.mxu0 %v3329_v59  ;;  %v1785_v59 = vpop.f32.mrf.mxu3 }
  0xff   :  { %2032 = vmatpush.bf16.msrb.mxu1 %v3457_v62  ;;  %v1674_v62 = vadd.f32 %v5985_v18, %v1660_v55  ;;  %v3900_v18 = vld [vmem:[%s6659_s3 + $0xb0] sm:$0xf] }
 0x100   :  { %2046 = vmatpush.bf16.msrb.mxu2 %v3585_v63  ;;  %v1784_v63 = vadd.f32 %v1783_v29, %v1770_v58  ;;  %v3901_v22 = vor.u32 %v4417_v28, %v3900_v18  ;;  %v3972_v18 = vld [vmem:[%s6659_s3 + $0x140] sm:$0xf]  ;;  %v4435_v28 = vld [vmem:[%s6659_s3 + $0x144] sm:$0xf0] }
 0x101   :  { %2060 = vmatpush.bf16.msrb.mxu3 %v3713_v7  ;;  %v1688_v15 = vadd.f32 %v6071_v0, %v1674_v62  ;;  %v3892_v0 = vld [vmem:[%s6659_s3 + $0xa0] sm:$0xf] }
 0x102   :  { %2019 = vmatpush.bf16.msrb.mxu0 %v3313_v21  ;;  %v1797_v2 = vpop.f32.mrf.mxu0  ;;  %v3893_v9 = vor.u32 %v4415_v33, %v3892_v0  ;;  %v3964_v0 = vld [vmem:[%s6659_s3 + $0x130] sm:$0xf] }
 0x103   :  { %2033 = vmatpush.bf16.msrb.mxu1 %v3441_v26  ;;  %v1798_v3 = vadd.f32 %v1797_v2, %v1784_v63  ;;  %v3996_v26 = vld [vmem:[%s6659_s3 + $0x170] sm:$0xf]  ;;  %v1702_v29 = vadd.f32 %v6082_v8, %v1688_v15  ;;  %v4397_v8 = vld [vmem:[%s6659_s3 + $0x14] sm:$0xf0] }
 0x104   :  { %2047 = vmatpush.bf16.msrb.mxu2 %v3569_v27  ;;  %v1811_v6 = vpop.f32.mrf.mxu1  ;;  %v4441_v27 = vld [vmem:[%s6659_s3 + $0x174] sm:$0xf0] }
 0x105   :  { %2061 = vmatpush.bf16.msrb.mxu3 %v3697_v45  ;;  %2020 = vmatmul.bf16.vlgmr.msrb.gmra.mxu0 %v4992_v39  ;;  %v4421_v39 = vld [vmem:[%s6659_s3 + $0xd4] sm:$0xf0]  ;;  %v1812_v31 = vadd.f32 %v1811_v6, %v1798_v3  ;;  %v1716_v40 = vadd.f32 %v6129_v38, %v1702_v29  ;;  %v4420_v29 = vld [vmem:[%s6659_s3 + $0xd4] sm:$0xf] }
 0x106   :  { %2470 = vmatpush.bf16.msra.mxu0 %v3869_v34  ;;  %2034 = vmatmul.bf16.vlgmr.msrb.gmra.mxu1 %v5005_v44  ;;  %v1771_v44 = vpop.f32.mrf.mxu2  ;;  %v3917_v57 = vor.u32 %v4421_v39, %v3916_v30  ;;  %v4413_v38 = vld [vmem:[%s6659_s3 + $0x94] sm:$0xf0]  ;;  %v4395_v30 = vld [vmem:[%s6659_s3 + $0x4] sm:$0xf0] }
 0x107   :  { %2484 = vmatpush.bf16.msra.mxu1 %v3933_v35  ;;  %2048 = vmatmul.bf16.vlgmr.msrb.gmra.mxu2 %v5003_v43  ;;  %v1758_v43 = vadd.f32 %v1757_v46, %v1744_v52  ;;  %v3997_v35 = vor.u32 %v4441_v27, %v3996_v26  ;;  %v3820_v46 = vld [vmem:[%s6659_s3 + $0x10] sm:$0xf]  ;;  %v3989_v52 = vor.u32 %v4439_v1, %v3988_v50  ;;  %v4404_v26 = vld [vmem:[%s6659_s3 + $0x54] sm:$0xf]  ;;  %v3854_v27 = vld [vmem:[%s6659_s3 + $0x58] sm:$0xf0] }
 0x108   :  { %2062 = vmatmul.bf16.vlgmr.msrb.gmra.mxu3 %v5013_v47  ;;  %v3908_v47 = vld [vmem:[%s6659_s3 + $0xc0] sm:$0xf]  ;;  %v3821_v54 = vor.u32 %v4397_v8, %v3820_v46  ;;  %v1730_v39 = vadd.f32 %v6131_v41, %v1716_v40  ;;  %v3885_v58 = vor.u32 %v4413_v38, %v3884_v48  ;;  %v3870_v41 = vld [vmem:[%s6659_s3 + $0x78] sm:$0xf0]  ;;  %v3813_v2 = vor.u32 %v4395_v30, %v3812_v49  ;;  %v4402_v40 = vld [vmem:[%s6659_s3 + $0x44] sm:$0xf] }
 0x109   :  { %v1772_v7 = vadd.f32 %v1771_v44, %v1758_v43  ;;  %v3909_v11 = vor.u32 %v4419_v32, %v3908_v47  ;;  %2498 = vmatpush.bf16.msra.mxu2 %v3997_v35  ;;  %v3980_v43 = vld [vmem:[%s6659_s3 + $0x150] sm:$0xf]  ;;  %v4424_v47 = vld [vmem:[%s6659_s3 + $0xf4] sm:$0xf]  ;;  %v3934_v32 = vld [vmem:[%s6659_s3 + $0xf8] sm:$0xf0] }
 0x10a   :  { %2471 = vmatpush.bf16.msra.mxu0 %v3861_v51  ;;  %v1799_v45 = vpop.f32.mrf.mxu0  ;;  %v2072_v4 = vmax.f32 %v1730_v39, 0.0  ;;  %v3937_v12 = vor.u32 %v4424_v47, %v3934_v32  ;;  %v4431_v35 = vld [vmem:[%s6659_s3 + $0x124] sm:$0xf0]  ;;  %v4418_v46 = vld [vmem:[%s6659_s3 + $0xc4] sm:$0xf] }
 0x10b   :  { %2485 = vmatpush.bf16.msra.mxu1 %v3925_v53  ;;  %v1786_v21 = vadd.f32 %v1785_v59, %v1772_v7  ;;  %v1839_v34 = vpop.f32.mrf.mxu3  ;;  %v1728_v53 = vadd.f32 %v6063_v60, %v1714_v36  ;;  %v4411_v60 = vld [vmem:[%s6659_s3 + $0x84] sm:$0xf0]  ;;  %v3857_v36 = vor.u32 %v4404_v26, %v3854_v27  ;;  %v3910_v8 = vld [vmem:[%s6659_s3 + $0xc8] sm:$0xf0]  ;;  %v3838_v50 = vld [vmem:[%s6659_s3 + $0x38] sm:$0xf0] }
 0x10c   :  { %v1813_v17 = vpop.f32.mrf.mxu1  ;;  %v3877_v6 = vor.u32 %v4411_v60, %v3876_v10  ;;  %v3913_v38 = vor.u32 %v4418_v46, %v3910_v8  ;;  %v3948_v1 = vld [vmem:[%s6659_s3 + $0x110] sm:$0xf]  ;;  %v4398_v30 = vld [vmem:[%s6659_s3 + $0x24] sm:$0xf]  ;;  %v3830_v39 = vld [vmem:[%s6659_s3 + $0x28] sm:$0xf0] }
 0x10d   :  { %v1800_v42 = vadd.f32 %v1799_v45, %v1786_v21  ;;  %2499 = vmatpush.bf16.msra.mxu2 %v3989_v52  ;;  %v2068_v63 = vmax.f32 %v1728_v53, 0.0  ;;  %v3973_v21 = vor.u32 %v4435_v28, %v3972_v18  ;;  %v3918_v45 = vld [vmem:[%s6659_s3 + $0xd8] sm:$0xf0]  ;;  %v4416_v52 = vld [vmem:[%s6659_s3 + $0xb4] sm:$0xf] }
 0x10e   :  { %2472 = vmatpush.bf16.msra.mxu0 %v3853_v56  ;;  %v1825_v25 = vpop.f32.mrf.mxu2  ;;  %v4408_v56 = vld [vmem:[%s6659_s3 + $0x74] sm:$0xf]  ;;  %v3902_v53 = vld [vmem:[%s6659_s3 + $0xb8] sm:$0xf0]  ;;  %v3940_v10 = vld [vmem:[%s6659_s3 + $0x100] sm:$0xf] }
 0x10f   :  { %2486 = vmatpush.bf16.msra.mxu1 %v3917_v57  ;;  %v1826_v51 = vadd.f32 %v1825_v25, %v1812_v31  ;;  %v1814_v55 = vadd.f32 %v1813_v17, %v1800_v42  ;;  %v4437_v57 = vld [vmem:[%s6659_s3 + $0x154] sm:$0xf0]  ;;  %v3873_v7 = vor.u32 %v4408_v56, %v3870_v41  ;;  %v3846_v42 = vld [vmem:[%s6659_s3 + $0x48] sm:$0xf0]  ;;  %v4400_v17 = vld [vmem:[%s6659_s3 + $0x34] sm:$0xf] }
 0x110   :  { %v3981_v62 = vor.u32 %v4437_v57, %v3980_v43  ;;  %v4433_v25 = vld [vmem:[%s6659_s3 + $0x134] sm:$0xf0]  ;;  %v3849_v48 = vor.u32 %v4402_v40, %v3846_v42  ;;  %v3841_v49 = vor.u32 %v4400_v17, %v3838_v50  ;;  %v4427_v60 = vld [vmem:[%s6659_s3 + $0x104] sm:$0xf0]  ;;  %v3894_v56 = vld [vmem:[%s6659_s3 + $0xa8] sm:$0xf0] }
 0x111   :  { %v1840_v59 = vadd.f32 %v1839_v34, %v1826_v51  ;;  %v3965_v31 = vor.u32 %v4433_v25, %v3964_v0  ;;  %v3956_v34 = vld [vmem:[%s6659_s3 + $0x120] sm:$0xf]  ;;  %v4429_v51 = vld [vmem:[%s6659_s3 + $0x114] sm:$0xf0]  ;;  %v4440_v41 = vld [vmem:[%s6659_s3 + $0x174] sm:$0xf] }
 0x112   :  { %2473 = vmatpush.bf16.msra.mxu0 %v3845_v5  ;;  %2500 = vmatpush.bf16.msra.mxu2 %v3981_v62  ;;  %v3998_v43 = vld [vmem:[%s6659_s3 + $0x178] sm:$0xf0]  ;;  %v4412_v32 = vld [vmem:[%s6659_s3 + $0x94] sm:$0xf]  ;;  %v3814_v18 = vld [vmem:[%s6659_s3 + $0x8] sm:$0xf0] }
 0x113   :  { %2487 = vmatpush.bf16.msra.mxu1 %v3909_v11  ;;  %v1841_v14 = vpop.f32.mrf.mxu3  ;;  %v4406_v11 = vld [vmem:[%s6659_s3 + $0x64] sm:$0xf]  ;;  %v2069_v15 = vmax.f32 %v1840_v59, 0.0  ;;  %v4001_v57 = vor.u32 %v4440_v41, %v3998_v43  ;;  %v3833_v59 = vor.u32 %v4398_v30, %v3830_v39  ;;  %v3822_v47 = vld [vmem:[%s6659_s3 + $0x18] sm:$0xf0] }
 0x114   :  { %v3865_v24 = vor.u32 %v4406_v11, %v3862_v13  ;;  %v4394_v13 = vld [vmem:[%s6659_s3 + $0x4] sm:$0xf]  ;;  %v3974_v27 = vld [vmem:[%s6659_s3 + $0x148] sm:$0xf0]  ;;  %v3950_v17 = vld [vmem:[%s6659_s3 + $0x118] sm:$0xf0] }
 0x115   :  { %v4410_v28 = vld [vmem:[%s6659_s3 + $0x84] sm:$0xf]  ;;  %v3958_v42 = vld [vmem:[%s6659_s3 + $0x128] sm:$0xf0]  ;;  %v4457_v30 = vld [vmem:[%s6659_s3 + $0x1f4] sm:$0xf0] }
 0x116   :  { %2474 = vmatpush.bf16.msra.mxu0 %v3837_v19  ;;  %v1827_v44 = vpop.f32.mrf.mxu2  ;;  %v3926_v19 = vld [vmem:[%s6659_s3 + $0xe8] sm:$0xf0]  ;;  %2501 = vmatpush.bf16.msra.mxu2 %v3973_v21  ;;  %v3817_v21 = vor.u32 %v4394_v13, %v3814_v18  ;;  %v4434_v26 = vld [vmem:[%s6659_s3 + $0x144] sm:$0xf] }
 0x117   :  { %2488 = vmatpush.bf16.msra.mxu1 %v3901_v22  ;;  %v1828_v61 = vadd.f32 %v1827_v44, %v1814_v55  ;;  %v6346_v22 = vpack.c.bf16 %v2072_v4, %v2068_v63  ;;  %v3929_v33 = vor.u32 %v4422_v16, %v3926_v19  ;;  %v3905_v55 = vor.u32 %v4416_v52, %v3902_v53  ;;  %v3886_v63 = vld [vmem:[%s6659_s3 + $0x98] sm:$0xf0]  ;;  %v3990_v4 = vld [vmem:[%s6659_s3 + $0x168] sm:$0xf0]  ;;  %v4430_v40 = vld [vmem:[%s6659_s3 + $0x124] sm:$0xf] }
 0x118   :  { %v3941_v44 = vor.u32 %v4427_v60, %v3940_v10  ;;  %v3982_v16 = vld [vmem:[%s6659_s3 + $0x158] sm:$0xf0]  ;;  %v3961_v8 = vor.u32 %v4430_v40, %v3958_v42  ;;  %v4454_v40 = vld [vmem:[%s6659_s3 + $0x1e4] sm:$0xf]  ;;  %v4054_v42 = vld [vmem:[%s6659_s3 + $0x1e8] sm:$0xf0] }
 0x119   :  { %v1842_v5 = vadd.f32 %v1841_v14, %v1828_v61  ;;  %v4396_v14 = vld [vmem:[%s6659_s3 + $0x14] sm:$0xf] }
 0x11a   :  { %2475 = vmatpush.bf16.msra.mxu0 %v3829_v37  ;;  %v3921_v37 = vor.u32 %v4420_v29, %v3918_v45  ;;  %2502 = vmatpush.bf16.msra.mxu2 %v3965_v31  ;;  %v3825_v11 = vor.u32 %v4396_v14, %v3822_v47  ;;  %v3977_v29 = vor.u32 %v4434_v26, %v3974_v27  ;;  %v4453_v47 = vld [vmem:[%s6659_s3 + $0x1d4] sm:$0xf0]  ;;  %v4012_v26 = vld [vmem:[%s6659_s3 + $0x190] sm:$0xf] }
 0x11b   :  { %2489 = vmatpush.bf16.msra.mxu1 %v3893_v9  ;;  %v2073_v3 = vmax.f32 %v1842_v5, 0.0  ;;  %v3957_v9 = vor.u32 %v4431_v35, %v3956_v34  ;;  %v4432_v35 = vld [vmem:[%s6659_s3 + $0x134] sm:$0xf]  ;;  %v4445_v27 = vld [vmem:[%s6659_s3 + $0x194] sm:$0xf0] }
 0x11d   :  { %v6348_v23 = vpack.c.bf16 %v2073_v3, %v2069_v15  ;;  %v3878_v15 = vld [vmem:[%s6659_s3 + $0x88] sm:$0xf0]  ;;  %v4436_v3 = vld [vmem:[%s6659_s3 + $0x154] sm:$0xf] }
 0x11e   :  { %2476 = vmatpush.bf16.msra.mxu0 %v3821_v54  ;;  %2503 = vmatpush.bf16.msra.mxu2 %v3957_v9  ;;  %v3949_v54 = vor.u32 %v4429_v51, %v3948_v1  ;;  %v3985_v19 = vor.u32 %v4436_v3, %v3982_v16 }
 0x11f   :  { %2490 = vmatpush.bf16.msra.mxu1 %v3885_v58  ;;  %v4414_v58 = vld [vmem:[%s6659_s3 + $0xa4] sm:$0xf] }
 0x120   :  { %v3897_v61 = vor.u32 %v4414_v58, %v3894_v56 }
 0x122   :  { %2477 = vmatpush.bf16.msra.mxu0 %v3813_v2  ;;  %2504 = vmatpush.bf16.msra.mxu2 %v3949_v54  ;;  %v1853_v62 = vpop.f32.mrf.mxu0  ;;  %v4438_v2 = vld [vmem:[%s6659_s3 + $0x164] sm:$0xf] }
 0x123   :  { %2491 = vmatpush.bf16.msra.mxu1 %v3877_v6  ;;  %v1867_v5 = vpop.f32.mrf.mxu1  ;;  %v3993_v6 = vor.u32 %v4438_v2, %v3990_v4  ;;  %v4426_v54 = vld [vmem:[%s6659_s3 + $0x104] sm:$0xf]  ;;  %v4036_v4 = vld [vmem:[%s6659_s3 + $0x1c0] sm:$0xf] }
 0x125   :  { %2478 = vmatmul.bf16.vlgmr.msra.gmra.mxu0 %v6346_v22 }
 0x126   :  { %2526 = vmatpush.bf16.msrb.mxu0 %v3873_v7  ;;  %2492 = vmatmul.bf16.vlgmr.msra.gmra.mxu1 %v6348_v23  ;;  %v294_v7 = vperm.slane %v6102_v20, 2 }
 0x127   :  { %2540 = vmatpush.bf16.msrb.mxu1 %v3937_v12  ;;  %2505 = vmatpush.bf16.msra.mxu2 %v3941_v44  ;;  %v3889_v12 = vor.u32 %v4412_v32, %v3886_v63 }
 0x128   :  { %v1854_v25 = vadd.f32 %v1853_v62, %v294_v7 }
 0x12a   :  { %2527 = vmatpush.bf16.msrb.mxu0 %v3865_v24  ;;  %v3881_v24 = vor.u32 %v4410_v28, %v3878_v15  ;;  %v1881_v0 = vpop.f32.mrf.mxu2  ;;  %v1855_v31 = vpop.f32.mrf.mxu0  ;;  %v1868_v34 = vadd.f32 %v1867_v5, %v1854_v25  ;;  %v4451_v5 = vld [vmem:[%s6659_s3 + $0x1c4] sm:$0xf0]  ;;  %v4028_v28 = vld [vmem:[%s6659_s3 + $0x1b0] sm:$0xf]  ;;  %v4449_v15 = vld [vmem:[%s6659_s3 + $0x1b4] sm:$0xf0] }
 0x12b   :  { %2541 = vmatpush.bf16.msrb.mxu1 %v3929_v33  ;;  %2554 = vmatpush.bf16.msrb.mxu2 %v4001_v57  ;;  %v1895_v33 = vpop.f32.mrf.mxu3  ;;  %v1869_v45 = vpop.f32.mrf.mxu1  ;;  %v1856_v9 = vadd.f32 %v1855_v31, %v294_v7  ;;  %v4052_v57 = vld [vmem:[%s6659_s3 + $0x1e0] sm:$0xf]  ;;  %v4029_v16 = vor.u32 %v4449_v15, %v4028_v28 }
 0x12c   :  { %v1882_v46 = vadd.f32 %v1881_v0, %v1868_v34  ;;  %v4447_v0 = vld [vmem:[%s6659_s3 + $0x1a4] sm:$0xf0]  ;;  %v4004_v31 = vld [vmem:[%s6659_s3 + $0x180] sm:$0xf] }
 0x12e   :  { %2528 = vmatpush.bf16.msrb.mxu0 %v3857_v36  ;;  %v3966_v36 = vld [vmem:[%s6659_s3 + $0x138] sm:$0xf0]  ;;  %v1896_v1 = vadd.f32 %v1895_v33, %v1882_v46 }
 0x12f   :  { %2542 = vmatpush.bf16.msrb.mxu1 %v3921_v37  ;;  %2555 = vmatpush.bf16.msrb.mxu2 %v3993_v6  ;;  %v3969_v37 = vor.u32 %v4432_v35, %v3966_v36  ;;  %v4456_v35 = vld [vmem:[%s6659_s3 + $0x1f4] sm:$0xf]  ;;  %v4062_v36 = vld [vmem:[%s6659_s3 + $0x1f8] sm:$0xf0] }
 0x132   :  { %2529 = vmatpush.bf16.msrb.mxu0 %v3849_v48  ;;  %v1883_v48 = vpop.f32.mrf.mxu2 }
 0x133   :  { %2543 = vmatpush.bf16.msrb.mxu1 %v3913_v38  ;;  %2556 = vmatpush.bf16.msrb.mxu2 %v3985_v19  ;;  %v1870_v38 = vadd.f32 %v1869_v45, %v1856_v9  ;;  %v1897_v50 = vpop.f32.mrf.mxu3  ;;  %v4443_v45 = vld [vmem:[%s6659_s3 + $0x184] sm:$0xf0]  ;;  %v4057_v9 = vor.u32 %v4454_v40, %v4054_v42  ;;  %v4472_v40 = vld [vmem:[%s6661_s5 + $0x70] sm:$0xff] }
 0x134   :  { %v4005_v34 = vor.u32 %v4443_v45, %v4004_v31  ;;  %v4464_v31 = vld [vmem:[%s6661_s5 + $0x30] sm:$0xff]  ;;  %v4463_v45 = vld [vmem:[%s6661_s5 + $0x28] sm:$0xff] }
 0x135   :  { %v1884_v39 = vadd.f32 %v1883_v48, %v1870_v38  ;;  %v4046_v48 = vld [vmem:[%s6659_s3 + $0x1d8] sm:$0xf0]  ;;  %v4450_v38 = vld [vmem:[%s6659_s3 + $0x1c4] sm:$0xf]  ;;  %v4459_v42 = vld [vmem:[%s6661_s5 + $0x8] sm:$0xff] }
 0x136   :  { %2530 = vmatpush.bf16.msrb.mxu0 %v3841_v49  ;;  %v3942_v49 = vld [vmem:[%s6659_s3 + $0x108] sm:$0xf0] }
 0x137   :  { %2544 = vmatpush.bf16.msrb.mxu1 %v3905_v55  ;;  %2557 = vmatpush.bf16.msrb.mxu2 %v3977_v29  ;;  %v3945_v10 = vor.u32 %v4426_v54, %v3942_v49  ;;  %v1898_v60 = vadd.f32 %v1897_v50, %v1884_v39  ;;  %v4013_v29 = vor.u32 %v4445_v27, %v4012_v26  ;;  %v4038_v50 = vld [vmem:[%s6659_s3 + $0x1c8] sm:$0xf0]  ;;  %v4030_v54 = vld [vmem:[%s6659_s3 + $0x1b8] sm:$0xf0] }
 0x13a   :  { %2531 = vmatpush.bf16.msrb.mxu0 %v3833_v59  ;;  %v4455_v59 = vld [vmem:[%s6659_s3 + $0x1e4] sm:$0xf0] }
 0x13b   :  { %2545 = vmatpush.bf16.msrb.mxu1 %v3897_v61  ;;  %2558 = vmatpush.bf16.msrb.mxu2 %v3969_v37  ;;  %v4044_v61 = vld [vmem:[%s6659_s3 + $0x1d0] sm:$0xf]  ;;  %v4053_v14 = vor.u32 %v4455_v59, %v4052_v57  ;;  %v4065_v37 = vor.u32 %v4456_v35, %v4062_v36  ;;  %v4461_v35 = vld [vmem:[%s6661_s5 + $0x18] sm:$0xff] }
 0x13c   :  { %v4045_v63 = vor.u32 %v4453_v47, %v4044_v61  ;;  %v4473_v36 = vld [vmem:[%s6661_s5 + $0x78] sm:$0xff] }
 0x13e   :  { %2532 = vmatpush.bf16.msrb.mxu0 %v3825_v11  ;;  %v4037_v11 = vor.u32 %v4451_v5, %v4036_v4 }
 0x13f   :  { %2546 = vmatpush.bf16.msrb.mxu1 %v3889_v12  ;;  %2559 = vmatpush.bf16.msrb.mxu2 %v3961_v8  ;;  %v4452_v8 = vld [vmem:[%s6659_s3 + $0x1d4] sm:$0xf] }
 0x142   :  { %2533 = vmatpush.bf16.msrb.mxu0 %v3817_v21  ;;  %v1909_v51 = vpop.f32.mrf.mxu0 }
 0x143   :  { %2547 = vmatpush.bf16.msrb.mxu1 %v3881_v24  ;;  %v1923_v53 = vpop.f32.mrf.mxu1  ;;  %v1910_v58 = vadd.f32 %v1909_v51, %v1896_v1  ;;  %v4020_v24 = vld [vmem:[%s6659_s3 + $0x1a0] sm:$0xf]  ;;  %v295_v1 = vperm.slane %v6102_v20, 3  ;;  %v4041_v51 = vor.u32 %v4450_v38, %v4038_v50  ;;  %v4022_v20 = vld [vmem:[%s6659_s3 + $0x1a8] sm:$0xf0] }
 0x144   :  { %v4021_v33 = vor.u32 %v4447_v0, %v4020_v24  ;;  %v4467_v50 = vld [vmem:[%s6661_s5 + $0x48] sm:$0xff] }
 0x145   :  { %2534 = vmatmul.bf16.vlgmr.msrb.gmra.mxu0 %v6346_v22  ;;  %v4428_v22 = vld [vmem:[%s6659_s3 + $0x114] sm:$0xf]  ;;  %v1924_v44 = vadd.f32 %v1923_v53, %v1910_v58 }
 0x146   :  { %2548 = vmatmul.bf16.vlgmr.msrb.gmra.mxu1 %v6348_v23  ;;  %v3953_v52 = vor.u32 %v4428_v22, %v3950_v17  ;;  %v4060_v23 = vld [vmem:[%s6659_s3 + $0x1f0] sm:$0xf]  ;;  %v4049_v22 = vor.u32 %v4452_v8, %v4046_v48  ;;  %v4448_v53 = vld [vmem:[%s6659_s3 + $0x1b4] sm:$0xf]  ;;  %v4470_v8 = vld [vmem:[%s6661_s5 + $0x60] sm:$0xff] }
 0x147   :  { %v4061_v55 = vor.u32 %v4457_v30, %v4060_v23  ;;  %v4033_v39 = vor.u32 %v4448_v53, %v4030_v54  ;;  %2734 = vmatpush.bf16.msra.mxu1 %v4473_v36  ;;  %v4469_v48 = vld [vmem:[%s6661_s5 + $0x58] sm:$0xff] }
 0x148   :  { %2560 = vmatpush.bf16.msrb.mxu2 %v3953_v52 }
 0x149   :  { %2512 = vmatpush.bf16.msra.mxu3 %v4061_v55  ;;  %v4446_v55 = vld [vmem:[%s6659_s3 + $0x1a4] sm:$0xf] }
 0x14a   :  { %v1937_v56 = vpop.f32.mrf.mxu2  ;;  %v1911_v41 = vpop.f32.mrf.mxu0  ;;  %v4025_v58 = vor.u32 %v4446_v55, %v4022_v20 }
 0x14b   :  { %v1951_v43 = vpop.f32.mrf.mxu3  ;;  %v1912_v32 = vadd.f32 %v1911_v41, %v1898_v60  ;;  %v1925_v62 = vpop.f32.mrf.mxu1  ;;  %v1938_v2 = vadd.f32 %v1937_v56, %v1924_v44  ;;  %v4444_v41 = vld [vmem:[%s6659_s3 + $0x194] sm:$0xf]  ;;  %2735 = vmatpush.bf16.msra.mxu1 %v4472_v40 }
 0x14c   :  { %2561 = vmatpush.bf16.msrb.mxu2 %v3945_v10 }
 0x14d   :  { %2513 = vmatpush.bf16.msra.mxu3 %v4053_v14  ;;  %v1926_v6 = vadd.f32 %v1925_v62, %v1912_v32  ;;  %v1952_v12 = vadd.f32 %v1951_v43, %v1938_v2  ;;  %v4014_v43 = vld [vmem:[%s6659_s3 + $0x198] sm:$0xf0]  ;;  %v4442_v32 = vld [vmem:[%s6659_s3 + $0x184] sm:$0xf]  ;;  %v4006_v62 = vld [vmem:[%s6659_s3 + $0x188] sm:$0xf0] }
 0x14e   :  { %v4017_v47 = vor.u32 %v4444_v41, %v4014_v43 }
 0x14f   :  { %v2070_v19 = vmax.f32 %v1952_v12, 0.0 }
 0x151   :  { %2514 = vmatpush.bf16.msra.mxu3 %v4045_v63  ;;  %v4009_v63 = vor.u32 %v4442_v32, %v4006_v62 }
 0x152   :  { %v1939_v7 = vpop.f32.mrf.mxu2 }
 0x153   :  { %v1940_v13 = vadd.f32 %v1939_v7, %v1926_v6  ;;  %v1953_v18 = vpop.f32.mrf.mxu3 }
 0x155   :  { %v1954_v3 = vadd.f32 %v1953_v18, %v1940_v13  ;;  %2515 = vmatpush.bf16.msra.mxu3 %v4037_v11 }
 0x157   :  { %v2074_v21 = vmax.f32 %v1954_v3, 0.0 }
 0x159   :  { %v2078_v25 = vpack.c.bf16 %v2074_v21, %v2070_v19  ;;  %2516 = vmatpush.bf16.msra.mxu3 %v4029_v16 }
 0x15b   :  { %2506 = vmatmul.bf16.vlgmr.msra.gmra.mxu2 %v2078_v25 }
 0x15d   :  { %2517 = vmatpush.bf16.msra.mxu3 %v4021_v33 }
 0x161   :  { %2518 = vmatpush.bf16.msra.mxu3 %v4013_v29  ;;  %v4465_v29 = vld [vmem:[%s6661_s5 + $0x38] sm:$0xff] }
 0x162   :  { %v1965_v46 = vpop.f32.mrf.mxu0  ;;  %2720 = vmatpush.bf16.msra.mxu0 %v4465_v29 }
 0x163   :  { %v1979_v17 = vpop.f32.mrf.mxu1  ;;  %v1966_v49 = vadd.f32 %v1965_v46, %v295_v1  ;;  %v4458_v46 = vld [vmem:[%s6661_s5] sm:$0xff] }
 0x165   :  { %2519 = vmatpush.bf16.msra.mxu3 %v4005_v34  ;;  %v1980_v60 = vadd.f32 %v1979_v17, %v1966_v49  ;;  %v4462_v34 = vld [vmem:[%s6661_s5 + $0x20] sm:$0xff]  ;;  %v4468_v17 = vld [vmem:[%s6661_s5 + $0x50] sm:$0xff] }
 0x166   :  { %2721 = vmatpush.bf16.msra.mxu0 %v4464_v31 }
 0x169   :  { %2568 = vmatpush.bf16.msrb.mxu3 %v4065_v37  ;;  %v4460_v37 = vld [vmem:[%s6661_s5 + $0x10] sm:$0xff] }
 0x16a   :  { %v1993_v52 = vpop.f32.mrf.mxu2  ;;  %v1967_v30 = vpop.f32.mrf.mxu0  ;;  %2722 = vmatpush.bf16.msra.mxu0 %v4463_v45 }
 0x16b   :  { %2562 = vmatmul.bf16.vlgmr.msrb.gmra.mxu2 %v2078_v25  ;;  %v2007_v23 = vpop.f32.mrf.mxu3  ;;  %v1981_v10 = vpop.f32.mrf.mxu1  ;;  %v1968_v56 = vadd.f32 %v1967_v30, %v295_v1  ;;  %v1994_v57 = vadd.f32 %v1993_v52, %v1980_v60  ;;  %v2144_v1 = vld [vmem:[%s6662_s4] sm:$0x3] }
 0x16c   :  { %v2146_v52 = vperm.slane %v2144_v1, 0 }
 0x16d   :  { %2569 = vmatpush.bf16.msrb.mxu3 %v4057_v9  ;;  %v1982_v59 = vadd.f32 %v1981_v10, %v1968_v56  ;;  %v2008_v4 = vadd.f32 %v2007_v23, %v1994_v57  ;;  %v4471_v9 = vld [vmem:[%s6661_s5 + $0x68] sm:$0xff]  ;;  %v4466_v23 = vld [vmem:[%s6661_s5 + $0x40] sm:$0xff] }
 0x16e   :  { %2723 = vmatpush.bf16.msra.mxu0 %v4462_v34  ;;  %2736 = vmatpush.bf16.msra.mxu1 %v4471_v9 }
 0x171   :  { %2570 = vmatpush.bf16.msrb.mxu3 %v4049_v22 }
 0x172   :  { %v1995_v44 = vpop.f32.mrf.mxu2  ;;  %2724 = vmatpush.bf16.msra.mxu0 %v4461_v35  ;;  %2737 = vmatpush.bf16.msra.mxu1 %v4470_v8 }
 0x173   :  { %v2009_v61 = vpop.f32.mrf.mxu3  ;;  %v1996_v5 = vadd.f32 %v1995_v44, %v1982_v59 }
 0x175   :  { %2571 = vmatpush.bf16.msrb.mxu3 %v4041_v51  ;;  %v2010_v11 = vadd.f32 %v2009_v61, %v1996_v5  ;;  %v2147_v61 = vperm.slane %v2144_v1, 1 }
 0x176   :  { %2725 = vmatpush.bf16.msra.mxu0 %v4460_v37  ;;  %2738 = vmatpush.bf16.msra.mxu1 %v4469_v48 }
 0x179   :  { %2572 = vmatpush.bf16.msrb.mxu3 %v4033_v39 }
 0x17a   :  { %2726 = vmatpush.bf16.msra.mxu0 %v4459_v42  ;;  %2739 = vmatpush.bf16.msra.mxu1 %v4468_v17 }
 0x17d   :  { %2573 = vmatpush.bf16.msrb.mxu3 %v4025_v58 }
 0x17e   :  { %2727 = vmatpush.bf16.msra.mxu0 %v4458_v46  ;;  %2740 = vmatpush.bf16.msra.mxu1 %v4467_v50 }
 0x181   :  { %2574 = vmatpush.bf16.msrb.mxu3 %v4017_v47 }
 0x182   :  { %v2021_v14 = vpop.f32.mrf.mxu0  ;;  %2741 = vmatpush.bf16.msra.mxu1 %v4466_v23 }
 0x183   :  { %v2035_v2 = vpop.f32.mrf.mxu1  ;;  %v2022_v6 = vadd.f32 %v2021_v14, %v2008_v4 }
 0x185   :  { %2575 = vmatpush.bf16.msrb.mxu3 %v4009_v63  ;;  %v2036_v18 = vadd.f32 %v2035_v2, %v2022_v6 }
 0x18a   :  { %v2049_v7 = vpop.f32.mrf.mxu2  ;;  %v2023_v13 = vpop.f32.mrf.mxu0 }
 0x18b   :  { %v2063_v12 = vpop.f32.mrf.mxu3  ;;  %v2024_v28 = vadd.f32 %v2023_v13, %v2010_v11  ;;  %v2050_v15 = vadd.f32 %v2049_v7, %v2036_v18  ;;  %v2037_v3 = vpop.f32.mrf.mxu1 }
 0x18d   :  { %v2038_v16 = vadd.f32 %v2037_v3, %v2024_v28  ;;  %v2064_v21 = vadd.f32 %v2063_v12, %v2050_v15 }
 0x18f   :  { %v2071_v33 = vmax.f32 %v2064_v21, 0.0 }
 0x192   :  { %v2051_v19 = vpop.f32.mrf.mxu2 }
 0x193   :  { %v2052_v24 = vadd.f32 %v2051_v19, %v2038_v16  ;;  %v2065_v0 = vpop.f32.mrf.mxu3 }
 0x195   :  { %v2066_v25 = vadd.f32 %v2065_v0, %v2052_v24  ;;  %v4474_v24 = vld [vmem:[%s6660_s6] ss:$0 sm:$0xff] }
 0x197   :  { %v2075_v26 = vmax.f32 %v2066_v25, 0.0 }
 0x199   :  { %v2079_v27 = vpack.c.bf16 %v2075_v26, %v2071_v33 }
 0x19b   :  { %2520 = vmatmul.bf16.vlgmr.msra.gmra.mxu3 %v2079_v27 }
 0x1a2   :  { %v2479_v22 = vpop.f32.mrf.mxu0 }
 0x1a3   :  { %v2493_v51 = vpop.f32.mrf.mxu1  ;;  %v2480_v54 = vadd.f32 %v2479_v22, %v2146_v52 }
 0x1a5   :  { %v2494_v20 = vadd.f32 %v2493_v51, %v2480_v54 }
 0x1aa   :  { %v2481_v53 = vpop.f32.mrf.mxu0 }
 0x1ab   :  { %2576 = vmatmul.bf16.vlgmr.msrb.gmra.mxu3 %v2079_v27  ;;  %v2482_v39 = vadd.f32 %v2481_v53, %v2146_v52  ;;  %v2495_v55 = vpop.f32.mrf.mxu1 }
 0x1ad   :  { %v2496_v10 = vadd.f32 %v2495_v55, %v2482_v39 }
 0x1c2   :  { %v2535_v58 = vpop.f32.mrf.mxu0 }
 0x1c3   :  { %v2549_v57 = vpop.f32.mrf.mxu1  ;;  %v2536_v63 = vadd.f32 %v2535_v58, %v2147_v61 }
 0x1c5   :  { %v2550_v5 = vadd.f32 %v2549_v57, %v2536_v63 }
 0x1ca   :  { %v2537_v62 = vpop.f32.mrf.mxu0 }
 0x1cb   :  { %v2538_v4 = vadd.f32 %v2537_v62, %v2147_v61  ;;  %v2551_v6 = vpop.f32.mrf.mxu1 }
 0x1cd   :  { %v2552_v11 = vadd.f32 %v2551_v6, %v2538_v4 }
 0x1de   :  { %v2507_v38 = vpop.f32.mrf.mxu2 }
 0x1df   :  { %v2508_v60 = vadd.f32 %v2507_v38, %v2494_v20 }
 0x1e6   :  { %v2509_v49 = vpop.f32.mrf.mxu2 }
 0x1e7   :  { %v2510_v56 = vadd.f32 %v2509_v49, %v2496_v10 }
 0x1ee   :  { %v2563_v59 = vpop.f32.mrf.mxu2 }
 0x1ef   :  { %v2564_v12 = vadd.f32 %v2563_v59, %v2550_v5 }
 0x1f6   :  { %v2565_v7 = vpop.f32.mrf.mxu2 }
 0x1f7   :  { %v2566_v13 = vadd.f32 %v2565_v7, %v2552_v11 }
 0x21e   :  { %v2521_v30 = vpop.f32.mrf.mxu3 }
 0x21f   :  { %v2522_v44 = vadd.f32 %v2521_v30, %v2508_v60 }
 0x221   :  { %v2582_v14 = vmax.f32 %v2522_v44, 0.0 }
 0x226   :  { %v2523_v41 = vpop.f32.mrf.mxu3 }
 0x227   :  { %v2524_v43 = vadd.f32 %v2523_v41, %v2510_v56 }
 0x229   :  { %v2584_v47 = vmax.f32 %v2524_v43, 0.0 }
 0x22b   :  { %v2586_v32 = vpack.c.bf16 %v2584_v47, %v2582_v14 }
 0x22d   :  { %2728 = vmatmul.bf16.vlgmr.msra.gmra.mxu0 %v2586_v32 }
 0x22e   :  { %v2577_v2 = vpop.f32.mrf.mxu3 }
 0x22f   :  { %v2578_v18 = vadd.f32 %v2577_v2, %v2564_v12 }
 0x231   :  { %v2583_v3 = vmax.f32 %v2578_v18, 0.0 }
 0x236   :  { %v2579_v28 = vpop.f32.mrf.mxu3 }
 0x237   :  { %v2580_v15 = vadd.f32 %v2579_v28, %v2566_v13 }
 0x239   :  { %v2585_v16 = vmax.f32 %v2580_v15, 0.0 }
 0x23b   :  { %v2587_v19 = vpack.c.bf16 %v2585_v16, %v2583_v3 }
 0x23d   :  { %2742 = vmatmul.bf16.vlgmr.msra.gmra.mxu1 %v2587_v19 }
 0x2aa   :  { %v2729_v21 = vpop.f32.mrf.mxu0 }
 0x2ab   :  { %v2730_v0 = vadd.f32 %v4474_v24, %v2729_v21 }
 0x2b2   :  { %v2731_v26 = vpop.f32.mrf.mxu0 }
 0x2b3   :  { %v2732_v27 = vadd.f32 %v4474_v24, %v2731_v26 }
 0x2ba   :  { %v2743_v25 = vpop.f32.mrf.mxu1 }
 0x2bb   :  { %v2744_v33 = vadd.f32 %v2743_v25, %v2730_v0 }
 0x2bd   :  { %2748 = vst [vmem:[%s6663_s7] sm:$0xff] %v2744_v33 }
 0x2c2   :  { %v2745_v29 = vpop.f32.mrf.mxu1 }
 0x2c3   :  { %v2746_v31 = vadd.f32 %v2745_v29, %v2732_v27 }
 0x2c5   :  { %2749 = vst [vmem:[%s6663_s7 + $0x8] sm:$0xff] %v2746_v31 }

</bundles_post_ra>
